<compile_context>
chip_gen: v6e
topology: v6e:2x2x1
jax: 0.10.0
libtpu: 0.0.40
codegen_flags: <defaults>
</compile_context>

<pallas_src>
import functools
import math

import numpy as np
import jax
import jax.numpy as jnp
from jax.experimental import pallas as pl
from jax.experimental.pallas import tpu as pltpu


VMEM_LIMIT = 32 * 1024 * 1024  # explicit scoped-VMEM cap (safe on v5e/v6e/v7x)
LN_EPS = 1e-6


def _pick_tile(dim, pref, align):
    """Largest tile <= pref that is a multiple of `align` and divides `dim`;
    falls back to the full extent (always a legal block)."""
    if dim <= pref:
        return dim
    t = (pref // align) * align
    while t >= align:
        if dim % t == 0:
            return t
        t -= align
    return dim


# ----------------------------- tiled matmul --------------------------------

def _matmul_kernel(x_ref, w_ref, o_ref, acc_ref, *, activation):
    @pl.when(pl.program_id(2) == 0)
    def _():
        acc_ref[...] = jnp.zeros_like(acc_ref)

    acc_ref[...] += jnp.dot(x_ref[...], w_ref[...],
                            preferred_element_type=jnp.float32)

    @pl.when(pl.program_id(2) == pl.num_programs(2) - 1)
    def _():
        y = acc_ref[...]
        if activation == "relu":
            y = jnp.maximum(y, 0.0)
        o_ref[...] = y.astype(o_ref.dtype)


def matmul(x, w, out_dtype=jnp.bfloat16, activation="none",
           tm=256, tn=256, tk=512):
    """Tiled y = x @ w.  x: (M, K) bf16, w: (K, N) bf16."""
    M, K = x.shape
    N = w.shape[1]
    tm = _pick_tile(M, tm, 8)
    tn = _pick_tile(N, tn, 128)
    tk = _pick_tile(K, tk, 128)
    grid = (M // tm, N // tn, K // tk)
    bytes_accessed = int(M * K * x.dtype.itemsize + K * N * w.dtype.itemsize
                         + M * N * jnp.dtype(out_dtype).itemsize)
    return pl.pallas_call(
        functools.partial(_matmul_kernel, activation=activation),
        out_shape=jax.ShapeDtypeStruct((M, N), out_dtype),
        grid=grid,
        in_specs=[
            pl.BlockSpec((tm, tk), lambda i, j, k: (i, k)),
            pl.BlockSpec((tk, tn), lambda i, j, k: (k, j)),
        ],
        out_specs=pl.BlockSpec((tm, tn), lambda i, j, k: (i, j)),
        scratch_shapes=[pltpu.VMEM((tm, tn), jnp.float32)],
        compiler_params=pltpu.CompilerParams(
            dimension_semantics=("parallel", "parallel", "arbitrary"),
            vmem_limit_bytes=VMEM_LIMIT),
        cost_estimate=pl.CostEstimate(flops=2 * M * N * K, transcendentals=0,
                                      bytes_accessed=bytes_accessed),
    )(x, w)


# ------------------- matmul + residual + LayerNorm (MHA out) ----------------

def _matmul_add_ln_kernel(x_ref, w_ref, r_ref, g_ref, b_ref, o_ref, *, eps):
    y = jnp.dot(x_ref[...], w_ref[...], preferred_element_type=jnp.float32)
    y = y + r_ref[...].astype(jnp.float32)
    mean = jnp.mean(y, axis=-1, keepdims=True)
    var = jnp.mean(jnp.square(y - mean), axis=-1, keepdims=True)
    norm = (y - mean) * jax.lax.rsqrt(var + eps)
    o_ref[...] = (norm * g_ref[...] + b_ref[...]).astype(o_ref.dtype)


def matmul_add_layernorm(x, w, residual, gamma, beta,
                         out_dtype=jnp.bfloat16, eps=LN_EPS):
    """LayerNorm(x @ w + residual).  N (= d_model) kept whole so LN sees the
    full feature dim; grid tiles rows only."""
    M, K = x.shape
    N = w.shape[1]
    tm = _pick_tile(M, 256, 8)
    bytes_accessed = int(M * K * x.dtype.itemsize + K * N * w.dtype.itemsize
                         + 2 * M * N * 2)
    return pl.pallas_call(
        functools.partial(_matmul_add_ln_kernel, eps=eps),
        out_shape=jax.ShapeDtypeStruct((M, N), out_dtype),
        grid=(M // tm,),
        in_specs=[
            pl.BlockSpec((tm, K), lambda i: (i, 0)),
            pl.BlockSpec((K, N), lambda i: (0, 0)),
            pl.BlockSpec((tm, N), lambda i: (i, 0)),
            pl.BlockSpec((1, N), lambda i: (0, 0)),
            pl.BlockSpec((1, N), lambda i: (0, 0)),
        ],
        out_specs=pl.BlockSpec((tm, N), lambda i: (i, 0)),
        compiler_params=pltpu.CompilerParams(
            dimension_semantics=("parallel",), vmem_limit_bytes=VMEM_LIMIT),
        cost_estimate=pl.CostEstimate(flops=2 * M * N * K, transcendentals=0,
                                      bytes_accessed=bytes_accessed),
    )(x, w, residual, gamma.reshape(1, N), beta.reshape(1, N))


# ------------------------------ LayerNorm -----------------------------------

def _layernorm_kernel(x_ref, g_ref, b_ref, o_ref, *, eps):
    y = x_ref[...].astype(jnp.float32)
    mean = jnp.mean(y, axis=-1, keepdims=True)
    var = jnp.mean(jnp.square(y - mean), axis=-1, keepdims=True)
    norm = (y - mean) * jax.lax.rsqrt(var + eps)
    o_ref[...] = (norm * g_ref[...] + b_ref[...]).astype(o_ref.dtype)


def layernorm(x, gamma, beta, out_dtype=jnp.bfloat16, eps=LN_EPS):
    M, D = x.shape
    tm = _pick_tile(M, 512, 8)
    return pl.pallas_call(
        functools.partial(_layernorm_kernel, eps=eps),
        out_shape=jax.ShapeDtypeStruct((M, D), out_dtype),
        grid=(M // tm,),
        in_specs=[
            pl.BlockSpec((tm, D), lambda i: (i, 0)),
            pl.BlockSpec((1, D), lambda i: (0, 0)),
            pl.BlockSpec((1, D), lambda i: (0, 0)),
        ],
        out_specs=pl.BlockSpec((tm, D), lambda i: (i, 0)),
        compiler_params=pltpu.CompilerParams(
            dimension_semantics=("parallel",), vmem_limit_bytes=VMEM_LIMIT),
    )(x, gamma.reshape(1, D), beta.reshape(1, D))


# ------------------------------ attention -----------------------------------

def _attention_body(q2, k2, v2, o_ref, *, n_head, d_k, scale):
    """q2: (Lq, D) bf16, k2/v2: (Lk, D) bf16, heads packed along the lane dim."""
    outs = []
    for h in range(n_head):
        sl = slice(h * d_k, (h + 1) * d_k)
        qh, kh, vh = q2[:, sl], k2[:, sl], v2[:, sl]
        s = jax.lax.dot_general(qh, kh, (((1,), (1,)), ((), ())),
                                preferred_element_type=jnp.float32) * scale
        s = s - jnp.max(s, axis=-1, keepdims=True)
        p = jnp.exp(s)
        p = p * pl.reciprocal(jnp.sum(p, axis=-1, keepdims=True), approx=True)
        outs.append(jnp.dot(p.astype(vh.dtype), vh,
                            preferred_element_type=jnp.float32))
    # single lane-dense store of all heads
    o_ref[0] = jnp.concatenate(outs, axis=-1).astype(o_ref.dtype)


def _attn_self_kernel(qkv_ref, o_ref, *, n_head, d_k, d_model, scale):
    x = qkv_ref[0]                               # (L, 3D)
    _attention_body(x[:, :d_model], x[:, d_model:2 * d_model],
                    x[:, 2 * d_model:], o_ref,
                    n_head=n_head, d_k=d_k, scale=scale)


def _attn_cross_kernel(q_ref, kv_ref, o_ref, *, n_head, d_k, d_model, scale):
    q = q_ref[0]                                 # (Lq, D)
    kv = kv_ref[0]                               # (Lk, 2D)
    _attention_body(q, kv[:, :d_model], kv[:, d_model:], o_ref,
                    n_head=n_head, d_k=d_k, scale=scale)


def attention_self(qkv, n_head):
    B, L, threeD = qkv.shape
    D = threeD // 3
    d_k = D // n_head
    return pl.pallas_call(
        functools.partial(_attn_self_kernel, n_head=n_head, d_k=d_k,
                          d_model=D, scale=1.0 / math.sqrt(d_k)),
        out_shape=jax.ShapeDtypeStruct((B, L, D), qkv.dtype),
        grid=(B,),
        in_specs=[pl.BlockSpec((1, L, threeD), lambda b: (b, 0, 0))],
        out_specs=pl.BlockSpec((1, L, D), lambda b: (b, 0, 0)),
        compiler_params=pltpu.CompilerParams(
            dimension_semantics=("parallel",), vmem_limit_bytes=VMEM_LIMIT),
    )(qkv)


def attention_cross(q, kv, n_head):
    B, Lq, D = q.shape
    Lk = kv.shape[1]
    d_k = D // n_head
    return pl.pallas_call(
        functools.partial(_attn_cross_kernel, n_head=n_head, d_k=d_k,
                          d_model=D, scale=1.0 / math.sqrt(d_k)),
        out_shape=jax.ShapeDtypeStruct((B, Lq, D), q.dtype),
        grid=(B,),
        in_specs=[
            pl.BlockSpec((1, Lq, D), lambda b: (b, 0, 0)),
            pl.BlockSpec((1, Lk, 2 * D), lambda b: (b, 0, 0)),
        ],
        out_specs=pl.BlockSpec((1, Lq, D), lambda b: (b, 0, 0)),
        compiler_params=pltpu.CompilerParams(
            dimension_semantics=("parallel",), vmem_limit_bytes=VMEM_LIMIT),
    )(q, kv)


# ------------------------------ fused FFN ------------------------------------

def _ffn_kernel(x_ref, w1_ref, b1_ref, w2_ref, b2_ref, g_ref, bb_ref, o_ref,
                *, eps):
    x = x_ref[...]                                            # (tm, D) bf16
    h = jnp.dot(x, w1_ref[...], preferred_element_type=jnp.float32) + b1_ref[...]
    h = jnp.maximum(h, 0.0).astype(w2_ref.dtype)              # hidden stays in VMEM
    y = jnp.dot(h, w2_ref[...], preferred_element_type=jnp.float32) + b2_ref[...]
    y = y + x.astype(jnp.float32)                             # residual
    mean = jnp.mean(y, axis=-1, keepdims=True)
    var = jnp.mean(jnp.square(y - mean), axis=-1, keepdims=True)
    norm = (y - mean) * jax.lax.rsqrt(var + eps)
    o_ref[...] = (norm * g_ref[...] + bb_ref[...]).astype(o_ref.dtype)


def positionwise_ffn(p, x):
    B, L, D = x.shape
    x2 = x.reshape(B * L, D)
    M = B * L
    H = p["w1"].shape[1]
    tm = _pick_tile(M, 256, 8)
    bytes_accessed = int(2 * M * D * 2 + 2 * D * H * 2 + (H + 3 * D) * 4)
    out = pl.pallas_call(
        functools.partial(_ffn_kernel, eps=LN_EPS),
        out_shape=jax.ShapeDtypeStruct((M, D), x2.dtype),
        grid=(M // tm,),
        in_specs=[
            pl.BlockSpec((tm, D), lambda i: (i, 0)),
            pl.BlockSpec((D, H), lambda i: (0, 0)),
            pl.BlockSpec((1, H), lambda i: (0, 0)),
            pl.BlockSpec((H, D), lambda i: (0, 0)),
            pl.BlockSpec((1, D), lambda i: (0, 0)),
            pl.BlockSpec((1, D), lambda i: (0, 0)),
            pl.BlockSpec((1, D), lambda i: (0, 0)),
        ],
        out_specs=pl.BlockSpec((tm, D), lambda i: (i, 0)),
        compiler_params=pltpu.CompilerParams(
            dimension_semantics=("parallel",), vmem_limit_bytes=VMEM_LIMIT),
        cost_estimate=pl.CostEstimate(flops=4 * M * D * H, transcendentals=0,
                                      bytes_accessed=bytes_accessed),
    )(x2, p["w1"], p["b1"].reshape(1, H), p["w2"], p["b2"].reshape(1, D),
      p["ln_g"].reshape(1, D), p["ln_b"].reshape(1, D))
    return out.reshape(B, L, D)


# --------------------------- model (JAX glue) --------------------------------

def multi_head_attention(p, q_in, k_in, v_in, n_head):
    B, Lq, D = q_in.shape
    q2 = q_in.reshape(B * Lq, D)

    if q_in is k_in and k_in is v_in:
        # fused QKV projection, heads stay packed along the lane dim
        qkv = matmul(q2, p["w_qkv"]).reshape(B, Lq, 3 * D)
        ctx = attention_self(qkv, n_head)
    else:
        Lk = k_in.shape[1]
        k2 = k_in.reshape(B * Lk, D)
        q = matmul(q2, p["wq"]).reshape(B, Lq, D)
        kv = matmul(k2, p["w_kv"]).reshape(B, Lk, 2 * D)
        ctx = attention_cross(q, kv, n_head)

    # fc + residual + LayerNorm in one kernel (dropout = identity in eval)
    out = matmul_add_layernorm(ctx.reshape(B * Lq, D), p["fc"], q2,
                               p["ln_g"], p["ln_b"])
    return out.reshape(B, Lq, D)


def positional_table(n_position, d_hid):
    pos = np.arange(n_position)[:, None].astype(np.float64)
    i = np.arange(d_hid)[None, :].astype(np.float64)
    angle = pos / np.power(10000.0, 2.0 * i / d_hid)
    pe = angle.copy()
    pe[:, 0::2] = np.sin(angle[:, 0::2])
    pe[:, 1::2] = np.cos(angle[:, 1::2])
    return jnp.asarray(pe, jnp.float32)


def encode(p, src_seq, n_head):
    B, L = src_seq.shape
    D = p["emb"].shape[1]
    x = p["emb"][src_seq] + p["pos_enc"][:L][None, :, :]   # embedding gather (XLA glue)
    x = layernorm(x.reshape(B * L, D), p["ln_g"], p["ln_b"]).reshape(B, L, D)
    for layer in p["layers"]:
        x = multi_head_attention(layer["slf_attn"], x, x, x, n_head)
        x = positionwise_ffn(layer["ffn"], x)
    return x


def decode(p, trg_seq, enc_output, n_head):
    B, L = trg_seq.shape
    D = p["emb"].shape[1]
    x = p["emb"][trg_seq] + p["pos_enc"][:L][None, :, :]
    x = layernorm(x.reshape(B * L, D), p["ln_g"], p["ln_b"]).reshape(B, L, D)
    for layer in p["layers"]:
        x = multi_head_attention(layer["slf_attn"], x, x, x, n_head)
        x = multi_head_attention(layer["enc_attn"], x, enc_output, enc_output, n_head)
        x = positionwise_ffn(layer["ffn"], x)
    return x


def transformer_forward(params, src_seq, trg_seq, n_head):
    enc_out = encode(params["encoder"], src_seq, n_head)
    dec_out = decode(params["decoder"], trg_seq, enc_out, n_head)
    B, Lt, D = dec_out.shape
    logits = matmul(dec_out.reshape(B * Lt, D), params["trg_word_prj"],
                    out_dtype=jnp.float32)
    return logits                                            # (B*Lt, n_trg_vocab)


# ------------------------------ init ----------------------------------------

def xavier(key, shape):
    fan_in, fan_out = shape
    bound = math.sqrt(6.0 / (fan_in + fan_out))
    return jax.random.uniform(key, shape, jnp.float32, -bound, bound)


def init_mha(key, d_model):
    ks = jax.random.split(key, 4)
    wq = xavier(ks[0], (d_model, d_model))
    wk = xavier(ks[1], (d_model, d_model))
    wv = xavier(ks[2], (d_model, d_model))
    fc = xavier(ks[3], (d_model, d_model))
    return dict(
        w_qkv=jnp.concatenate([wq, wk, wv], axis=1).astype(jnp.bfloat16),
        wq=wq.astype(jnp.bfloat16),
        w_kv=jnp.concatenate([wk, wv], axis=1).astype(jnp.bfloat16),
        fc=fc.astype(jnp.bfloat16),
        ln_g=jnp.ones((d_model,), jnp.float32),
        ln_b=jnp.zeros((d_model,), jnp.float32),
    )


def init_ffn(key, d_model, d_hid):
    k1, k2 = jax.random.split(key)
    return dict(
        w1=xavier(k1, (d_model, d_hid)).astype(jnp.bfloat16),
        b1=jnp.zeros((d_hid,), jnp.float32),
        w2=xavier(k2, (d_hid, d_model)).astype(jnp.bfloat16),
        b2=jnp.zeros((d_model,), jnp.float32),
        ln_g=jnp.ones((d_model,), jnp.float32),
        ln_b=jnp.zeros((d_model,), jnp.float32),
    )


def init_stack(key, n_vocab, n_layers, d_model, d_hid, pad_idx, n_position, cross_attn):
    keys = jax.random.split(key, n_layers * 3 + 1)
    emb = xavier(keys[0], (n_vocab, d_model))
    emb = emb.at[pad_idx].set(0.0)                          # padding_idx row zeroed
    layers = []
    for l in range(n_layers):
        layer = dict(
            slf_attn=init_mha(keys[3 * l + 1], d_model),
            ffn=init_ffn(keys[3 * l + 2], d_model, d_hid),
        )
        if cross_attn:
            layer["enc_attn"] = init_mha(keys[3 * l + 3], d_model)
        layers.append(layer)
    return dict(
        emb=emb,
        pos_enc=positional_table(n_position, d_model),
        ln_g=jnp.ones((d_model,), jnp.float32),
        ln_b=jnp.zeros((d_model,), jnp.float32),
        layers=layers,
    )


def init_transformer(key, n_src_vocab, n_trg_vocab, d_model, n_layers, pad_idx,
                     d_hid=2048, n_position=200):
    k_enc, k_dec, k_prj = jax.random.split(key, 3)
    return dict(
        encoder=init_stack(k_enc, n_src_vocab, n_layers, d_model, d_hid, pad_idx,
                           n_position, cross_attn=False),
        decoder=init_stack(k_dec, n_trg_vocab, n_layers, d_model, d_hid, pad_idx,
                           n_position, cross_attn=True),
        trg_word_prj=xavier(k_prj, (d_model, n_trg_vocab)).astype(jnp.bfloat16),
    )


# ------------------------------ main -----------------------------------------

if __name__ == "__main__":
    n_src_vocab, n_trg_vocab = 50, 40
    d_model, n_layers, n_head, pad_idx = 32, 2, 4, 0
    B, Ls, Lt = 2, 8, 8

    key = jax.random.PRNGKey(0)
    k_par, k_src, k_trg = jax.random.split(key, 3)

    params = init_transformer(k_par, n_src_vocab, n_trg_vocab, d_model, n_layers, pad_idx)

    src_seq = jax.random.randint(k_src, (B, Ls), 1, n_src_vocab, dtype=jnp.int32)
    trg_seq = jax.random.randint(k_trg, (B, Lt), 1, n_trg_vocab, dtype=jnp.int32)

    fwd = jax.jit(functools.partial(transformer_forward, n_head=n_head))
    logits = fwd(params, src_seq, trg_seq)
    jax.block_until_ready(logits)

    assert logits.shape == (B * Lt, n_trg_vocab), logits.shape
    assert bool(jnp.all(jnp.isfinite(logits)))
    print("KERNEL_OK")
</pallas_src>

<mosaic_0001>
module attributes {stable_mosaic.version = 11 : i64} {
  func.func @_layernorm_kernel(%arg0: i32, %arg1: memref<16x32xf32, #tpu.memory_space<vmem>>, %arg2: memref<1x32xf32, #tpu.memory_space<vmem>>, %arg3: memref<1x32xf32, #tpu.memory_space<vmem>>, %arg4: memref<16x32xbf16, #tpu.memory_space<vmem>>) attributes {dimension_semantics = [#tpu.dimension_semantics<parallel>], iteration_bounds = array<i64: 1>, scalar_prefetch = 0 : i64, scratch_operands = 0 : i64, tpu.core_type = #tpu.core_type<tc>, window_params = [{transform_indices = @transform_0, window_bounds = array<i64: 16, 32>}, {pipeline_mode = #tpu.pipeline_mode<synchronous>, transform_indices = @transform_1, window_bounds = array<i64: 1, 32>}, {pipeline_mode = #tpu.pipeline_mode<synchronous>, transform_indices = @transform_2, window_bounds = array<i64: 1, 32>}, {transform_indices = @transform_3, window_bounds = array<i64: 16, 32>}]} {
    %c0 = arith.constant 0 : index
    %c0_0 = arith.constant 0 : index
    %0 = vector.load %arg1[%c0, %c0_0] : memref<16x32xf32, #tpu.memory_space<vmem>>, vector<16x32xf32>
    %cst = arith.constant dense<0.000000e+00> : vector<16xf32>
    %1 = vector.multi_reduction <add>, %0, %cst [1] : vector<16x32xf32> to vector<16xf32>
    %2 = vector.shape_cast %1 : vector<16xf32> to vector<16x1xf32>
    %cst_1 = arith.constant 3.200000e+01 : f32
    %3 = vector.broadcast %cst_1 : f32 to vector<16x1xf32>
    %4 = arith.divf %2, %3 : vector<16x1xf32>
    %5 = vector.broadcast %4 : vector<16x1xf32> to vector<16x32xf32>
    %6 = arith.subf %0, %5 : vector<16x32xf32>
    %7 = arith.mulf %6, %6 : vector<16x32xf32>
    %cst_2 = arith.constant dense<0.000000e+00> : vector<16xf32>
    %8 = vector.multi_reduction <add>, %7, %cst_2 [1] : vector<16x32xf32> to vector<16xf32>
    %9 = vector.shape_cast %8 : vector<16xf32> to vector<16x1xf32>
    %cst_3 = arith.constant 3.200000e+01 : f32
    %10 = vector.broadcast %cst_3 : f32 to vector<16x1xf32>
    %11 = arith.divf %9, %10 : vector<16x1xf32>
    %12 = vector.broadcast %4 : vector<16x1xf32> to vector<16x32xf32>
    %13 = arith.subf %0, %12 : vector<16x32xf32>
    %cst_4 = arith.constant 9.99999997E-7 : f32
    %14 = vector.broadcast %cst_4 : f32 to vector<16x1xf32>
    %15 = arith.addf %11, %14 : vector<16x1xf32>
    %16 = math.rsqrt %15 : vector<16x1xf32>
    %17 = vector.broadcast %16 : vector<16x1xf32> to vector<16x32xf32>
    %18 = arith.mulf %13, %17 : vector<16x32xf32>
    %c0_5 = arith.constant 0 : index
    %c0_6 = arith.constant 0 : index
    %19 = vector.load %arg2[%c0_5, %c0_6] : memref<1x32xf32, #tpu.memory_space<vmem>>, vector<1x32xf32>
    %20 = vector.broadcast %19 : vector<1x32xf32> to vector<16x32xf32>
    %21 = arith.mulf %18, %20 : vector<16x32xf32>
    %c0_7 = arith.constant 0 : index
    %c0_8 = arith.constant 0 : index
    %22 = vector.load %arg3[%c0_7, %c0_8] : memref<1x32xf32, #tpu.memory_space<vmem>>, vector<1x32xf32>
    %23 = vector.broadcast %22 : vector<1x32xf32> to vector<16x32xf32>
    %24 = arith.addf %21, %23 : vector<16x32xf32>
    %25 = arith.truncf %24 : vector<16x32xf32> to vector<16x32xbf16>
    %c0_9 = arith.constant 0 : index
    %c0_10 = arith.constant 0 : index
    %26 = vector.load %arg4[%c0_9, %c0_10] : memref<16x32xbf16, #tpu.memory_space<vmem>>, vector<16x32xbf16>
    tpu.vector_store %arg4[%c0_9, %c0_10], %25 {strides = array<i32>} : memref<16x32xbf16, #tpu.memory_space<vmem>>, vector<16x32xbf16>,
    return
  }
  func.func @transform_0(%arg0: i32) -> (i32, i32) {
    %c0_i32 = arith.constant 0 : i32
    %c0_i32_0 = arith.constant 0 : i32
    return %arg0, %c0_i32 : i32, i32
  }
  func.func @transform_1(%arg0: i32) -> (i32, i32) {
    %c0_i32 = arith.constant 0 : i32
    %c0_i32_0 = arith.constant 0 : i32
    %c0_i32_1 = arith.constant 0 : i32
    return %c0_i32, %c0_i32_0 : i32, i32
  }
  func.func @transform_2(%arg0: i32) -> (i32, i32) {
    %c0_i32 = arith.constant 0 : i32
    %c0_i32_0 = arith.constant 0 : i32
    %c0_i32_1 = arith.constant 0 : i32
    return %c0_i32, %c0_i32_0 : i32, i32
  }
  func.func @transform_3(%arg0: i32) -> (i32, i32) {
    %c0_i32 = arith.constant 0 : i32
    %c0_i32_0 = arith.constant 0 : i32
    return %arg0, %c0_i32 : i32, i32
  }
}

module attributes {stable_mosaic.version = 11 : i64} {
  func.func @_matmul_kernel(%arg0: i32, %arg1: i32, %arg2: i32, %arg3: memref<16x32xbf16, #tpu.memory_space<vmem>>, %arg4: memref<32x96xbf16, #tpu.memory_space<vmem>>, %arg5: memref<16x96xbf16, #tpu.memory_space<vmem>>, %arg6: memref<16x96xf32, #tpu.memory_space<vmem>>) attributes {dimension_semantics = [#tpu.dimension_semantics<parallel>, #tpu.dimension_semantics<parallel>, #tpu.dimension_semantics<arbitrary>], iteration_bounds = array<i64: 1, 1, 1>, scalar_prefetch = 0 : i64, scratch_operands = 1 : i64, tpu.core_type = #tpu.core_type<tc>, window_params = [{transform_indices = @transform_0, window_bounds = array<i64: 16, 32>}, {transform_indices = @transform_1, window_bounds = array<i64: 32, 96>}, {transform_indices = @transform_2, window_bounds = array<i64: 16, 96>}]} {
    %c0_i32 = arith.constant 0 : i32
    %0 = arith.cmpi eq, %arg2, %c0_i32 : i32
    %1 = arith.extui %0 : i1 to i32
    %c0_i32_0 = arith.constant 0 : i32
    %2 = arith.cmpi ne, %1, %c0_i32_0 : i32
    scf.if %2 {
      %cst_10 = arith.constant 0.000000e+00 : f32
      %12 = vector.broadcast %cst_10 : f32 to vector<16x96xf32>
      %c0_11 = arith.constant 0 : index
      %c0_12 = arith.constant 0 : index
      %13 = vector.load %arg6[%c0_11, %c0_12] : memref<16x96xf32, #tpu.memory_space<vmem>>, vector<16x96xf32>
      tpu.vector_store %arg6[%c0_11, %c0_12], %12 {strides = array<i32>} : memref<16x96xf32, #tpu.memory_space<vmem>>, vector<16x96xf32>,
    } else {
    }
    %c0 = arith.constant 0 : index
    %c0_1 = arith.constant 0 : index
    %3 = vector.load %arg6[%c0, %c0_1] : memref<16x96xf32, #tpu.memory_space<vmem>>, vector<16x96xf32>
    %c0_2 = arith.constant 0 : index
    %c0_3 = arith.constant 0 : index
    %4 = vector.load %arg3[%c0_2, %c0_3] : memref<16x32xbf16, #tpu.memory_space<vmem>>, vector<16x32xbf16>
    %c0_4 = arith.constant 0 : index
    %c0_5 = arith.constant 0 : index
    %5 = vector.load %arg4[%c0_4, %c0_5] : memref<32x96xbf16, #tpu.memory_space<vmem>>, vector<32x96xbf16>
    %cst = arith.constant dense<0.000000e+00> : vector<16x96xf32>
    %6 = tpu.matmul %4, %5, %cst {dimension_numbers = #tpu.dot_dimension_numbers<[1], [0], [0], [1], [0, 0, 1, 1], [], []>} : vector<16x32xbf16>, vector<32x96xbf16>, vector<16x96xf32> -> vector<16x96xf32>
    %7 = arith.addf %3, %6 : vector<16x96xf32>
    %c0_6 = arith.constant 0 : index
    %c0_7 = arith.constant 0 : index
    %8 = vector.load %arg6[%c0_6, %c0_7] : memref<16x96xf32, #tpu.memory_space<vmem>>, vector<16x96xf32>
    tpu.vector_store %arg6[%c0_6, %c0_7], %7 {strides = array<i32>} : memref<16x96xf32, #tpu.memory_space<vmem>>, vector<16x96xf32>,
    %c0_i32_8 = arith.constant 0 : i32
    %9 = arith.cmpi eq, %arg2, %c0_i32_8 : i32
    %10 = arith.extui %9 : i1 to i32
    %c0_i32_9 = arith.constant 0 : i32
    %11 = arith.cmpi ne, %10, %c0_i32_9 : i32
    scf.if %11 {
      %c0_10 = arith.constant 0 : index
      %c0_11 = arith.constant 0 : index
      %12 = vector.load %arg6[%c0_10, %c0_11] : memref<16x96xf32, #tpu.memory_space<vmem>>, vector<16x96xf32>
      %13 = arith.truncf %12 : vector<16x96xf32> to vector<16x96xbf16>
      %c0_12 = arith.constant 0 : index
      %c0_13 = arith.constant 0 : index
      %14 = vector.load %arg5[%c0_12, %c0_13] : memref<16x96xbf16, #tpu.memory_space<vmem>>, vector<16x96xbf16>
      tpu.vector_store %arg5[%c0_12, %c0_13], %13 {strides = array<i32>} : memref<16x96xbf16, #tpu.memory_space<vmem>>, vector<16x96xbf16>,
    } else {
    }
    return
  }
  func.func @transform_0(%arg0: i32, %arg1: i32, %arg2: i32) -> (i32, i32) {
    %c0_i32 = arith.constant 0 : i32
    return %arg0, %arg2 : i32, i32
  }
  func.func @transform_1(%arg0: i32, %arg1: i32, %arg2: i32) -> (i32, i32) {
    %c0_i32 = arith.constant 0 : i32
    return %arg2, %arg1 : i32, i32
  }
  func.func @transform_2(%arg0: i32, %arg1: i32, %arg2: i32) -> (i32, i32) {
    %c0_i32 = arith.constant 0 : i32
    return %arg0, %arg1 : i32, i32
  }
}

module attributes {stable_mosaic.version = 11 : i64} {
  func.func @_matmul_add_ln_kernel(%arg0: i32, %arg1: memref<16x32xbf16, #tpu.memory_space<vmem>>, %arg2: memref<32x32xbf16, #tpu.memory_space<vmem>>, %arg3: memref<16x32xbf16, #tpu.memory_space<vmem>>, %arg4: memref<1x32xf32, #tpu.memory_space<vmem>>, %arg5: memref<1x32xf32, #tpu.memory_space<vmem>>, %arg6: memref<16x32xbf16, #tpu.memory_space<vmem>>) attributes {dimension_semantics = [#tpu.dimension_semantics<parallel>], iteration_bounds = array<i64: 1>, scalar_prefetch = 0 : i64, scratch_operands = 0 : i64, tpu.core_type = #tpu.core_type<tc>, window_params = [{transform_indices = @transform_0, window_bounds = array<i64: 16, 32>}, {pipeline_mode = #tpu.pipeline_mode<synchronous>, transform_indices = @transform_1, window_bounds = array<i64: 32, 32>}, {transform_indices = @transform_2, window_bounds = array<i64: 16, 32>}, {pipeline_mode = #tpu.pipeline_mode<synchronous>, transform_indices = @transform_3, window_bounds = array<i64: 1, 32>}, {pipeline_mode = #tpu.pipeline_mode<synchronous>, transform_indices = @transform_4, window_bounds = array<i64: 1, 32>}, {transform_indices = @transform_5, window_bounds = array<i64: 16, 32>}]} {
    %c0 = arith.constant 0 : index
    %c0_0 = arith.constant 0 : index
    %0 = vector.load %arg1[%c0, %c0_0] : memref<16x32xbf16, #tpu.memory_space<vmem>>, vector<16x32xbf16>
    %c0_1 = arith.constant 0 : index
    %c0_2 = arith.constant 0 : index
    %1 = vector.load %arg2[%c0_1, %c0_2] : memref<32x32xbf16, #tpu.memory_space<vmem>>, vector<32x32xbf16>
    %cst = arith.constant dense<0.000000e+00> : vector<16x32xf32>
    %2 = tpu.matmul %0, %1, %cst {dimension_numbers = #tpu.dot_dimension_numbers<[1], [0], [0], [1], [0, 0, 1, 1], [], []>} : vector<16x32xbf16>, vector<32x32xbf16>, vector<16x32xf32> -> vector<16x32xf32>
    %c0_3 = arith.constant 0 : index
    %c0_4 = arith.constant 0 : index
    %3 = vector.load %arg3[%c0_3, %c0_4] : memref<16x32xbf16, #tpu.memory_space<vmem>>, vector<16x32xbf16>
    %4 = arith.extf %3 : vector<16x32xbf16> to vector<16x32xf32>
    %5 = arith.addf %2, %4 : vector<16x32xf32>
    %cst_5 = arith.constant dense<0.000000e+00> : vector<16xf32>
    %6 = vector.multi_reduction <add>, %5, %cst_5 [1] : vector<16x32xf32> to vector<16xf32>
    %7 = vector.shape_cast %6 : vector<16xf32> to vector<16x1xf32>
    %cst_6 = arith.constant 3.200000e+01 : f32
    %8 = vector.broadcast %cst_6 : f32 to vector<16x1xf32>
    %9 = arith.divf %7, %8 : vector<16x1xf32>
    %10 = vector.broadcast %9 : vector<16x1xf32> to vector<16x32xf32>
    %11 = arith.subf %5, %10 : vector<16x32xf32>
    %12 = arith.mulf %11, %11 : vector<16x32xf32>
    %cst_7 = arith.constant dense<0.000000e+00> : vector<16xf32>
    %13 = vector.multi_reduction <add>, %12, %cst_7 [1] : vector<16x32xf32> to vector<16xf32>
    %14 = vector.shape_cast %13 : vector<16xf32> to vector<16x1xf32>
    %cst_8 = arith.constant 3.200000e+01 : f32
    %15 = vector.broadcast %cst_8 : f32 to vector<16x1xf32>
    %16 = arith.divf %14, %15 : vector<16x1xf32>
    %17 = vector.broadcast %9 : vector<16x1xf32> to vector<16x32xf32>
    %18 = arith.subf %5, %17 : vector<16x32xf32>
    %cst_9 = arith.constant 9.99999997E-7 : f32
    %19 = vector.broadcast %cst_9 : f32 to vector<16x1xf32>
    %20 = arith.addf %16, %19 : vector<16x1xf32>
    %21 = math.rsqrt %20 : vector<16x1xf32>
    %22 = vector.broadcast %21 : vector<16x1xf32> to vector<16x32xf32>
    %23 = arith.mulf %18, %22 : vector<16x32xf32>
    %c0_10 = arith.constant 0 : index
    %c0_11 = arith.constant 0 : index
    %24 = vector.load %arg4[%c0_10, %c0_11] : memref<1x32xf32, #tpu.memory_space<vmem>>, vector<1x32xf32>
    %25 = vector.broadcast %24 : vector<1x32xf32> to vector<16x32xf32>
    %26 = arith.mulf %23, %25 : vector<16x32xf32>
    %c0_12 = arith.constant 0 : index
    %c0_13 = arith.constant 0 : index
    %27 = vector.load %arg5[%c0_12, %c0_13] : memref<1x32xf32, #tpu.memory_space<vmem>>, vector<1x32xf32>
    %28 = vector.broadcast %27 : vector<1x32xf32> to vector<16x32xf32>
    %29 = arith.addf %26, %28 : vector<16x32xf32>
    %30 = arith.truncf %29 : vector<16x32xf32> to vector<16x32xbf16>
    %c0_14 = arith.constant 0 : index
    %c0_15 = arith.constant 0 : index
    %31 = vector.load %arg6[%c0_14, %c0_15] : memref<16x32xbf16, #tpu.memory_space<vmem>>, vector<16x32xbf16>
    tpu.vector_store %arg6[%c0_14, %c0_15], %30 {strides = array<i32>} : memref<16x32xbf16, #tpu.memory_space<vmem>>, vector<16x32xbf16>,
    return
  }
  func.func @transform_0(%arg0: i32) -> (i32, i32) {
    %c0_i32 = arith.constant 0 : i32
    %c0_i32_0 = arith.constant 0 : i32
    return %arg0, %c0_i32 : i32, i32
  }
  func.func @transform_1(%arg0: i32) -> (i32, i32) {
    %c0_i32 = arith.constant 0 : i32
    %c0_i32_0 = arith.constant 0 : i32
    %c0_i32_1 = arith.constant 0 : i32
    return %c0_i32, %c0_i32_0 : i32, i32
  }
  func.func @transform_2(%arg0: i32) -> (i32, i32) {
    %c0_i32 = arith.constant 0 : i32
    %c0_i32_0 = arith.constant 0 : i32
    return %arg0, %c0_i32 : i32, i32
  }
  func.func @transform_3(%arg0: i32) -> (i32, i32) {
    %c0_i32 = arith.constant 0 : i32
    %c0_i32_0 = arith.constant 0 : i32
    %c0_i32_1 = arith.constant 0 : i32
    return %c0_i32, %c0_i32_0 : i32, i32
  }
  func.func @transform_4(%arg0: i32) -> (i32, i32) {
    %c0_i32 = arith.constant 0 : i32
    %c0_i32_0 = arith.constant 0 : i32
    %c0_i32_1 = arith.constant 0 : i32
    return %c0_i32, %c0_i32_0 : i32, i32
  }
  func.func @transform_5(%arg0: i32) -> (i32, i32) {
    %c0_i32 = arith.constant 0 : i32
    %c0_i32_0 = arith.constant 0 : i32
    return %arg0, %c0_i32 : i32, i32
  }
}

module attributes {stable_mosaic.version = 11 : i64} {
  func.func @_attn_self_kernel(%arg0: i32, %arg1: memref<1x8x96xbf16, #tpu.memory_space<vmem>>, %arg2: memref<1x8x32xbf16, #tpu.memory_space<vmem>>) attributes {dimension_semantics = [#tpu.dimension_semantics<parallel>], iteration_bounds = array<i64: 2>, scalar_prefetch = 0 : i64, scratch_operands = 0 : i64, tpu.core_type = #tpu.core_type<tc>, window_params = [{transform_indices = @transform_0, window_bounds = array<i64: 1, 8, 96>}, {transform_indices = @transform_1, window_bounds = array<i64: 1, 8, 32>}]} {
    %c0 = arith.constant 0 : index
    %c0_0 = arith.constant 0 : index
    %c0_1 = arith.constant 0 : index
    %0 = vector.load %arg1[%c0, %c0_0, %c0_1] : memref<1x8x96xbf16, #tpu.memory_space<vmem>>, vector<1x8x96xbf16>
    %1 = vector.shape_cast %0 : vector<1x8x96xbf16> to vector<8x96xbf16>
    %2 = vector.extract_strided_slice %1 {offsets = [0, 0], sizes = [8, 32], strides = [1, 1]} : vector<8x96xbf16> to vector<8x32xbf16>
    %3 = vector.extract_strided_slice %1 {offsets = [0, 32], sizes = [8, 32], strides = [1, 1]} : vector<8x96xbf16> to vector<8x32xbf16>
    %4 = vector.extract_strided_slice %1 {offsets = [0, 64], sizes = [8, 32], strides = [1, 1]} : vector<8x96xbf16> to vector<8x32xbf16>
    %5 = vector.extract_strided_slice %2 {offsets = [0, 0], sizes = [8, 8], strides = [1, 1]} : vector<8x32xbf16> to vector<8x8xbf16>
    %6 = vector.extract_strided_slice %3 {offsets = [0, 0], sizes = [8, 8], strides = [1, 1]} : vector<8x32xbf16> to vector<8x8xbf16>
    %7 = vector.extract_strided_slice %4 {offsets = [0, 0], sizes = [8, 8], strides = [1, 1]} : vector<8x32xbf16> to vector<8x8xbf16>
    %cst = arith.constant dense<0.000000e+00> : vector<8x8xf32>
    %8 = tpu.matmul %5, %6, %cst {dimension_numbers = #tpu.dot_dimension_numbers<[1], [1], [0], [0], [0, 0, 1, 0], [], []>} : vector<8x8xbf16>, vector<8x8xbf16>, vector<8x8xf32> -> vector<8x8xf32>
    %cst_2 = arith.constant 0.353553385 : f32
    %9 = vector.broadcast %cst_2 : f32 to vector<8x8xf32>
    %10 = arith.mulf %8, %9 : vector<8x8xf32>
    %cst_3 = arith.constant dense<0xFF800000> : vector<8xf32>
    %11 = vector.multi_reduction <maximumf>, %10, %cst_3 [1] : vector<8x8xf32> to vector<8xf32>
    %12 = vector.shape_cast %11 : vector<8xf32> to vector<8x1xf32>
    %13 = vector.broadcast %12 : vector<8x1xf32> to vector<8x8xf32>
    %14 = arith.subf %10, %13 : vector<8x8xf32>
    %15 = math.exp %14 : vector<8x8xf32>
    %cst_4 = arith.constant dense<0.000000e+00> : vector<8xf32>
    %16 = vector.multi_reduction <add>, %15, %cst_4 [1] : vector<8x8xf32> to vector<8xf32>
    %17 = vector.shape_cast %16 : vector<8xf32> to vector<8x1xf32>
    %18 = tpu.reciprocal %17 {approx = true} : vector<8x1xf32> -> vector<8x1xf32>
    %19 = vector.broadcast %18 : vector<8x1xf32> to vector<8x8xf32>
    %20 = arith.mulf %15, %19 : vector<8x8xf32>
    %21 = arith.truncf %20 : vector<8x8xf32> to vector<8x8xbf16>
    %cst_5 = arith.constant dense<0.000000e+00> : vector<8x8xf32>
    %22 = tpu.matmul %21, %7, %cst_5 {dimension_numbers = #tpu.dot_dimension_numbers<[1], [0], [0], [1], [0, 0, 1, 1], [], []>} : vector<8x8xbf16>, vector<8x8xbf16>, vector<8x8xf32> -> vector<8x8xf32>
    %23 = vector.extract_strided_slice %2 {offsets = [0, 8], sizes = [8, 8], strides = [1, 1]} : vector<8x32xbf16> to vector<8x8xbf16>
    %24 = vector.extract_strided_slice %3 {offsets = [0, 8], sizes = [8, 8], strides = [1, 1]} : vector<8x32xbf16> to vector<8x8xbf16>
    %25 = vector.extract_strided_slice %4 {offsets = [0, 8], sizes = [8, 8], strides = [1, 1]} : vector<8x32xbf16> to vector<8x8xbf16>
    %cst_6 = arith.constant dense<0.000000e+00> : vector<8x8xf32>
    %26 = tpu.matmul %23, %24, %cst_6 {dimension_numbers = #tpu.dot_dimension_numbers<[1], [1], [0], [0], [0, 0, 1, 0], [], []>} : vector<8x8xbf16>, vector<8x8xbf16>, vector<8x8xf32> -> vector<8x8xf32>
    %cst_7 = arith.constant 0.353553385 : f32
    %27 = vector.broadcast %cst_7 : f32 to vector<8x8xf32>
    %28 = arith.mulf %26, %27 : vector<8x8xf32>
    %cst_8 = arith.constant dense<0xFF800000> : vector<8xf32>
    %29 = vector.multi_reduction <maximumf>, %28, %cst_8 [1] : vector<8x8xf32> to vector<8xf32>
    %30 = vector.shape_cast %29 : vector<8xf32> to vector<8x1xf32>
    %31 = vector.broadcast %30 : vector<8x1xf32> to vector<8x8xf32>
    %32 = arith.subf %28, %31 : vector<8x8xf32>
    %33 = math.exp %32 : vector<8x8xf32>
    %cst_9 = arith.constant dense<0.000000e+00> : vector<8xf32>
    %34 = vector.multi_reduction <add>, %33, %cst_9 [1] : vector<8x8xf32> to vector<8xf32>
    %35 = vector.shape_cast %34 : vector<8xf32> to vector<8x1xf32>
    %36 = tpu.reciprocal %35 {approx = true} : vector<8x1xf32> -> vector<8x1xf32>
    %37 = vector.broadcast %36 : vector<8x1xf32> to vector<8x8xf32>
    %38 = arith.mulf %33, %37 : vector<8x8xf32>
    %39 = arith.truncf %38 : vector<8x8xf32> to vector<8x8xbf16>
    %cst_10 = arith.constant dense<0.000000e+00> : vector<8x8xf32>
    %40 = tpu.matmul %39, %25, %cst_10 {dimension_numbers = #tpu.dot_dimension_numbers<[1], [0], [0], [1], [0, 0, 1, 1], [], []>} : vector<8x8xbf16>, vector<8x8xbf16>, vector<8x8xf32> -> vector<8x8xf32>
    %41 = vector.extract_strided_slice %2 {offsets = [0, 16], sizes = [8, 8], strides = [1, 1]} : vector<8x32xbf16> to vector<8x8xbf16>
    %42 = vector.extract_strided_slice %3 {offsets = [0, 16], sizes = [8, 8], strides = [1, 1]} : vector<8x32xbf16> to vector<8x8xbf16>
    %43 = vector.extract_strided_slice %4 {offsets = [0, 16], sizes = [8, 8], strides = [1, 1]} : vector<8x32xbf16> to vector<8x8xbf16>
    %cst_11 = arith.constant dense<0.000000e+00> : vector<8x8xf32>
    %44 = tpu.matmul %41, %42, %cst_11 {dimension_numbers = #tpu.dot_dimension_numbers<[1], [1], [0], [0], [0, 0, 1, 0], [], []>} : vector<8x8xbf16>, vector<8x8xbf16>, vector<8x8xf32> -> vector<8x8xf32>
    %cst_12 = arith.constant 0.353553385 : f32
    %45 = vector.broadcast %cst_12 : f32 to vector<8x8xf32>
    %46 = arith.mulf %44, %45 : vector<8x8xf32>
    %cst_13 = arith.constant dense<0xFF800000> : vector<8xf32>
    %47 = vector.multi_reduction <maximumf>, %46, %cst_13 [1] : vector<8x8xf32> to vector<8xf32>
    %48 = vector.shape_cast %47 : vector<8xf32> to vector<8x1xf32>
    %49 = vector.broadcast %48 : vector<8x1xf32> to vector<8x8xf32>
    %50 = arith.subf %46, %49 : vector<8x8xf32>
    %51 = math.exp %50 : vector<8x8xf32>
    %cst_14 = arith.constant dense<0.000000e+00> : vector<8xf32>
    %52 = vector.multi_reduction <add>, %51, %cst_14 [1] : vector<8x8xf32> to vector<8xf32>
    %53 = vector.shape_cast %52 : vector<8xf32> to vector<8x1xf32>
    %54 = tpu.reciprocal %53 {approx = true} : vector<8x1xf32> -> vector<8x1xf32>
    %55 = vector.broadcast %54 : vector<8x1xf32> to vector<8x8xf32>
    %56 = arith.mulf %51, %55 : vector<8x8xf32>
    %57 = arith.truncf %56 : vector<8x8xf32> to vector<8x8xbf16>
    %cst_15 = arith.constant dense<0.000000e+00> : vector<8x8xf32>
    %58 = tpu.matmul %57, %43, %cst_15 {dimension_numbers = #tpu.dot_dimension_numbers<[1], [0], [0], [1], [0, 0, 1, 1], [], []>} : vector<8x8xbf16>, vector<8x8xbf16>, vector<8x8xf32> -> vector<8x8xf32>
    %59 = vector.extract_strided_slice %2 {offsets = [0, 24], sizes = [8, 8], strides = [1, 1]} : vector<8x32xbf16> to vector<8x8xbf16>
    %60 = vector.extract_strided_slice %3 {offsets = [0, 24], sizes = [8, 8], strides = [1, 1]} : vector<8x32xbf16> to vector<8x8xbf16>
    %61 = vector.extract_strided_slice %4 {offsets = [0, 24], sizes = [8, 8], strides = [1, 1]} : vector<8x32xbf16> to vector<8x8xbf16>
    %cst_16 = arith.constant dense<0.000000e+00> : vector<8x8xf32>
    %62 = tpu.matmul %59, %60, %cst_16 {dimension_numbers = #tpu.dot_dimension_numbers<[1], [1], [0], [0], [0, 0, 1, 0], [], []>} : vector<8x8xbf16>, vector<8x8xbf16>, vector<8x8xf32> -> vector<8x8xf32>
    %cst_17 = arith.constant 0.353553385 : f32
    %63 = vector.broadcast %cst_17 : f32 to vector<8x8xf32>
    %64 = arith.mulf %62, %63 : vector<8x8xf32>
    %cst_18 = arith.constant dense<0xFF800000> : vector<8xf32>
    %65 = vector.multi_reduction <maximumf>, %64, %cst_18 [1] : vector<8x8xf32> to vector<8xf32>
    %66 = vector.shape_cast %65 : vector<8xf32> to vector<8x1xf32>
    %67 = vector.broadcast %66 : vector<8x1xf32> to vector<8x8xf32>
    %68 = arith.subf %64, %67 : vector<8x8xf32>
    %69 = math.exp %68 : vector<8x8xf32>
    %cst_19 = arith.constant dense<0.000000e+00> : vector<8xf32>
    %70 = vector.multi_reduction <add>, %69, %cst_19 [1] : vector<8x8xf32> to vector<8xf32>
    %71 = vector.shape_cast %70 : vector<8xf32> to vector<8x1xf32>
    %72 = tpu.reciprocal %71 {approx = true} : vector<8x1xf32> -> vector<8x1xf32>
    %73 = vector.broadcast %72 : vector<8x1xf32> to vector<8x8xf32>
    %74 = arith.mulf %69, %73 : vector<8x8xf32>
    %75 = arith.truncf %74 : vector<8x8xf32> to vector<8x8xbf16>
    %cst_20 = arith.constant dense<0.000000e+00> : vector<8x8xf32>
    %76 = tpu.matmul %75, %61, %cst_20 {dimension_numbers = #tpu.dot_dimension_numbers<[1], [0], [0], [1], [0, 0, 1, 1], [], []>} : vector<8x8xbf16>, vector<8x8xbf16>, vector<8x8xf32> -> vector<8x8xf32>
    %77 = tpu.concatenate %22, %40, %58, %76 in 1 : vector<8x8xf32>, vector<8x8xf32>, vector<8x8xf32>, vector<8x8xf32> -> vector<8x32xf32>
    %78 = arith.truncf %77 : vector<8x32xf32> to vector<8x32xbf16>
    %c0_21 = arith.constant 0 : index
    %c0_22 = arith.constant 0 : index
    %c0_23 = arith.constant 0 : index
    %79 = vector.load %arg2[%c0_21, %c0_22, %c0_23] : memref<1x8x32xbf16, #tpu.memory_space<vmem>>, vector<1x8x32xbf16>
    %80 = vector.shape_cast %79 : vector<1x8x32xbf16> to vector<8x32xbf16>
    %81 = vector.shape_cast %78 : vector<8x32xbf16> to vector<1x8x32xbf16>
    tpu.vector_store %arg2[%c0_21, %c0_22, %c0_23], %81 {strides = array<i32>} : memref<1x8x32xbf16, #tpu.memory_space<vmem>>, vector<1x8x32xbf16>,
    return
  }
  func.func @transform_0(%arg0: i32) -> (i32, i32, i32) {
    %c0_i32 = arith.constant 0 : i32
    %c0_i32_0 = arith.constant 0 : i32
    %c0_i32_1 = arith.constant 0 : i32
    return %arg0, %c0_i32, %c0_i32_0 : i32, i32, i32
  }
  func.func @transform_1(%arg0: i32) -> (i32, i32, i32) {
    %c0_i32 = arith.constant 0 : i32
    %c0_i32_0 = arith.constant 0 : i32
    %c0_i32_1 = arith.constant 0 : i32
    return %arg0, %c0_i32, %c0_i32_0 : i32, i32, i32
  }
}

module attributes {stable_mosaic.version = 11 : i64} {
  func.func @_matmul_kernel(%arg0: i32, %arg1: i32, %arg2: i32, %arg3: memref<16x32xbf16, #tpu.memory_space<vmem>>, %arg4: memref<32x64xbf16, #tpu.memory_space<vmem>>, %arg5: memref<16x64xbf16, #tpu.memory_space<vmem>>, %arg6: memref<16x64xf32, #tpu.memory_space<vmem>>) attributes {dimension_semantics = [#tpu.dimension_semantics<parallel>, #tpu.dimension_semantics<parallel>, #tpu.dimension_semantics<arbitrary>], iteration_bounds = array<i64: 1, 1, 1>, scalar_prefetch = 0 : i64, scratch_operands = 1 : i64, tpu.core_type = #tpu.core_type<tc>, window_params = [{transform_indices = @transform_0, window_bounds = array<i64: 16, 32>}, {transform_indices = @transform_1, window_bounds = array<i64: 32, 64>}, {transform_indices = @transform_2, window_bounds = array<i64: 16, 64>}]} {
    %c0_i32 = arith.constant 0 : i32
    %0 = arith.cmpi eq, %arg2, %c0_i32 : i32
    %1 = arith.extui %0 : i1 to i32
    %c0_i32_0 = arith.constant 0 : i32
    %2 = arith.cmpi ne, %1, %c0_i32_0 : i32
    scf.if %2 {
      %cst_10 = arith.constant 0.000000e+00 : f32
      %12 = vector.broadcast %cst_10 : f32 to vector<16x64xf32>
      %c0_11 = arith.constant 0 : index
      %c0_12 = arith.constant 0 : index
      %13 = vector.load %arg6[%c0_11, %c0_12] : memref<16x64xf32, #tpu.memory_space<vmem>>, vector<16x64xf32>
      tpu.vector_store %arg6[%c0_11, %c0_12], %12 {strides = array<i32>} : memref<16x64xf32, #tpu.memory_space<vmem>>, vector<16x64xf32>,
    } else {
    }
    %c0 = arith.constant 0 : index
    %c0_1 = arith.constant 0 : index
    %3 = vector.load %arg6[%c0, %c0_1] : memref<16x64xf32, #tpu.memory_space<vmem>>, vector<16x64xf32>
    %c0_2 = arith.constant 0 : index
    %c0_3 = arith.constant 0 : index
    %4 = vector.load %arg3[%c0_2, %c0_3] : memref<16x32xbf16, #tpu.memory_space<vmem>>, vector<16x32xbf16>
    %c0_4 = arith.constant 0 : index
    %c0_5 = arith.constant 0 : index
    %5 = vector.load %arg4[%c0_4, %c0_5] : memref<32x64xbf16, #tpu.memory_space<vmem>>, vector<32x64xbf16>
    %cst = arith.constant dense<0.000000e+00> : vector<16x64xf32>
    %6 = tpu.matmul %4, %5, %cst {dimension_numbers = #tpu.dot_dimension_numbers<[1], [0], [0], [1], [0, 0, 1, 1], [], []>} : vector<16x32xbf16>, vector<32x64xbf16>, vector<16x64xf32> -> vector<16x64xf32>
    %7 = arith.addf %3, %6 : vector<16x64xf32>
    %c0_6 = arith.constant 0 : index
    %c0_7 = arith.constant 0 : index
    %8 = vector.load %arg6[%c0_6, %c0_7] : memref<16x64xf32, #tpu.memory_space<vmem>>, vector<16x64xf32>
    tpu.vector_store %arg6[%c0_6, %c0_7], %7 {strides = array<i32>} : memref<16x64xf32, #tpu.memory_space<vmem>>, vector<16x64xf32>,
    %c0_i32_8 = arith.constant 0 : i32
    %9 = arith.cmpi eq, %arg2, %c0_i32_8 : i32
    %10 = arith.extui %9 : i1 to i32
    %c0_i32_9 = arith.constant 0 : i32
    %11 = arith.cmpi ne, %10, %c0_i32_9 : i32
    scf.if %11 {
      %c0_10 = arith.constant 0 : index
      %c0_11 = arith.constant 0 : index
      %12 = vector.load %arg6[%c0_10, %c0_11] : memref<16x64xf32, #tpu.memory_space<vmem>>, vector<16x64xf32>
      %13 = arith.truncf %12 : vector<16x64xf32> to vector<16x64xbf16>
      %c0_12 = arith.constant 0 : index
      %c0_13 = arith.constant 0 : index
      %14 = vector.load %arg5[%c0_12, %c0_13] : memref<16x64xbf16, #tpu.memory_space<vmem>>, vector<16x64xbf16>
      tpu.vector_store %arg5[%c0_12, %c0_13], %13 {strides = array<i32>} : memref<16x64xbf16, #tpu.memory_space<vmem>>, vector<16x64xbf16>,
    } else {
    }
    return
  }
  func.func @transform_0(%arg0: i32, %arg1: i32, %arg2: i32) -> (i32, i32) {
    %c0_i32 = arith.constant 0 : i32
    return %arg0, %arg2 : i32, i32
  }
  func.func @transform_1(%arg0: i32, %arg1: i32, %arg2: i32) -> (i32, i32) {
    %c0_i32 = arith.constant 0 : i32
    return %arg2, %arg1 : i32, i32
  }
  func.func @transform_2(%arg0: i32, %arg1: i32, %arg2: i32) -> (i32, i32) {
    %c0_i32 = arith.constant 0 : i32
    return %arg0, %arg1 : i32, i32
  }
}

module attributes {stable_mosaic.version = 11 : i64} {
  func.func @_ffn_kernel(%arg0: i32, %arg1: memref<16x32xbf16, #tpu.memory_space<vmem>>, %arg2: memref<32x2048xbf16, #tpu.memory_space<vmem>>, %arg3: memref<1x2048xf32, #tpu.memory_space<vmem>>, %arg4: memref<2048x32xbf16, #tpu.memory_space<vmem>>, %arg5: memref<1x32xf32, #tpu.memory_space<vmem>>, %arg6: memref<1x32xf32, #tpu.memory_space<vmem>>, %arg7: memref<1x32xf32, #tpu.memory_space<vmem>>, %arg8: memref<16x32xbf16, #tpu.memory_space<vmem>>) attributes {dimension_semantics = [#tpu.dimension_semantics<parallel>], iteration_bounds = array<i64: 1>, scalar_prefetch = 0 : i64, scratch_operands = 0 : i64, tpu.core_type = #tpu.core_type<tc>, window_params = [{transform_indices = @transform_0, window_bounds = array<i64: 16, 32>}, {pipeline_mode = #tpu.pipeline_mode<synchronous>, transform_indices = @transform_1, window_bounds = array<i64: 32, 2048>}, {pipeline_mode = #tpu.pipeline_mode<synchronous>, transform_indices = @transform_2, window_bounds = array<i64: 1, 2048>}, {pipeline_mode = #tpu.pipeline_mode<synchronous>, transform_indices = @transform_3, window_bounds = array<i64: 2048, 32>}, {pipeline_mode = #tpu.pipeline_mode<synchronous>, transform_indices = @transform_4, window_bounds = array<i64: 1, 32>}, {pipeline_mode = #tpu.pipeline_mode<synchronous>, transform_indices = @transform_5, window_bounds = array<i64: 1, 32>}, {pipeline_mode = #tpu.pipeline_mode<synchronous>, transform_indices = @transform_6, window_bounds = array<i64: 1, 32>}, {transform_indices = @transform_7, window_bounds = array<i64: 16, 32>}]} {
    %c0 = arith.constant 0 : index
    %c0_0 = arith.constant 0 : index
    %0 = vector.load %arg1[%c0, %c0_0] : memref<16x32xbf16, #tpu.memory_space<vmem>>, vector<16x32xbf16>
    %c0_1 = arith.constant 0 : index
    %c0_2 = arith.constant 0 : index
    %1 = vector.load %arg2[%c0_1, %c0_2] : memref<32x2048xbf16, #tpu.memory_space<vmem>>, vector<32x2048xbf16>
    %cst = arith.constant dense<0.000000e+00> : vector<16x2048xf32>
    %2 = tpu.matmul %0, %1, %cst {dimension_numbers = #tpu.dot_dimension_numbers<[1], [0], [0], [1], [0, 0, 1, 1], [], []>} : vector<16x32xbf16>, vector<32x2048xbf16>, vector<16x2048xf32> -> vector<16x2048xf32>
    %c0_3 = arith.constant 0 : index
    %c0_4 = arith.constant 0 : index
    %3 = vector.load %arg3[%c0_3, %c0_4] : memref<1x2048xf32, #tpu.memory_space<vmem>>, vector<1x2048xf32>
    %4 = vector.broadcast %3 : vector<1x2048xf32> to vector<16x2048xf32>
    %5 = arith.addf %2, %4 : vector<16x2048xf32>
    %cst_5 = arith.constant 0.000000e+00 : f32
    %6 = vector.broadcast %cst_5 : f32 to vector<16x2048xf32>
    %7 = arith.maximumf %5, %6 : vector<16x2048xf32>
    %8 = arith.truncf %7 : vector<16x2048xf32> to vector<16x2048xbf16>
    %c0_6 = arith.constant 0 : index
    %c0_7 = arith.constant 0 : index
    %9 = vector.load %arg4[%c0_6, %c0_7] : memref<2048x32xbf16, #tpu.memory_space<vmem>>, vector<2048x32xbf16>
    %cst_8 = arith.constant dense<0.000000e+00> : vector<16x32xf32>
    %10 = tpu.matmul %8, %9, %cst_8 {dimension_numbers = #tpu.dot_dimension_numbers<[1], [0], [0], [1], [0, 0, 1, 1], [], []>} : vector<16x2048xbf16>, vector<2048x32xbf16>, vector<16x32xf32> -> vector<16x32xf32>
    %c0_9 = arith.constant 0 : index
    %c0_10 = arith.constant 0 : index
    %11 = vector.load %arg5[%c0_9, %c0_10] : memref<1x32xf32, #tpu.memory_space<vmem>>, vector<1x32xf32>
    %12 = vector.broadcast %11 : vector<1x32xf32> to vector<16x32xf32>
    %13 = arith.addf %10, %12 : vector<16x32xf32>
    %14 = arith.extf %0 : vector<16x32xbf16> to vector<16x32xf32>
    %15 = arith.addf %13, %14 : vector<16x32xf32>
    %cst_11 = arith.constant dense<0.000000e+00> : vector<16xf32>
    %16 = vector.multi_reduction <add>, %15, %cst_11 [1] : vector<16x32xf32> to vector<16xf32>
    %17 = vector.shape_cast %16 : vector<16xf32> to vector<16x1xf32>
    %cst_12 = arith.constant 3.200000e+01 : f32
    %18 = vector.broadcast %cst_12 : f32 to vector<16x1xf32>
    %19 = arith.divf %17, %18 : vector<16x1xf32>
    %20 = vector.broadcast %19 : vector<16x1xf32> to vector<16x32xf32>
    %21 = arith.subf %15, %20 : vector<16x32xf32>
    %22 = arith.mulf %21, %21 : vector<16x32xf32>
    %cst_13 = arith.constant dense<0.000000e+00> : vector<16xf32>
    %23 = vector.multi_reduction <add>, %22, %cst_13 [1] : vector<16x32xf32> to vector<16xf32>
    %24 = vector.shape_cast %23 : vector<16xf32> to vector<16x1xf32>
    %cst_14 = arith.constant 3.200000e+01 : f32
    %25 = vector.broadcast %cst_14 : f32 to vector<16x1xf32>
    %26 = arith.divf %24, %25 : vector<16x1xf32>
    %27 = vector.broadcast %19 : vector<16x1xf32> to vector<16x32xf32>
    %28 = arith.subf %15, %27 : vector<16x32xf32>
    %cst_15 = arith.constant 9.99999997E-7 : f32
    %29 = vector.broadcast %cst_15 : f32 to vector<16x1xf32>
    %30 = arith.addf %26, %29 : vector<16x1xf32>
    %31 = math.rsqrt %30 : vector<16x1xf32>
    %32 = vector.broadcast %31 : vector<16x1xf32> to vector<16x32xf32>
    %33 = arith.mulf %28, %32 : vector<16x32xf32>
    %c0_16 = arith.constant 0 : index
    %c0_17 = arith.constant 0 : index
    %34 = vector.load %arg6[%c0_16, %c0_17] : memref<1x32xf32, #tpu.memory_space<vmem>>, vector<1x32xf32>
    %35 = vector.broadcast %34 : vector<1x32xf32> to vector<16x32xf32>
    %36 = arith.mulf %33, %35 : vector<16x32xf32>
    %c0_18 = arith.constant 0 : index
    %c0_19 = arith.constant 0 : index
    %37 = vector.load %arg7[%c0_18, %c0_19] : memref<1x32xf32, #tpu.memory_space<vmem>>, vector<1x32xf32>
    %38 = vector.broadcast %37 : vector<1x32xf32> to vector<16x32xf32>
    %39 = arith.addf %36, %38 : vector<16x32xf32>
    %40 = arith.truncf %39 : vector<16x32xf32> to vector<16x32xbf16>
    %c0_20 = arith.constant 0 : index
    %c0_21 = arith.constant 0 : index
    %41 = vector.load %arg8[%c0_20, %c0_21] : memref<16x32xbf16, #tpu.memory_space<vmem>>, vector<16x32xbf16>
    tpu.vector_store %arg8[%c0_20, %c0_21], %40 {strides = array<i32>} : memref<16x32xbf16, #tpu.memory_space<vmem>>, vector<16x32xbf16>,
    return
  }
  func.func @transform_0(%arg0: i32) -> (i32, i32) {
    %c0_i32 = arith.constant 0 : i32
    %c0_i32_0 = arith.constant 0 : i32
    return %arg0, %c0_i32 : i32, i32
  }
  func.func @transform_1(%arg0: i32) -> (i32, i32) {
    %c0_i32 = arith.constant 0 : i32
    %c0_i32_0 = arith.constant 0 : i32
    %c0_i32_1 = arith.constant 0 : i32
    return %c0_i32, %c0_i32_0 : i32, i32
  }
  func.func @transform_2(%arg0: i32) -> (i32, i32) {
    %c0_i32 = arith.constant 0 : i32
    %c0_i32_0 = arith.constant 0 : i32
    %c0_i32_1 = arith.constant 0 : i32
    return %c0_i32, %c0_i32_0 : i32, i32
  }
  func.func @transform_3(%arg0: i32) -> (i32, i32) {
    %c0_i32 = arith.constant 0 : i32
    %c0_i32_0 = arith.constant 0 : i32
    %c0_i32_1 = arith.constant 0 : i32
    return %c0_i32, %c0_i32_0 : i32, i32
  }
  func.func @transform_4(%arg0: i32) -> (i32, i32) {
    %c0_i32 = arith.constant 0 : i32
    %c0_i32_0 = arith.constant 0 : i32
    %c0_i32_1 = arith.constant 0 : i32
    return %c0_i32, %c0_i32_0 : i32, i32
  }
  func.func @transform_5(%arg0: i32) -> (i32, i32) {
    %c0_i32 = arith.constant 0 : i32
    %c0_i32_0 = arith.constant 0 : i32
    %c0_i32_1 = arith.constant 0 : i32
    return %c0_i32, %c0_i32_0 : i32, i32
  }
  func.func @transform_6(%arg0: i32) -> (i32, i32) {
    %c0_i32 = arith.constant 0 : i32
    %c0_i32_0 = arith.constant 0 : i32
    %c0_i32_1 = arith.constant 0 : i32
    return %c0_i32, %c0_i32_0 : i32, i32
  }
  func.func @transform_7(%arg0: i32) -> (i32, i32) {
    %c0_i32 = arith.constant 0 : i32
    %c0_i32_0 = arith.constant 0 : i32
    return %arg0, %c0_i32 : i32, i32
  }
}

module attributes {stable_mosaic.version = 11 : i64} {
  func.func @_matmul_kernel(%arg0: i32, %arg1: i32, %arg2: i32, %arg3: memref<16x32xbf16, #tpu.memory_space<vmem>>, %arg4: memref<32x32xbf16, #tpu.memory_space<vmem>>, %arg5: memref<16x32xbf16, #tpu.memory_space<vmem>>, %arg6: memref<16x32xf32, #tpu.memory_space<vmem>>) attributes {dimension_semantics = [#tpu.dimension_semantics<parallel>, #tpu.dimension_semantics<parallel>, #tpu.dimension_semantics<arbitrary>], iteration_bounds = array<i64: 1, 1, 1>, scalar_prefetch = 0 : i64, scratch_operands = 1 : i64, tpu.core_type = #tpu.core_type<tc>, window_params = [{transform_indices = @transform_0, window_bounds = array<i64: 16, 32>}, {transform_indices = @transform_1, window_bounds = array<i64: 32, 32>}, {transform_indices = @transform_2, window_bounds = array<i64: 16, 32>}]} {
    %c0_i32 = arith.constant 0 : i32
    %0 = arith.cmpi eq, %arg2, %c0_i32 : i32
    %1 = arith.extui %0 : i1 to i32
    %c0_i32_0 = arith.constant 0 : i32
    %2 = arith.cmpi ne, %1, %c0_i32_0 : i32
    scf.if %2 {
      %cst_10 = arith.constant 0.000000e+00 : f32
      %12 = vector.broadcast %cst_10 : f32 to vector<16x32xf32>
      %c0_11 = arith.constant 0 : index
      %c0_12 = arith.constant 0 : index
      %13 = vector.load %arg6[%c0_11, %c0_12] : memref<16x32xf32, #tpu.memory_space<vmem>>, vector<16x32xf32>
      tpu.vector_store %arg6[%c0_11, %c0_12], %12 {strides = array<i32>} : memref<16x32xf32, #tpu.memory_space<vmem>>, vector<16x32xf32>,
    } else {
    }
    %c0 = arith.constant 0 : index
    %c0_1 = arith.constant 0 : index
    %3 = vector.load %arg6[%c0, %c0_1] : memref<16x32xf32, #tpu.memory_space<vmem>>, vector<16x32xf32>
    %c0_2 = arith.constant 0 : index
    %c0_3 = arith.constant 0 : index
    %4 = vector.load %arg3[%c0_2, %c0_3] : memref<16x32xbf16, #tpu.memory_space<vmem>>, vector<16x32xbf16>
    %c0_4 = arith.constant 0 : index
    %c0_5 = arith.constant 0 : index
    %5 = vector.load %arg4[%c0_4, %c0_5] : memref<32x32xbf16, #tpu.memory_space<vmem>>, vector<32x32xbf16>
    %cst = arith.constant dense<0.000000e+00> : vector<16x32xf32>
    %6 = tpu.matmul %4, %5, %cst {dimension_numbers = #tpu.dot_dimension_numbers<[1], [0], [0], [1], [0, 0, 1, 1], [], []>} : vector<16x32xbf16>, vector<32x32xbf16>, vector<16x32xf32> -> vector<16x32xf32>
    %7 = arith.addf %3, %6 : vector<16x32xf32>
    %c0_6 = arith.constant 0 : index
    %c0_7 = arith.constant 0 : index
    %8 = vector.load %arg6[%c0_6, %c0_7] : memref<16x32xf32, #tpu.memory_space<vmem>>, vector<16x32xf32>
    tpu.vector_store %arg6[%c0_6, %c0_7], %7 {strides = array<i32>} : memref<16x32xf32, #tpu.memory_space<vmem>>, vector<16x32xf32>,
    %c0_i32_8 = arith.constant 0 : i32
    %9 = arith.cmpi eq, %arg2, %c0_i32_8 : i32
    %10 = arith.extui %9 : i1 to i32
    %c0_i32_9 = arith.constant 0 : i32
    %11 = arith.cmpi ne, %10, %c0_i32_9 : i32
    scf.if %11 {
      %c0_10 = arith.constant 0 : index
      %c0_11 = arith.constant 0 : index
      %12 = vector.load %arg6[%c0_10, %c0_11] : memref<16x32xf32, #tpu.memory_space<vmem>>, vector<16x32xf32>
      %13 = arith.truncf %12 : vector<16x32xf32> to vector<16x32xbf16>
      %c0_12 = arith.constant 0 : index
      %c0_13 = arith.constant 0 : index
      %14 = vector.load %arg5[%c0_12, %c0_13] : memref<16x32xbf16, #tpu.memory_space<vmem>>, vector<16x32xbf16>
      tpu.vector_store %arg5[%c0_12, %c0_13], %13 {strides = array<i32>} : memref<16x32xbf16, #tpu.memory_space<vmem>>, vector<16x32xbf16>,
    } else {
    }
    return
  }
  func.func @transform_0(%arg0: i32, %arg1: i32, %arg2: i32) -> (i32, i32) {
    %c0_i32 = arith.constant 0 : i32
    return %arg0, %arg2 : i32, i32
  }
  func.func @transform_1(%arg0: i32, %arg1: i32, %arg2: i32) -> (i32, i32) {
    %c0_i32 = arith.constant 0 : i32
    return %arg2, %arg1 : i32, i32
  }
  func.func @transform_2(%arg0: i32, %arg1: i32, %arg2: i32) -> (i32, i32) {
    %c0_i32 = arith.constant 0 : i32
    return %arg0, %arg1 : i32, i32
  }
}

module attributes {stable_mosaic.version = 11 : i64} {
  func.func @_attn_cross_kernel(%arg0: i32, %arg1: memref<1x8x32xbf16, #tpu.memory_space<vmem>>, %arg2: memref<1x8x64xbf16, #tpu.memory_space<vmem>>, %arg3: memref<1x8x32xbf16, #tpu.memory_space<vmem>>) attributes {dimension_semantics = [#tpu.dimension_semantics<parallel>], iteration_bounds = array<i64: 2>, scalar_prefetch = 0 : i64, scratch_operands = 0 : i64, tpu.core_type = #tpu.core_type<tc>, window_params = [{transform_indices = @transform_0, window_bounds = array<i64: 1, 8, 32>}, {transform_indices = @transform_1, window_bounds = array<i64: 1, 8, 64>}, {transform_indices = @transform_2, window_bounds = array<i64: 1, 8, 32>}]} {
    %c0 = arith.constant 0 : index
    %c0_0 = arith.constant 0 : index
    %c0_1 = arith.constant 0 : index
    %0 = vector.load %arg1[%c0, %c0_0, %c0_1] : memref<1x8x32xbf16, #tpu.memory_space<vmem>>, vector<1x8x32xbf16>
    %1 = vector.shape_cast %0 : vector<1x8x32xbf16> to vector<8x32xbf16>
    %c0_2 = arith.constant 0 : index
    %c0_3 = arith.constant 0 : index
    %c0_4 = arith.constant 0 : index
    %2 = vector.load %arg2[%c0_2, %c0_3, %c0_4] : memref<1x8x64xbf16, #tpu.memory_space<vmem>>, vector<1x8x64xbf16>
    %3 = vector.shape_cast %2 : vector<1x8x64xbf16> to vector<8x64xbf16>
    %4 = vector.extract_strided_slice %3 {offsets = [0, 0], sizes = [8, 32], strides = [1, 1]} : vector<8x64xbf16> to vector<8x32xbf16>
    %5 = vector.extract_strided_slice %3 {offsets = [0, 32], sizes = [8, 32], strides = [1, 1]} : vector<8x64xbf16> to vector<8x32xbf16>
    %6 = vector.extract_strided_slice %1 {offsets = [0, 0], sizes = [8, 8], strides = [1, 1]} : vector<8x32xbf16> to vector<8x8xbf16>
    %7 = vector.extract_strided_slice %4 {offsets = [0, 0], sizes = [8, 8], strides = [1, 1]} : vector<8x32xbf16> to vector<8x8xbf16>
    %8 = vector.extract_strided_slice %5 {offsets = [0, 0], sizes = [8, 8], strides = [1, 1]} : vector<8x32xbf16> to vector<8x8xbf16>
    %cst = arith.constant dense<0.000000e+00> : vector<8x8xf32>
    %9 = tpu.matmul %6, %7, %cst {dimension_numbers = #tpu.dot_dimension_numbers<[1], [1], [0], [0], [0, 0, 1, 0], [], []>} : vector<8x8xbf16>, vector<8x8xbf16>, vector<8x8xf32> -> vector<8x8xf32>
    %cst_5 = arith.constant 0.353553385 : f32
    %10 = vector.broadcast %cst_5 : f32 to vector<8x8xf32>
    %11 = arith.mulf %9, %10 : vector<8x8xf32>
    %cst_6 = arith.constant dense<0xFF800000> : vector<8xf32>
    %12 = vector.multi_reduction <maximumf>, %11, %cst_6 [1] : vector<8x8xf32> to vector<8xf32>
    %13 = vector.shape_cast %12 : vector<8xf32> to vector<8x1xf32>
    %14 = vector.broadcast %13 : vector<8x1xf32> to vector<8x8xf32>
    %15 = arith.subf %11, %14 : vector<8x8xf32>
    %16 = math.exp %15 : vector<8x8xf32>
    %cst_7 = arith.constant dense<0.000000e+00> : vector<8xf32>
    %17 = vector.multi_reduction <add>, %16, %cst_7 [1] : vector<8x8xf32> to vector<8xf32>
    %18 = vector.shape_cast %17 : vector<8xf32> to vector<8x1xf32>
    %19 = tpu.reciprocal %18 {approx = true} : vector<8x1xf32> -> vector<8x1xf32>
    %20 = vector.broadcast %19 : vector<8x1xf32> to vector<8x8xf32>
    %21 = arith.mulf %16, %20 : vector<8x8xf32>
    %22 = arith.truncf %21 : vector<8x8xf32> to vector<8x8xbf16>
    %cst_8 = arith.constant dense<0.000000e+00> : vector<8x8xf32>
    %23 = tpu.matmul %22, %8, %cst_8 {dimension_numbers = #tpu.dot_dimension_numbers<[1], [0], [0], [1], [0, 0, 1, 1], [], []>} : vector<8x8xbf16>, vector<8x8xbf16>, vector<8x8xf32> -> vector<8x8xf32>
    %24 = vector.extract_strided_slice %1 {offsets = [0, 8], sizes = [8, 8], strides = [1, 1]} : vector<8x32xbf16> to vector<8x8xbf16>
    %25 = vector.extract_strided_slice %4 {offsets = [0, 8], sizes = [8, 8], strides = [1, 1]} : vector<8x32xbf16> to vector<8x8xbf16>
    %26 = vector.extract_strided_slice %5 {offsets = [0, 8], sizes = [8, 8], strides = [1, 1]} : vector<8x32xbf16> to vector<8x8xbf16>
    %cst_9 = arith.constant dense<0.000000e+00> : vector<8x8xf32>
    %27 = tpu.matmul %24, %25, %cst_9 {dimension_numbers = #tpu.dot_dimension_numbers<[1], [1], [0], [0], [0, 0, 1, 0], [], []>} : vector<8x8xbf16>, vector<8x8xbf16>, vector<8x8xf32> -> vector<8x8xf32>
    %cst_10 = arith.constant 0.353553385 : f32
    %28 = vector.broadcast %cst_10 : f32 to vector<8x8xf32>
    %29 = arith.mulf %27, %28 : vector<8x8xf32>
    %cst_11 = arith.constant dense<0xFF800000> : vector<8xf32>
    %30 = vector.multi_reduction <maximumf>, %29, %cst_11 [1] : vector<8x8xf32> to vector<8xf32>
    %31 = vector.shape_cast %30 : vector<8xf32> to vector<8x1xf32>
    %32 = vector.broadcast %31 : vector<8x1xf32> to vector<8x8xf32>
    %33 = arith.subf %29, %32 : vector<8x8xf32>
    %34 = math.exp %33 : vector<8x8xf32>
    %cst_12 = arith.constant dense<0.000000e+00> : vector<8xf32>
    %35 = vector.multi_reduction <add>, %34, %cst_12 [1] : vector<8x8xf32> to vector<8xf32>
    %36 = vector.shape_cast %35 : vector<8xf32> to vector<8x1xf32>
    %37 = tpu.reciprocal %36 {approx = true} : vector<8x1xf32> -> vector<8x1xf32>
    %38 = vector.broadcast %37 : vector<8x1xf32> to vector<8x8xf32>
    %39 = arith.mulf %34, %38 : vector<8x8xf32>
    %40 = arith.truncf %39 : vector<8x8xf32> to vector<8x8xbf16>
    %cst_13 = arith.constant dense<0.000000e+00> : vector<8x8xf32>
    %41 = tpu.matmul %40, %26, %cst_13 {dimension_numbers = #tpu.dot_dimension_numbers<[1], [0], [0], [1], [0, 0, 1, 1], [], []>} : vector<8x8xbf16>, vector<8x8xbf16>, vector<8x8xf32> -> vector<8x8xf32>
    %42 = vector.extract_strided_slice %1 {offsets = [0, 16], sizes = [8, 8], strides = [1, 1]} : vector<8x32xbf16> to vector<8x8xbf16>
    %43 = vector.extract_strided_slice %4 {offsets = [0, 16], sizes = [8, 8], strides = [1, 1]} : vector<8x32xbf16> to vector<8x8xbf16>
    %44 = vector.extract_strided_slice %5 {offsets = [0, 16], sizes = [8, 8], strides = [1, 1]} : vector<8x32xbf16> to vector<8x8xbf16>
    %cst_14 = arith.constant dense<0.000000e+00> : vector<8x8xf32>
    %45 = tpu.matmul %42, %43, %cst_14 {dimension_numbers = #tpu.dot_dimension_numbers<[1], [1], [0], [0], [0, 0, 1, 0], [], []>} : vector<8x8xbf16>, vector<8x8xbf16>, vector<8x8xf32> -> vector<8x8xf32>
    %cst_15 = arith.constant 0.353553385 : f32
    %46 = vector.broadcast %cst_15 : f32 to vector<8x8xf32>
    %47 = arith.mulf %45, %46 : vector<8x8xf32>
    %cst_16 = arith.constant dense<0xFF800000> : vector<8xf32>
    %48 = vector.multi_reduction <maximumf>, %47, %cst_16 [1] : vector<8x8xf32> to vector<8xf32>
    %49 = vector.shape_cast %48 : vector<8xf32> to vector<8x1xf32>
    %50 = vector.broadcast %49 : vector<8x1xf32> to vector<8x8xf32>
    %51 = arith.subf %47, %50 : vector<8x8xf32>
    %52 = math.exp %51 : vector<8x8xf32>
    %cst_17 = arith.constant dense<0.000000e+00> : vector<8xf32>
    %53 = vector.multi_reduction <add>, %52, %cst_17 [1] : vector<8x8xf32> to vector<8xf32>
    %54 = vector.shape_cast %53 : vector<8xf32> to vector<8x1xf32>
    %55 = tpu.reciprocal %54 {approx = true} : vector<8x1xf32> -> vector<8x1xf32>
    %56 = vector.broadcast %55 : vector<8x1xf32> to vector<8x8xf32>
    %57 = arith.mulf %52, %56 : vector<8x8xf32>
    %58 = arith.truncf %57 : vector<8x8xf32> to vector<8x8xbf16>
    %cst_18 = arith.constant dense<0.000000e+00> : vector<8x8xf32>
    %59 = tpu.matmul %58, %44, %cst_18 {dimension_numbers = #tpu.dot_dimension_numbers<[1], [0], [0], [1], [0, 0, 1, 1], [], []>} : vector<8x8xbf16>, vector<8x8xbf16>, vector<8x8xf32> -> vector<8x8xf32>
    %60 = vector.extract_strided_slice %1 {offsets = [0, 24], sizes = [8, 8], strides = [1, 1]} : vector<8x32xbf16> to vector<8x8xbf16>
    %61 = vector.extract_strided_slice %4 {offsets = [0, 24], sizes = [8, 8], strides = [1, 1]} : vector<8x32xbf16> to vector<8x8xbf16>
    %62 = vector.extract_strided_slice %5 {offsets = [0, 24], sizes = [8, 8], strides = [1, 1]} : vector<8x32xbf16> to vector<8x8xbf16>
    %cst_19 = arith.constant dense<0.000000e+00> : vector<8x8xf32>
    %63 = tpu.matmul %60, %61, %cst_19 {dimension_numbers = #tpu.dot_dimension_numbers<[1], [1], [0], [0], [0, 0, 1, 0], [], []>} : vector<8x8xbf16>, vector<8x8xbf16>, vector<8x8xf32> -> vector<8x8xf32>
    %cst_20 = arith.constant 0.353553385 : f32
    %64 = vector.broadcast %cst_20 : f32 to vector<8x8xf32>
    %65 = arith.mulf %63, %64 : vector<8x8xf32>
    %cst_21 = arith.constant dense<0xFF800000> : vector<8xf32>
    %66 = vector.multi_reduction <maximumf>, %65, %cst_21 [1] : vector<8x8xf32> to vector<8xf32>
    %67 = vector.shape_cast %66 : vector<8xf32> to vector<8x1xf32>
    %68 = vector.broadcast %67 : vector<8x1xf32> to vector<8x8xf32>
    %69 = arith.subf %65, %68 : vector<8x8xf32>
    %70 = math.exp %69 : vector<8x8xf32>
    %cst_22 = arith.constant dense<0.000000e+00> : vector<8xf32>
    %71 = vector.multi_reduction <add>, %70, %cst_22 [1] : vector<8x8xf32> to vector<8xf32>
    %72 = vector.shape_cast %71 : vector<8xf32> to vector<8x1xf32>
    %73 = tpu.reciprocal %72 {approx = true} : vector<8x1xf32> -> vector<8x1xf32>
    %74 = vector.broadcast %73 : vector<8x1xf32> to vector<8x8xf32>
    %75 = arith.mulf %70, %74 : vector<8x8xf32>
    %76 = arith.truncf %75 : vector<8x8xf32> to vector<8x8xbf16>
    %cst_23 = arith.constant dense<0.000000e+00> : vector<8x8xf32>
    %77 = tpu.matmul %76, %62, %cst_23 {dimension_numbers = #tpu.dot_dimension_numbers<[1], [0], [0], [1], [0, 0, 1, 1], [], []>} : vector<8x8xbf16>, vector<8x8xbf16>, vector<8x8xf32> -> vector<8x8xf32>
    %78 = tpu.concatenate %23, %41, %59, %77 in 1 : vector<8x8xf32>, vector<8x8xf32>, vector<8x8xf32>, vector<8x8xf32> -> vector<8x32xf32>
    %79 = arith.truncf %78 : vector<8x32xf32> to vector<8x32xbf16>
    %c0_24 = arith.constant 0 : index
    %c0_25 = arith.constant 0 : index
    %c0_26 = arith.constant 0 : index
    %80 = vector.load %arg3[%c0_24, %c0_25, %c0_26] : memref<1x8x32xbf16, #tpu.memory_space<vmem>>, vector<1x8x32xbf16>
    %81 = vector.shape_cast %80 : vector<1x8x32xbf16> to vector<8x32xbf16>
    %82 = vector.shape_cast %79 : vector<8x32xbf16> to vector<1x8x32xbf16>
    tpu.vector_store %arg3[%c0_24, %c0_25, %c0_26], %82 {strides = array<i32>} : memref<1x8x32xbf16, #tpu.memory_space<vmem>>, vector<1x8x32xbf16>,
    return
  }
  func.func @transform_0(%arg0: i32) -> (i32, i32, i32) {
    %c0_i32 = arith.constant 0 : i32
    %c0_i32_0 = arith.constant 0 : i32
    %c0_i32_1 = arith.constant 0 : i32
    return %arg0, %c0_i32, %c0_i32_0 : i32, i32, i32
  }
  func.func @transform_1(%arg0: i32) -> (i32, i32, i32) {
    %c0_i32 = arith.constant 0 : i32
    %c0_i32_0 = arith.constant 0 : i32
    %c0_i32_1 = arith.constant 0 : i32
    return %arg0, %c0_i32, %c0_i32_0 : i32, i32, i32
  }
  func.func @transform_2(%arg0: i32) -> (i32, i32, i32) {
    %c0_i32 = arith.constant 0 : i32
    %c0_i32_0 = arith.constant 0 : i32
    %c0_i32_1 = arith.constant 0 : i32
    return %arg0, %c0_i32, %c0_i32_0 : i32, i32, i32
  }
}

module attributes {stable_mosaic.version = 11 : i64} {
  func.func @_matmul_kernel(%arg0: i32, %arg1: i32, %arg2: i32, %arg3: memref<16x32xbf16, #tpu.memory_space<vmem>>, %arg4: memref<32x40xbf16, #tpu.memory_space<vmem>>, %arg5: memref<16x40xf32, #tpu.memory_space<vmem>>, %arg6: memref<16x40xf32, #tpu.memory_space<vmem>>) attributes {dimension_semantics = [#tpu.dimension_semantics<parallel>, #tpu.dimension_semantics<parallel>, #tpu.dimension_semantics<arbitrary>], iteration_bounds = array<i64: 1, 1, 1>, scalar_prefetch = 0 : i64, scratch_operands = 1 : i64, tpu.core_type = #tpu.core_type<tc>, window_params = [{transform_indices = @transform_0, window_bounds = array<i64: 16, 32>}, {transform_indices = @transform_1, window_bounds = array<i64: 32, 40>}, {transform_indices = @transform_2, window_bounds = array<i64: 16, 40>}]} {
    %c0_i32 = arith.constant 0 : i32
    %0 = arith.cmpi eq, %arg2, %c0_i32 : i32
    %1 = arith.extui %0 : i1 to i32
    %c0_i32_0 = arith.constant 0 : i32
    %2 = arith.cmpi ne, %1, %c0_i32_0 : i32
    scf.if %2 {
      %cst_10 = arith.constant 0.000000e+00 : f32
      %12 = vector.broadcast %cst_10 : f32 to vector<16x40xf32>
      %c0_11 = arith.constant 0 : index
      %c0_12 = arith.constant 0 : index
      %13 = vector.load %arg6[%c0_11, %c0_12] : memref<16x40xf32, #tpu.memory_space<vmem>>, vector<16x40xf32>
      tpu.vector_store %arg6[%c0_11, %c0_12], %12 {strides = array<i32>} : memref<16x40xf32, #tpu.memory_space<vmem>>, vector<16x40xf32>,
    } else {
    }
    %c0 = arith.constant 0 : index
    %c0_1 = arith.constant 0 : index
    %3 = vector.load %arg6[%c0, %c0_1] : memref<16x40xf32, #tpu.memory_space<vmem>>, vector<16x40xf32>
    %c0_2 = arith.constant 0 : index
    %c0_3 = arith.constant 0 : index
    %4 = vector.load %arg3[%c0_2, %c0_3] : memref<16x32xbf16, #tpu.memory_space<vmem>>, vector<16x32xbf16>
    %c0_4 = arith.constant 0 : index
    %c0_5 = arith.constant 0 : index
    %5 = vector.load %arg4[%c0_4, %c0_5] : memref<32x40xbf16, #tpu.memory_space<vmem>>, vector<32x40xbf16>
    %cst = arith.constant dense<0.000000e+00> : vector<16x40xf32>
    %6 = tpu.matmul %4, %5, %cst {dimension_numbers = #tpu.dot_dimension_numbers<[1], [0], [0], [1], [0, 0, 1, 1], [], []>} : vector<16x32xbf16>, vector<32x40xbf16>, vector<16x40xf32> -> vector<16x40xf32>
    %7 = arith.addf %3, %6 : vector<16x40xf32>
    %c0_6 = arith.constant 0 : index
    %c0_7 = arith.constant 0 : index
    %8 = vector.load %arg6[%c0_6, %c0_7] : memref<16x40xf32, #tpu.memory_space<vmem>>, vector<16x40xf32>
    tpu.vector_store %arg6[%c0_6, %c0_7], %7 {strides = array<i32>} : memref<16x40xf32, #tpu.memory_space<vmem>>, vector<16x40xf32>,
    %c0_i32_8 = arith.constant 0 : i32
    %9 = arith.cmpi eq, %arg2, %c0_i32_8 : i32
    %10 = arith.extui %9 : i1 to i32
    %c0_i32_9 = arith.constant 0 : i32
    %11 = arith.cmpi ne, %10, %c0_i32_9 : i32
    scf.if %11 {
      %c0_10 = arith.constant 0 : index
      %c0_11 = arith.constant 0 : index
      %12 = vector.load %arg6[%c0_10, %c0_11] : memref<16x40xf32, #tpu.memory_space<vmem>>, vector<16x40xf32>
      %c0_12 = arith.constant 0 : index
      %c0_13 = arith.constant 0 : index
      %13 = vector.load %arg5[%c0_12, %c0_13] : memref<16x40xf32, #tpu.memory_space<vmem>>, vector<16x40xf32>
      tpu.vector_store %arg5[%c0_12, %c0_13], %12 {strides = array<i32>} : memref<16x40xf32, #tpu.memory_space<vmem>>, vector<16x40xf32>,
    } else {
    }
    return
  }
  func.func @transform_0(%arg0: i32, %arg1: i32, %arg2: i32) -> (i32, i32) {
    %c0_i32 = arith.constant 0 : i32
    return %arg0, %arg2 : i32, i32
  }
  func.func @transform_1(%arg0: i32, %arg1: i32, %arg2: i32) -> (i32, i32) {
    %c0_i32 = arith.constant 0 : i32
    return %arg2, %arg1 : i32, i32
  }
  func.func @transform_2(%arg0: i32, %arg1: i32, %arg2: i32) -> (i32, i32) {
    %c0_i32 = arith.constant 0 : i32
    return %arg0, %arg1 : i32, i32
  }
}

</mosaic_0001>

<bundles_post_ra>
// kernel: transformer_forward.30
= control target key start
LH: loop header
LB: loop body
LE: loop exit
PB: predicated region body
PF: predicated region fallthrough
CT: control target
= control target key end

     0   :  { %v187_v0 = vmov 0.0   ;;  %vm188_vm0 = vmmov 0   ;;  %vm48_vm1 = vcmask 261120   ;;  %vm146_vm2 = vcmask 257024   ;;  %s248_s1 = inlined_call_operand.vmem [shape: bf16[32,32], index: 1, kind: input, shape index: {}]   ;;  %s249_s0 = inlined_call_operand.vmem [shape: bf16[16,32], index: 0, kind: input, shape index: {}]   ;;  %s250_s2 = inlined_call_operand.vmem [shape: bf16[16,32], index: 2, kind: input, shape index: {}]   ;;  %s251_s3 = inlined_call_operand.vmem [shape: f32[1,32], index: 3, kind: input, shape index: {}]   ;;  %s252_s4 = inlined_call_operand.vmem [shape: f32[1,32], index: 4, kind: input, shape index: {}]   ;;  %s253_s5 = inlined_call_operand.vmem [shape: bf16[16,32], index: 5, kind: output, shape index: {}]  }
   0x1   :  { %170 = vmatprep.subr.bf16.mxu0 %v187_v0  ;;  %v180_v1 = vld [vmem:[%s248_s1 + $0x8] sm:$0xff]   ;;  %174 = vmatprep.mubr.msk.bf16.mxu0 %vm188_vm0, %v187_v0  ;;  %v181_v2 = vld [vmem:[%s248_s1] sm:$0xff]  }
   0x2   :  { %171 = vmatpush3.bf16.msra.mxu0 %v180_v1  ;;  %v182_v3 = vld [vmem:[%s249_s0] sm:$0xff]  }
   0x3   :  { %172 = vmatprep.subr.bf16.mxu0 %v187_v0  ;;  %v164_v4 = vld [vmem:[%s250_s2] sm:$0xff]  }
   0x4   :  { %v165_v5 = vunpack.c.l.bf16 %v164_v4  ;;  %v166_v8 = vunpack.c.h.bf16 %v164_v4  ;;  %v157_v32 = vld [vmem:[%s251_s3] ss:$0 sm:$0xff] }
   0x5   :  { %v158_v34 = vld [vmem:[%s252_s4] ss:$0 sm:$0xff] }
   0x6   :  { %173 = vmatpush3.bf16.msra.mxu0 %v181_v2 }
   0x9   :  { %175 = vmatmul.mubr.msk.bf16.vlgmr.msra.gmra.mxu0 %vm48_vm1, %v182_v3 }
  0xc9   :  { %v86_v6 = vpop.f32.mrf.mxu0 }
  0xca   :  { %v87_v7 = vadd.f32 %v165_v5, %v86_v6 }
  0xcb   :  { %v176_v9 = vpop.f32.mrf.mxu0 }
  0xcc   :  { %v93_v10 = vsel %vm48_vm1, %v87_v7, 0.0 }
  0xcd   :  { %94 = vadd.xlane.f32.xlu0 %v93_v10  ;;  %v89_v11 = vpop.f32.mrf.mxu0 }
  0xce   :  { %v90_v12 = vadd.f32 %v166_v8, %v89_v11 }
  0xcf   :  { %v177_v13 = vpop.f32.mrf.mxu0 }
  0xd0   :  { %v96_v14 = vsel %vm48_vm1, %v90_v12, 0.0 }
  0xd1   :  { %97 = vadd.xlane.f32.xlu0 %v96_v14 }
 0x156   :  { %v95_v15 = vpop.xlane.xlu0 %94 }
 0x157   :  { %v100_v16 = vmul.f32 0.03125, %v95_v15 }
 0x159   :  { %v102_v17 = vsub.f32 %v87_v7, %v100_v16 }
 0x15a   :  { %v98_v18 = vpop.xlane.xlu0 %97 }
 0x15b   :  { %v101_v19 = vmul.f32 0.03125, %v98_v18  ;;  %v104_v20 = vmul.f32 %v102_v17, %v102_v17 }
 0x15d   :  { %v103_v21 = vsub.f32 %v90_v12, %v101_v19  ;;  %v106_v22 = vsel %vm48_vm1, %v104_v20, 0.0 }
 0x15e   :  { %107 = vadd.xlane.f32.xlu1 %v106_v22 }
 0x15f   :  { %v105_v23 = vmul.f32 %v103_v21, %v103_v21 }
 0x161   :  { %v109_v24 = vsel %vm48_vm1, %v105_v23, 0.0 }
 0x162   :  { %110 = vadd.xlane.f32.xlu1 %v109_v24 }
 0x1e7   :  { %v108_v25 = vpop.xlane.xlu1 %107 }
 0x1e8   :  { %v112_v26 = vmul.f32 0.03125, %v108_v25 }
 0x1ea   :  { %v114_v27 = vadd.f32 1e-06, %v112_v26 }
 0x1eb   :  { %v111_v28 = vpop.xlane.xlu1 %110 }
 0x1ec   :  { %183 = vrsqrt.f32 %v114_v27  ;;  %v113_v29 = vmul.f32 0.03125, %v111_v28 }
 0x1ee   :  { %v115_v30 = vadd.f32 1e-06, %v113_v29 }
 0x1f0   :  { %185 = vrsqrt.f32 %v115_v30 }
 0x1f9   :  { %v184_v31 = vpop.eup %183 }
 0x1fa   :  { %v118_v33 = vmul.f32 %v184_v31, %v102_v17 }
 0x1fc   :  { %v127_v35 = vmul.f32 %v157_v32, %v118_v33 }
 0x1fd   :  { %v186_v36 = vpop.eup %185 }
 0x1fe   :  { %v136_v37 = vadd.f32 %v158_v34, %v127_v35  ;;  %v119_v38 = vmul.f32 %v186_v36, %v103_v21 }
 0x200   :  { %v161_v39 = vpack.c.bf16 %v136_v37, %v136_v37  ;;  %v128_v40 = vmul.f32 %v157_v32, %v119_v38 }
 0x202   :  { %147 = vst.msk [vmem:[%s253_s5] sm:$0xf] %vm146_vm2, %v161_v39  ;;  %v137_v41 = vadd.f32 %v158_v34, %v128_v40 }
 0x204   :  { %v162_v42 = vpack.c.bf16 %v137_v41, %v137_v41 }
 0x206   :  { %148 = vst.msk [vmem:[%s253_s5 + $0x4] sm:$0xf] %vm146_vm2, %v162_v42 }

// kernel: transformer_forward.28
= control target key start
LH: loop header
LB: loop body
LE: loop exit
PB: predicated region body
PF: predicated region fallthrough
CT: control target
= control target key end

     0   :  { %vm16_vm0 = vcmask 785408   ;;  %v138_v0 = vmov 0.0   ;;  %vm139_vm1 = vmmov 0   ;;  %vm44_vm2 = vcmask 261120   ;;  %s174_s1 = inlined_call_operand.vmem [shape: bf16[32,96], index: 1, kind: input, shape index: {}]   ;;  %s175_s0 = inlined_call_operand.vmem [shape: bf16[16,32], index: 0, kind: input, shape index: {}]   ;;  %s176_s2 = inlined_call_operand.vmem [shape: bf16[16,96], index: 2, kind: output, shape index: {}]  }
   0x1   :  { %125 = vmatprep.subr.bf16.mxu0 %v138_v0  ;;  %v135_v1 = vld [vmem:[%s174_s1 + $0x8] sm:$0xff]   ;;  %129 = vmatprep.mubr.msk.bf16.mxu0 %vm139_vm1, %v138_v0  ;;  %17 = vst.msk [vmem:[#allocation2] sm:$0xff] %vm16_vm0, %v138_v0  ;;  %18 = vst.msk [vmem:[#allocation2 + $0x8] sm:$0xff] %vm16_vm0, %v138_v0  ;;  %v136_v2 = vld [vmem:[%s174_s1] sm:$0xff]   ;;  %vm107_vm3 = vcmask 781312  }
   0x2   :  { %126 = vmatpush3.bf16.msra.mxu0 %v135_v1  ;;  %v137_v3 = vld [vmem:[%s175_s0] sm:$0xff]  }
   0x3   :  { %127 = vmatprep.subr.bf16.mxu0 %v138_v0 }
   0x6   :  { %128 = vmatpush3.bf16.msra.mxu0 %v136_v2 }
   0x8   :  { %v19_v4 = vld [vmem:[#allocation2] sm:$0xff]  ;;  %v20_v8 = vld [vmem:[#allocation2 + $0x8] sm:$0xff] }
   0x9   :  { %130 = vmatmul.mubr.msk.bf16.vlgmr.msra.gmra.mxu0 %vm44_vm2, %v137_v3 }
  0xc9   :  { %v82_v5 = vpop.f32.mrf.mxu0 }
  0xca   :  { %v89_v6 = vadd.f32 %v82_v5, %v19_v4 }
  0xcb   :  { %v131_v7 = vpop.f32.mrf.mxu0 }
  0xcc   :  { %92 = vst.msk [vmem:[#allocation2] sm:$0xff] %vm16_vm0, %v89_v6 }
  0xcd   :  { %v85_v9 = vpop.f32.mrf.mxu0 }
  0xce   :  { %v90_v10 = vadd.f32 %v85_v9, %v20_v8 }
  0xcf   :  { %v132_v11 = vpop.f32.mrf.mxu0 }
  0xd0   :  { %93 = vst.msk [vmem:[#allocation2 + $0x8] sm:$0xff] %vm16_vm0, %v90_v10 }
  0xd3   :  { %v97_v12 = vld [vmem:[#allocation2] sm:$0xff] }
  0xd4   :  { %v120_v13 = vpack.c.bf16 %v97_v12, %v97_v12 }
  0xd6   :  { %108 = vst.msk [vmem:[%s176_s2] sm:$0xf] %vm107_vm3, %v120_v13 }
  0xd7   :  { %v98_v14 = vld [vmem:[#allocation2 + $0x8] sm:$0xff] }
  0xd8   :  { %v121_v15 = vpack.c.bf16 %v98_v14, %v98_v14 }
  0xda   :  { %109 = vst.msk [vmem:[%s176_s2 + $0x4] sm:$0xf] %vm107_vm3, %v121_v15 }

// kernel: transformer_forward.27
= control target key start
LH: loop header
LB: loop body
LE: loop exit
PB: predicated region body
PF: predicated region fallthrough
CT: control target
= control target key end

     0   :  { %vm16_vm0 = vcmask 261120   ;;  %vm70_vm1 = vcmask 257024   ;;  %s129_s0 = inlined_call_operand.vmem [shape: f32[16,32], index: 0, kind: input, shape index: {}]   ;;  %s130_s1 = inlined_call_operand.vmem [shape: f32[1,32], index: 1, kind: input, shape index: {}]   ;;  %s131_s2 = inlined_call_operand.vmem [shape: f32[1,32], index: 2, kind: input, shape index: {}]   ;;  %s132_s3 = inlined_call_operand.vmem [shape: bf16[16,32], index: 3, kind: output, shape index: {}]  }
   0x1   :  { %v14_v0 = vld [vmem:[%s129_s0] sm:$0xff]  ;;  %v15_v1 = vld [vmem:[%s129_s0 + $0x8] sm:$0xff] }
   0x2   :  { %v17_v2 = vsel %vm16_vm0, %v14_v0, 0.0  ;;  %v20_v3 = vsel %vm16_vm0, %v15_v1, 0.0  ;;  %v77_v21 = vld [vmem:[%s130_s1] ss:$0 sm:$0xff] }
   0x3   :  { %18 = vadd.xlane.f32.xlu0 %v17_v2  ;;  %v78_v23 = vld [vmem:[%s131_s2] ss:$0 sm:$0xff] }
   0x7   :  { %21 = vadd.xlane.f32.xlu0 %v20_v3 }
  0x8c   :  { %v19_v4 = vpop.xlane.xlu0 %18 }
  0x8d   :  { %v24_v5 = vmul.f32 0.03125, %v19_v4 }
  0x8f   :  { %v26_v6 = vsub.f32 %v14_v0, %v24_v5 }
  0x90   :  { %v22_v7 = vpop.xlane.xlu0 %21 }
  0x91   :  { %v25_v8 = vmul.f32 0.03125, %v22_v7  ;;  %v28_v9 = vmul.f32 %v26_v6, %v26_v6 }
  0x93   :  { %v27_v10 = vsub.f32 %v15_v1, %v25_v8  ;;  %v30_v11 = vsel %vm16_vm0, %v28_v9, 0.0 }
  0x94   :  { %31 = vadd.xlane.f32.xlu1 %v30_v11 }
  0x95   :  { %v29_v12 = vmul.f32 %v27_v10, %v27_v10 }
  0x97   :  { %v33_v13 = vsel %vm16_vm0, %v29_v12, 0.0 }
  0x98   :  { %34 = vadd.xlane.f32.xlu1 %v33_v13 }
 0x11d   :  { %v32_v14 = vpop.xlane.xlu1 %31 }
 0x11e   :  { %v36_v15 = vmul.f32 0.03125, %v32_v14 }
 0x120   :  { %v38_v16 = vadd.f32 1e-06, %v36_v15 }
 0x121   :  { %v35_v17 = vpop.xlane.xlu1 %34 }
 0x122   :  { %83 = vrsqrt.f32 %v38_v16  ;;  %v37_v18 = vmul.f32 0.03125, %v35_v17 }
 0x124   :  { %v39_v19 = vadd.f32 1e-06, %v37_v18 }
 0x126   :  { %85 = vrsqrt.f32 %v39_v19 }
 0x12f   :  { %v84_v20 = vpop.eup %83 }
 0x130   :  { %v42_v22 = vmul.f32 %v84_v20, %v26_v6 }
 0x132   :  { %v51_v24 = vmul.f32 %v77_v21, %v42_v22 }
 0x133   :  { %v86_v25 = vpop.eup %85 }
 0x134   :  { %v60_v26 = vadd.f32 %v78_v23, %v51_v24  ;;  %v43_v27 = vmul.f32 %v86_v25, %v27_v10 }
 0x136   :  { %v81_v28 = vpack.c.bf16 %v60_v26, %v60_v26  ;;  %v52_v29 = vmul.f32 %v77_v21, %v43_v27 }
 0x138   :  { %71 = vst.msk [vmem:[%s132_s3] sm:$0xf] %vm70_vm1, %v81_v28  ;;  %v61_v30 = vadd.f32 %v78_v23, %v52_v29 }
 0x13a   :  { %v82_v31 = vpack.c.bf16 %v61_v30, %v61_v30 }
 0x13c   :  { %72 = vst.msk [vmem:[%s132_s3 + $0x4] sm:$0xf] %vm70_vm1, %v82_v31 }

// kernel: transformer_forward.29
= control target key start
LH: loop header
LB: loop body
LE: loop exit
PB: predicated region body
PF: predicated region fallthrough
CT: control target
= control target key end

     0   :  { %s791_s6 = smov 0   ;;  %s880_s0 = inlined_call_operand.vmem [shape: bf16[2,8,96], index: 0, kind: input, shape index: {}]   ;;  %s881_s1 = inlined_call_operand.vmem [shape: bf16[2,8,32], index: 1, kind: output, shape index: {}]  }
   0x1 LB: > { %s634_s7 = sadd.s32 4294967295, %s763_s6   ;;  %p638_p0 = scmp.ge.s32.totalorder %s763_s6, 1  ;;  %s763_s6 = sphi %s791_s6, %s11_s6  }
   0x2   : > { %p86_p1 = scmp.lt.s32.totalorder %s763_s6, 3 }
   0x4   : > { %p87_p2 = pnand %p638_p0, %p86_p1 }
   0x5   : > { %p104_p3 = scmp.lt.s32.totalorder (!%p87_p2), %s634_s7, 1  ;;  %s767_s12 = smov (!%p87_p2), 96  }
   0x6   : > { %90 = sbr.rel (%p87_p2) target bundleno = 1539 (0x603), region = 24  ;;  %s768_s13 = smov (!%p87_p2), 64  }
   0x7   : > { %s769_s14 = smov (!%p87_p2), 88   ;;  %s770_s15 = smov (!%p87_p2), 72  }
   0x8   : > { %s771_s16 = smov (!%p87_p2), 120   ;;  %s772_s17 = smov (!%p87_p2), 80  }
   0x9   : > { %s773_s18 = smov (!%p87_p2), 112   ;;  %s774_s19 = smov (!%p87_p2), 104  }
   0xa   : > { %s775_s20 = smov (!%p87_p2), 56   ;;  %s776_s21 = smov (!%p87_p2), 48  }
   0xb   : > { %v765_v0 = vmov 0.0   ;;  %vm766_vm0 = vmmov 0   ;;  %s883_s7 = smov (!%p104_p3, %s634_s7), 1  ;;  %vm119_vm1 = vcmask 64512   ;;  %vm184_vm2 = vcmask 1043456   ;;  %s777_s22 = smov 40  }
   0xc   : > { %668 = vmatprep.subr.bf16.mxu0 %v765_v0  ;;  %670 = vmatprep.mubr.msk.bf16.mxu0 %vm766_vm0, %v765_v0  ;;  %s639_s8 = sshll.u32 %s883_s7, 2  ;;  %s778_s23 = smov 8   ;;  %vm574_vm3 = vcmask 130048   ;;  %vm576_vm4 = vcmask 195584   ;;  %vm579_vm5 = vcmask 257024  }
   0xd   : > { %674 = vmatprep.subr.bf16.mxu1 %v765_v0  ;;  %676 = vmatprep.mubr.msk.bf16.mxu1 %vm766_vm0, %v765_v0  ;;  %s107_s11 = scalar_lea.vmem %s880_s0, %s639_s8  ;;  %s779_s24 = smov 16  }
   0xe   : > { %v113_v1 = vld [vmem:[%s107_s11] sm:$0xf]  ;;  %s780_s25 = smov 24   ;;  %s111_s28 = scalar_lea.vmem %s881_s1, %s639_s8 }
   0xf   : > { %v813_v2 = vcombine.low %v113_v1, %v113_v1 }
  0x11   : > { %117 = vrot.lane.b32.xlu0 %v813_v2, %s767_s12  ;;  %179 = vrot.lane.b32.xlu1 %v813_v2, %s768_s13 }
  0x15   : > { %230 = vrot.lane.b32.xlu1 %v813_v2, %s769_s14 }
  0x83   : > { %v118_v3 = vpop.permute.xlu0 %117  ;;  %v180_v11 = vpop.permute.xlu1 %179 }
  0x84   : > { %v124_v4 = vsel %vm119_vm1, %v118_v3, 0  ;;  %v186_v12 = vsel %vm184_vm2, %v180_v11, 0 }
  0x85   : > { %669 = vmatpush3.bf16.xpose.msra.mxu0 %v124_v4  ;;  %675 = vmatpush3.bf16.msra.mxu1 %v186_v12 }
  0x86   : > { %686 = vmatprep.subr.bf16.mxu0 %v765_v0  ;;  %680 = vmatprep.subr.bf16.mxu1 %v765_v0 }
  0x87   : > { %v231_v18 = vpop.permute.xlu1 %230 }
  0x88   : > { %v236_v24 = vsel %vm119_vm1, %v231_v18, 0 }
  0x8c   : > { %671 = vmatmul.mubr.msk.bf16.vlgmr.msra.gmra.mxu0 %vm119_vm1, %v113_v1 }
  0x8d   : > { %688 = vmatprep.mubr.msk.bf16.mxu0 %vm766_vm0, %v765_v0 }
 0x14c   : > { %v160_v5 = vpop.f32.mrf.mxu0 }
 0x14d   : > { %v166_v6 = vmul.f32 0.35355338, %v160_v5 }
 0x14e   : > { %v672_v7 = vpop.f32.mrf.mxu0 }
 0x14f   : > { %v167_v8 = vsel %vm119_vm1, %v166_v6, -inf }
 0x150   : > { %168 = vmax.xlane.f32.xlu0 %v167_v8  ;;  %v163_v9 = vpop.f32.mrf.mxu0 }
 0x152   : > { %v673_v10 = vpop.f32.mrf.mxu0 }
 0x166   : > { %452 = vrot.lane.b32.xlu0 %v813_v2, %s770_s15 }
 0x1d9   : > { %v169_v13 = vpop.xlane.xlu0 %168 }
 0x1da   : > { %v170_v14 = vsub.f32 %v166_v6, %v169_v13 }
 0x1dc   : > { %v171_v15 = vmul.f32 1.442695, %v170_v14 }
 0x1dd   : > { %v453_v27 = vpop.permute.xlu0 %452 }
 0x1de   : > { %741 = vpow2.f32 %v171_v15  ;;  %v458_v29 = vsel %vm119_vm1, %v453_v27, 0 }
 0x1eb   : > { %v742_v16 = vpop.eup %741 }
 0x1ec   : > { %v173_v17 = vsel %vm119_vm1, %v742_v16, 0.0 }
 0x1ed   : > { %174 = vadd.xlane.f32.xlu1 %v173_v17 }
 0x1fe   : > { %228 = vrot.lane.b32.xlu1 %v813_v2, %s771_s16 }
 0x202   : > { %341 = vrot.lane.b32.xlu1 %v813_v2, %s772_s17 }
 0x206   : > { %339 = vrot.lane.b32.xlu1 %v813_v2, %s773_s18 }
 0x20a   : > { %450 = vrot.lane.b32.xlu1 %v813_v2, %s774_s19 }
 0x276   : > { %v175_v19 = vpop.xlane.xlu1 %174 }
 0x277   : > { %743 = vrcp.f32 %v175_v19 }
 0x27a   : > { %v229_v22 = vpop.permute.xlu1 %228 }
 0x27e   : > { %v342_v25 = vpop.permute.xlu1 %341 }
 0x27f   : > { %v347_v26 = vsel %vm119_vm1, %v342_v25, 0 }
 0x282   : > { %v340_v28 = vpop.permute.xlu1 %339 }
 0x284   : > { %v744_v20 = vpop.eup %743 }
 0x285   : > { %v177_v21 = vmul.f32 %v744_v20, %v742_v16 }
 0x286   : > { %v451_v30 = vpop.permute.xlu1 %450 }
 0x287   : > { %v178_v23 = vpack.c.bf16 %v177_v21, %v177_v21 }
 0x289   : > { %677 = vmatmul.mubr.msk.bf16.vlgmr.msra.gmra.mxu1 %vm119_vm1, %v178_v23 }
 0x28a   : > { %681 = vmatpush3.bf16.xpose.msra.mxu1 %v236_v24  ;;  %682 = vmatprep.mubr.msk.bf16.mxu1 %vm766_vm0, %v765_v0 }
 0x28b   : > { %692 = vmatprep.subr.bf16.mxu1 %v765_v0 }
 0x291   : > { %683 = vmatmul.mubr.msk.bf16.vlgmr.msra.gmra.mxu1 %vm119_vm1, %v229_v22 }
 0x292   : > { %693 = vmatpush3.bf16.xpose.msra.mxu1 %v347_v26  ;;  %694 = vmatprep.mubr.msk.bf16.mxu1 %vm766_vm0, %v765_v0 }
 0x293   : > { %704 = vmatprep.subr.bf16.mxu1 %v765_v0 }
 0x299   : > { %695 = vmatmul.mubr.msk.bf16.vlgmr.msra.gmra.mxu1 %vm119_vm1, %v340_v28 }
 0x29a   : > { %705 = vmatpush3.bf16.xpose.msra.mxu1 %v458_v29  ;;  %706 = vmatprep.mubr.msk.bf16.mxu1 %vm766_vm0, %v765_v0 }
 0x2a1   : > { %707 = vmatmul.mubr.msk.bf16.vlgmr.msra.gmra.mxu1 %vm119_vm1, %v451_v30 }
 0x349   : > { %v847_v31 = vpop.f32.mrf.mxu1 }
 0x34b   : > { %v678_v32 = vpop.f32.mrf.mxu1 }
 0x34d   : > { %v225_v33 = vpop.f32.mrf.mxu1 }
 0x34f   : > { %v679_v34 = vpop.f32.mrf.mxu1 }
 0x351   : > { %v272_v35 = vpop.f32.mrf.mxu1 }
 0x352   : > { %v278_v36 = vmul.f32 0.35355338, %v272_v35 }
 0x353   : > { %v684_v37 = vpop.f32.mrf.mxu1 }
 0x354   : > { %v279_v38 = vsel %vm119_vm1, %v278_v36, -inf }
 0x355   : > { %280 = vmax.xlane.f32.xlu1 %v279_v38  ;;  %v275_v39 = vpop.f32.mrf.mxu1 }
 0x357   : > { %v685_v40 = vpop.f32.mrf.mxu1 }
 0x359   : > { %v383_v41 = vpop.f32.mrf.mxu1 }
 0x35a   : > { %v389_v42 = vmul.f32 0.35355338, %v383_v41 }
 0x35b   : > { %v696_v43 = vpop.f32.mrf.mxu1 }
 0x35c   : > { %v390_v44 = vsel %vm119_vm1, %v389_v42, -inf }
 0x35d   : > { %391 = vmax.xlane.f32.xlu0 %v390_v44  ;;  %v386_v45 = vpop.f32.mrf.mxu1 }
 0x35f   : > { %v697_v46 = vpop.f32.mrf.mxu1 }
 0x361   : > { %v494_v47 = vpop.f32.mrf.mxu1 }
 0x362   : > { %v500_v48 = vmul.f32 0.35355338, %v494_v47 }
 0x363   : > { %v708_v49 = vpop.f32.mrf.mxu1 }
 0x364   : > { %v501_v50 = vsel %vm119_vm1, %v500_v48, -inf }
 0x365   : > { %502 = vmax.xlane.f32.xlu1 %v501_v50  ;;  %v497_v51 = vpop.f32.mrf.mxu1 }
 0x367   : > { %v709_v52 = vpop.f32.mrf.mxu1 }
 0x3de   : > { %v281_v53 = vpop.xlane.xlu1 %280 }
 0x3df   : > { %v282_v54 = vsub.f32 %v278_v36, %v281_v53 }
 0x3e1   : > { %v283_v55 = vmul.f32 1.442695, %v282_v54 }
 0x3e3   : > { %745 = vpow2.f32 %v283_v55 }
 0x3e6   : > { %v392_v63 = vpop.xlane.xlu0 %391 }
 0x3e7   : > { %v393_v1 = vsub.f32 %v389_v42, %v392_v63 }
 0x3e9   : > { %v394_v3 = vmul.f32 1.442695, %v393_v1 }
 0x3ee   : > { %v503_v56 = vpop.xlane.xlu1 %502 }
 0x3ef   : > { %v504_v57 = vsub.f32 %v500_v48, %v503_v56 }
 0x3f0   : > { %v746_v58 = vpop.eup %745 }
 0x3f1   : > { %v505_v59 = vmul.f32 1.442695, %v504_v57  ;;  %v285_v60 = vsel %vm119_vm1, %v746_v58, 0.0 }
 0x3f2   : > { %286 = vadd.xlane.f32.xlu1 %v285_v60 }
 0x3f3   : > { %747 = vpow2.f32 %v505_v59 }
 0x3f4   : > { %749 = vpow2.f32 %v394_v3 }
 0x400   : > { %v748_v61 = vpop.eup %747 }
 0x401   : > { %v507_v62 = vsel %vm119_vm1, %v748_v61, 0.0  ;;  %v750_v4 = vpop.eup %749 }
 0x402   : > { %508 = vadd.xlane.f32.xlu0 %v507_v62  ;;  %v396_v5 = vsel %vm119_vm1, %v750_v4, 0.0 }
 0x403   : > { %291 = vrot.lane.b32.xlu1 %v813_v2, %s775_s20 }
 0x418   : > { %402 = vrot.lane.b32.xlu0 %v813_v2, %s776_s21 }
 0x427   : > { %397 = vadd.xlane.f32.xlu1 %v396_v5 }
 0x438   : > { %513 = vrot.lane.b32.xlu1 %v813_v2, %s777_s22 }
 0x47b   : > { %v287_v6 = vpop.xlane.xlu1 %286 }
 0x47c   : > { %751 = vrcp.f32 %v287_v6 }
 0x47f   : > { %v292_v7 = vpop.permute.xlu1 %291 }
 0x480   : > { %v297_v8 = vsel %vm184_vm2, %v292_v7, 0 }
 0x481   : > { %687 = vmatpush3.bf16.msra.mxu0 %v297_v8 }
 0x482   : > { %698 = vmatprep.subr.bf16.mxu0 %v765_v0 }
 0x489   : > { %v752_v9 = vpop.eup %751 }
 0x48a   : > { %v289_v10 = vmul.f32 %v752_v9, %v746_v58 }
 0x48b   : > { %v509_v11 = vpop.xlane.xlu0 %508 }
 0x48c   : > { %v290_v12 = vpack.c.bf16 %v289_v10, %v289_v10 }
 0x48e   : > { %689 = vmatmul.mubr.msk.bf16.vlgmr.msra.gmra.mxu0 %vm119_vm1, %v290_v12 }
 0x48f   : > { %v403_v13 = vpop.permute.xlu0 %402  ;;  %700 = vmatprep.mubr.msk.bf16.mxu0 %vm766_vm0, %v765_v0 }
 0x490   : > { %v408_v2 = vsel %vm184_vm2, %v403_v13, 0 }
 0x491   : > { %699 = vmatpush3.bf16.msra.mxu0 %v408_v2 }
 0x492   : > { %710 = vmatprep.subr.bf16.mxu0 %v765_v0 }
 0x4b0   : > { %v398_v14 = vpop.xlane.xlu1 %397 }
 0x4b1   : > { %753 = vrcp.f32 %v398_v14 }
 0x4b2   : > { %755 = vrcp.f32 %v509_v11 }
 0x4b4   : > { %v514_v16 = vpop.permute.xlu1 %513 }
 0x4b5   : > { %v519_v18 = vsel %vm184_vm2, %v514_v16, 0 }
 0x4be   : > { %v754_v15 = vpop.eup %753 }
 0x4bf   : > { %v400_v17 = vmul.f32 %v754_v15, %v750_v4  ;;  %v756_v20 = vpop.eup %755 }
 0x4c0   : > { %v511_v21 = vmul.f32 %v756_v20, %v748_v61 }
 0x4c1   : > { %v401_v19 = vpack.c.bf16 %v400_v17, %v400_v17 }
 0x4c2   : > { %v512_v22 = vpack.c.bf16 %v511_v21, %v511_v21 }
 0x4c3   : > { %701 = vmatmul.mubr.msk.bf16.vlgmr.msra.gmra.mxu0 %vm119_vm1, %v401_v19 }
 0x4c4   : > { %711 = vmatpush3.bf16.msra.mxu0 %v519_v18  ;;  %712 = vmatprep.mubr.msk.bf16.mxu0 %vm766_vm0, %v765_v0 }
 0x4cb   : > { %713 = vmatmul.mubr.msk.bf16.vlgmr.msra.gmra.mxu0 %vm119_vm1, %v512_v22 }
 0x54e   : > { %v333_v23 = vpop.f32.mrf.mxu0 }
 0x54f   : > { %562 = vrot.lane.b32.xlu1 %v333_v23, %s778_s23 }
 0x550   : > { %v690_v24 = vpop.f32.mrf.mxu0 }
 0x552   : > { %v336_v25 = vpop.f32.mrf.mxu0 }
 0x554   : > { %v691_v26 = vpop.f32.mrf.mxu0 }
 0x583   : > { %v444_v27 = vpop.f32.mrf.mxu0 }
 0x584   : > { %566 = vrot.lane.b32.xlu0 %v444_v27, %s779_s24 }
 0x585   : > { %v702_v28 = vpop.f32.mrf.mxu0 }
 0x587   : > { %v447_v29 = vpop.f32.mrf.mxu0 }
 0x589   : > { %v703_v30 = vpop.f32.mrf.mxu0 }
 0x58b   : > { %v555_v32 = vpop.f32.mrf.mxu0 }
 0x58c   : > { %570 = vrot.lane.b32.xlu1 %v555_v32, %s780_s25 }
 0x58d   : > { %v714_v0 = vpop.f32.mrf.mxu0 }
 0x58f   : > { %v558_v33 = vpop.f32.mrf.mxu0 }
 0x591   : > { %v715_v34 = vpop.f32.mrf.mxu0 }
 0x5c1   : > { %v563_v35 = vpop.permute.xlu1 %562 }
 0x5c2   : > { %v573_v37 = vsel %vm119_vm1, %v847_v31, %v563_v35 }
 0x5f6   : > { %v567_v36 = vpop.permute.xlu0 %566 }
 0x5f7   : > { %v575_v38 = vsel %vm574_vm3, %v573_v37, %v567_v36 }
 0x5fe   : > { %v571_v39 = vpop.permute.xlu1 %570 }
 0x5ff   : > { %v577_v40 = vsel %vm576_vm4, %v575_v38, %v571_v39 }
 0x600   : > { %v578_v41 = vpack.c.bf16 %v577_v40, %v577_v40 }
 0x602   : > { %580 = vst.msk [vmem:[%s111_s28] sm:$0xf] %vm579_vm5, %v578_v41 }
 0x603 PF: > { %s11_s6 = sadd.s32 1, %s763_s6  }
 0x604   : > { %p8_p4 = scmp.ge.s32.totalorder %s11_s6, 4  }
 0x606   :  { %10 = sbr.rel (!%p8_p4) target bundleno = 1 (0x1), region = 54 }

// kernel: transformer_forward.41
= control target key start
LH: loop header
LB: loop body
LE: loop exit
PB: predicated region body
PF: predicated region fallthrough
CT: control target
= control target key end

     0   :  { %vm16_vm0 = vcmask 523264   ;;  %v138_v0 = vmov 0.0   ;;  %vm139_vm1 = vmmov 0   ;;  %vm44_vm2 = vcmask 261120   ;;  %s174_s1 = inlined_call_operand.vmem [shape: bf16[32,64], index: 1, kind: input, shape index: {}]   ;;  %s175_s0 = inlined_call_operand.vmem [shape: bf16[16,32], index: 0, kind: input, shape index: {}]   ;;  %s176_s2 = inlined_call_operand.vmem [shape: bf16[16,64], index: 2, kind: output, shape index: {}]  }
   0x1   :  { %125 = vmatprep.subr.bf16.mxu0 %v138_v0  ;;  %v135_v1 = vld [vmem:[%s174_s1 + $0x8] sm:$0xff]   ;;  %129 = vmatprep.mubr.msk.bf16.mxu0 %vm139_vm1, %v138_v0  ;;  %17 = vst.msk [vmem:[#allocation2] sm:$0xff] %vm16_vm0, %v138_v0  ;;  %18 = vst.msk [vmem:[#allocation2 + $0x8] sm:$0xff] %vm16_vm0, %v138_v0  ;;  %v136_v2 = vld [vmem:[%s174_s1] sm:$0xff]   ;;  %vm107_vm3 = vcmask 519168  }
   0x2   :  { %126 = vmatpush3.bf16.msra.mxu0 %v135_v1  ;;  %v137_v3 = vld [vmem:[%s175_s0] sm:$0xff]  }
   0x3   :  { %127 = vmatprep.subr.bf16.mxu0 %v138_v0 }
   0x6   :  { %128 = vmatpush3.bf16.msra.mxu0 %v136_v2 }
   0x8   :  { %v19_v4 = vld [vmem:[#allocation2] sm:$0xff]  ;;  %v20_v8 = vld [vmem:[#allocation2 + $0x8] sm:$0xff] }
   0x9   :  { %130 = vmatmul.mubr.msk.bf16.vlgmr.msra.gmra.mxu0 %vm44_vm2, %v137_v3 }
  0xc9   :  { %v82_v5 = vpop.f32.mrf.mxu0 }
  0xca   :  { %v89_v6 = vadd.f32 %v82_v5, %v19_v4 }
  0xcb   :  { %v131_v7 = vpop.f32.mrf.mxu0 }
  0xcc   :  { %92 = vst.msk [vmem:[#allocation2] sm:$0xff] %vm16_vm0, %v89_v6 }
  0xcd   :  { %v85_v9 = vpop.f32.mrf.mxu0 }
  0xce   :  { %v90_v10 = vadd.f32 %v85_v9, %v20_v8 }
  0xcf   :  { %v132_v11 = vpop.f32.mrf.mxu0 }
  0xd0   :  { %93 = vst.msk [vmem:[#allocation2 + $0x8] sm:$0xff] %vm16_vm0, %v90_v10 }
  0xd3   :  { %v97_v12 = vld [vmem:[#allocation2] sm:$0xff] }
  0xd4   :  { %v120_v13 = vpack.c.bf16 %v97_v12, %v97_v12 }
  0xd6   :  { %108 = vst.msk [vmem:[%s176_s2] sm:$0xf] %vm107_vm3, %v120_v13 }
  0xd7   :  { %v98_v14 = vld [vmem:[#allocation2 + $0x8] sm:$0xff] }
  0xd8   :  { %v121_v15 = vpack.c.bf16 %v98_v14, %v98_v14 }
  0xda   :  { %109 = vst.msk [vmem:[%s176_s2 + $0x4] sm:$0xf] %vm107_vm3, %v121_v15 }

// kernel: transformer_forward.40
= control target key start
LH: loop header
LB: loop body
LE: loop exit
PB: predicated region body
PF: predicated region fallthrough
CT: control target
= control target key end

     0   :  { %vm16_vm0 = vcmask 261120   ;;  %v137_v0 = vmov 0.0   ;;  %vm138_vm1 = vmmov 0   ;;  %vm106_vm2 = vcmask 257024   ;;  %s174_s1 = inlined_call_operand.vmem [shape: bf16[32,32], index: 1, kind: input, shape index: {}]   ;;  %s175_s0 = inlined_call_operand.vmem [shape: bf16[16,32], index: 0, kind: input, shape index: {}]   ;;  %s176_s2 = inlined_call_operand.vmem [shape: bf16[16,32], index: 2, kind: output, shape index: {}]  }
   0x1   :  { %124 = vmatprep.subr.bf16.mxu0 %v137_v0  ;;  %v134_v1 = vld [vmem:[%s174_s1 + $0x8] sm:$0xff]   ;;  %128 = vmatprep.mubr.msk.bf16.mxu0 %vm138_vm1, %v137_v0  ;;  %17 = vst.msk [vmem:[#allocation2] sm:$0xff] %vm16_vm0, %v137_v0  ;;  %18 = vst.msk [vmem:[#allocation2 + $0x8] sm:$0xff] %vm16_vm0, %v137_v0  ;;  %v135_v2 = vld [vmem:[%s174_s1] sm:$0xff]  }
   0x2   :  { %125 = vmatpush3.bf16.msra.mxu0 %v134_v1  ;;  %v136_v3 = vld [vmem:[%s175_s0] sm:$0xff]  }
   0x3   :  { %126 = vmatprep.subr.bf16.mxu0 %v137_v0 }
   0x6   :  { %127 = vmatpush3.bf16.msra.mxu0 %v135_v2 }
   0x8   :  { %v19_v4 = vld [vmem:[#allocation2] sm:$0xff]  ;;  %v20_v8 = vld [vmem:[#allocation2 + $0x8] sm:$0xff] }
   0x9   :  { %129 = vmatmul.mubr.msk.bf16.vlgmr.msra.gmra.mxu0 %vm16_vm0, %v136_v3 }
  0xc9   :  { %v82_v5 = vpop.f32.mrf.mxu0 }
  0xca   :  { %v89_v6 = vadd.f32 %v82_v5, %v19_v4 }
  0xcb   :  { %v130_v7 = vpop.f32.mrf.mxu0 }
  0xcc   :  { %91 = vst.msk [vmem:[#allocation2] sm:$0xff] %vm16_vm0, %v89_v6 }
  0xcd   :  { %v85_v9 = vpop.f32.mrf.mxu0 }
  0xce   :  { %v90_v10 = vadd.f32 %v85_v9, %v20_v8 }
  0xcf   :  { %v131_v11 = vpop.f32.mrf.mxu0 }
  0xd0   :  { %92 = vst.msk [vmem:[#allocation2 + $0x8] sm:$0xff] %vm16_vm0, %v90_v10 }
  0xd3   :  { %v96_v12 = vld [vmem:[#allocation2] sm:$0xff] }
  0xd4   :  { %v119_v13 = vpack.c.bf16 %v96_v12, %v96_v12 }
  0xd6   :  { %107 = vst.msk [vmem:[%s176_s2] sm:$0xf] %vm106_vm2, %v119_v13 }
  0xd7   :  { %v97_v14 = vld [vmem:[#allocation2 + $0x8] sm:$0xff] }
  0xd8   :  { %v120_v15 = vpack.c.bf16 %v97_v14, %v97_v14 }
  0xda   :  { %108 = vst.msk [vmem:[%s176_s2 + $0x4] sm:$0xf] %vm106_vm2, %v120_v15 }

// kernel: transformer_forward.42
= control target key start
LH: loop header
LB: loop body
LE: loop exit
PB: predicated region body
PF: predicated region fallthrough
CT: control target
= control target key end

     0   :  { %s849_s9 = smov 0   ;;  %s935_s0 = inlined_call_operand.vmem [shape: bf16[2,8,32], index: 0, kind: input, shape index: {}]   ;;  %s936_s1 = inlined_call_operand.vmem [shape: bf16[2,8,64], index: 1, kind: input, shape index: {}]   ;;  %s937_s2 = inlined_call_operand.vmem [shape: bf16[2,8,32], index: 2, kind: output, shape index: {}]  }
   0x1 LB: > { %s692_s10 = sadd.s32 4294967295, %s820_s9   ;;  %p696_p0 = scmp.ge.s32.totalorder %s820_s9, 1  ;;  %s820_s9 = sphi %s849_s9, %s12_s9  }
   0x2   : > { %p120_p1 = scmp.lt.s32.totalorder %s820_s9, 3 }
   0x4   : > { %p121_p2 = pnand %p696_p0, %p120_p1 }
   0x5   : > { %p144_p3 = scmp.lt.s32.totalorder (!%p121_p2), %s692_s10, 1  ;;  %s824_s18 = smov (!%p121_p2), 96  }
   0x6   : > { %124 = sbr.rel (%p121_p2) target bundleno = 1377 (0x561), region = 28  ;;  %s825_s19 = smov (!%p121_p2), 120  }
   0x7   : > { %s826_s20 = smov (!%p121_p2), 112   ;;  %s827_s21 = smov (!%p121_p2), 104  }
   0x8   : > { %s828_s22 = smov (!%p121_p2), 88   ;;  %s829_s23 = smov (!%p121_p2), 72  }
   0x9   : > { %s830_s24 = smov (!%p121_p2), 80   ;;  %s831_s25 = smov (!%p121_p2), 8  }
   0xa   : > { %s832_s26 = smov (!%p121_p2), 16   ;;  %s833_s27 = smov (!%p121_p2), 24  }
   0xb   : > { %v822_v0 = vmov 0.0   ;;  %vm823_vm0 = vmmov 0   ;;  %s939_s10 = smov (!%p144_p3, %s692_s10), 1  ;;  %vm159_vm1 = vcmask 64512   ;;  %vm227_vm2 = vcmask 1043456  }
   0xc   : > { %728 = vmatprep.subr.bf16.mxu0 %v822_v0  ;;  %730 = vmatprep.mubr.msk.bf16.mxu0 %vm823_vm0, %v822_v0  ;;  %s863_s11 = sshll.u32 %s939_s10, 2  ;;  %vm620_vm3 = vcmask 130048   ;;  %vm622_vm4 = vcmask 195584   ;;  %vm625_vm5 = vcmask 257024  }
   0xd   : > { %734 = vmatprep.subr.bf16.mxu1 %v822_v0  ;;  %736 = vmatprep.mubr.msk.bf16.mxu1 %vm823_vm0, %v822_v0  ;;  %s151_s14 = scalar_lea.vmem %s936_s1, %s863_s11  ;;  %s147_s17 = scalar_lea.vmem %s935_s0, %s863_s11 }
   0xe   : > { %v158_v1 = vld [vmem:[%s151_s14] sm:$0xf]  ;;  %s155_s30 = scalar_lea.vmem %s937_s2, %s863_s11 }
   0xf   : > { %v164_v2 = vsel %vm159_vm1, %v158_v1, 0  ;;  %v157_v3 = vld [vmem:[%s147_s17] sm:$0xf]  ;;  %v879_v10 = vcombine.low %v158_v1, %v158_v1 }
  0x10   : > { %729 = vmatpush3.bf16.xpose.msra.mxu0 %v164_v2  ;;  %v703_v11 = vcombine.low %v157_v3, %v157_v3 }
  0x11   : > { %746 = vmatprep.subr.bf16.mxu0 %v822_v0  ;;  %222 = vrot.lane.b32.xlu1 %v879_v10, %s824_s18 }
  0x15   : > { %276 = vrot.lane.b32.xlu1 %v879_v10, %s825_s19 }
  0x17   : > { %731 = vmatmul.mubr.msk.bf16.vlgmr.msra.gmra.mxu0 %vm159_vm1, %v157_v3 }
  0x18   : > { %748 = vmatprep.mubr.msk.bf16.mxu0 %vm823_vm0, %v822_v0 }
  0x19   : > { %387 = vrot.lane.b32.xlu1 %v879_v10, %s826_s20 }
  0x1d   : > { %385 = vrot.lane.b32.xlu1 %v703_v11, %s826_s20 }
  0x21   : > { %498 = vrot.lane.b32.xlu1 %v879_v10, %s827_s21 }
  0x25   : > { %496 = vrot.lane.b32.xlu1 %v703_v11, %s827_s21 }
  0x83   : > { %v223_v17 = vpop.permute.xlu1 %222 }
  0x84   : > { %v229_v18 = vsel %vm227_vm2, %v223_v17, 0 }
  0x85   : > { %735 = vmatpush3.bf16.msra.mxu1 %v229_v18 }
  0x86   : > { %740 = vmatprep.subr.bf16.mxu1 %v822_v0 }
  0x87   : > { %v277_v21 = vpop.permute.xlu1 %276 }
  0x88   : > { %v282_v23 = vsel %vm159_vm1, %v277_v21, 0 }
  0x8b   : > { %v388_v25 = vpop.permute.xlu1 %387 }
  0x8c   : > { %v393_v28 = vsel %vm159_vm1, %v388_v25, 0 }
  0x8f   : > { %v386_v27 = vpop.permute.xlu1 %385 }
  0x93   : > { %v499_v29 = vpop.permute.xlu1 %498 }
  0x94   : > { %v504_v30 = vsel %vm159_vm1, %v499_v29, 0 }
  0x97   : > { %v497_v31 = vpop.permute.xlu1 %496 }
  0xd7   : > { %v200_v4 = vpop.f32.mrf.mxu0 }
  0xd8   : > { %v206_v5 = vmul.f32 0.35355338, %v200_v4 }
  0xd9   : > { %v732_v6 = vpop.f32.mrf.mxu0 }
  0xda   : > { %v207_v7 = vsel %vm159_vm1, %v206_v5, -inf }
  0xdb   : > { %208 = vmax.xlane.f32.xlu0 %v207_v7  ;;  %v203_v8 = vpop.f32.mrf.mxu0 }
  0xdd   : > { %v733_v9 = vpop.f32.mrf.mxu0 }
 0x164   : > { %v209_v12 = vpop.xlane.xlu0 %208 }
 0x165   : > { %v210_v13 = vsub.f32 %v206_v5, %v209_v12 }
 0x167   : > { %v211_v14 = vmul.f32 1.442695, %v210_v13 }
 0x169   : > { %798 = vpow2.f32 %v211_v14 }
 0x176   : > { %v799_v15 = vpop.eup %798 }
 0x177   : > { %v213_v16 = vsel %vm159_vm1, %v799_v15, 0.0 }
 0x178   : > { %214 = vadd.xlane.f32.xlu0 %v213_v16 }
 0x18e   : > { %274 = vrot.lane.b32.xlu0 %v703_v11, %s825_s19 }
 0x201   : > { %v215_v19 = vpop.xlane.xlu0 %214 }
 0x202   : > { %800 = vrcp.f32 %v215_v19 }
 0x205   : > { %v275_v26 = vpop.permute.xlu0 %274 }
 0x20f   : > { %v801_v20 = vpop.eup %800 }
 0x210   : > { %v217_v22 = vmul.f32 %v801_v20, %v799_v15 }
 0x212   : > { %v218_v24 = vpack.c.bf16 %v217_v22, %v217_v22 }
 0x214   : > { %737 = vmatmul.mubr.msk.bf16.vlgmr.msra.gmra.mxu1 %vm159_vm1, %v218_v24 }
 0x215   : > { %741 = vmatpush3.bf16.xpose.msra.mxu1 %v282_v23  ;;  %742 = vmatprep.mubr.msk.bf16.mxu1 %vm823_vm0, %v822_v0 }
 0x216   : > { %752 = vmatprep.subr.bf16.mxu1 %v822_v0 }
 0x21c   : > { %743 = vmatmul.mubr.msk.bf16.vlgmr.msra.gmra.mxu1 %vm159_vm1, %v275_v26 }
 0x21d   : > { %753 = vmatpush3.bf16.xpose.msra.mxu1 %v393_v28  ;;  %754 = vmatprep.mubr.msk.bf16.mxu1 %vm823_vm0, %v822_v0 }
 0x21e   : > { %764 = vmatprep.subr.bf16.mxu1 %v822_v0 }
 0x224   : > { %755 = vmatmul.mubr.msk.bf16.vlgmr.msra.gmra.mxu1 %vm159_vm1, %v386_v27 }
 0x225   : > { %765 = vmatpush3.bf16.xpose.msra.mxu1 %v504_v30  ;;  %766 = vmatprep.mubr.msk.bf16.mxu1 %vm823_vm0, %v822_v0 }
 0x22c   : > { %767 = vmatmul.mubr.msk.bf16.vlgmr.msra.gmra.mxu1 %vm159_vm1, %v497_v31 }
 0x2d4   : > { %v903_v32 = vpop.f32.mrf.mxu1 }
 0x2d6   : > { %v738_v33 = vpop.f32.mrf.mxu1 }
 0x2d8   : > { %v268_v34 = vpop.f32.mrf.mxu1 }
 0x2da   : > { %v739_v35 = vpop.f32.mrf.mxu1 }
 0x2dc   : > { %v318_v36 = vpop.f32.mrf.mxu1 }
 0x2dd   : > { %v324_v37 = vmul.f32 0.35355338, %v318_v36 }
 0x2de   : > { %v744_v38 = vpop.f32.mrf.mxu1 }
 0x2df   : > { %v325_v39 = vsel %vm159_vm1, %v324_v37, -inf }
 0x2e0   : > { %326 = vmax.xlane.f32.xlu1 %v325_v39  ;;  %v321_v40 = vpop.f32.mrf.mxu1 }
 0x2e2   : > { %v745_v41 = vpop.f32.mrf.mxu1 }
 0x2e4   : > { %v429_v42 = vpop.f32.mrf.mxu1 }
 0x2e5   : > { %v435_v43 = vmul.f32 0.35355338, %v429_v42 }
 0x2e6   : > { %v756_v44 = vpop.f32.mrf.mxu1 }
 0x2e7   : > { %v436_v45 = vsel %vm159_vm1, %v435_v43, -inf }
 0x2e8   : > { %437 = vmax.xlane.f32.xlu0 %v436_v45  ;;  %v432_v46 = vpop.f32.mrf.mxu1 }
 0x2ea   : > { %v757_v47 = vpop.f32.mrf.mxu1 }
 0x2ec   : > { %v540_v48 = vpop.f32.mrf.mxu1 }
 0x2ed   : > { %v546_v49 = vmul.f32 0.35355338, %v540_v48 }
 0x2ee   : > { %v768_v50 = vpop.f32.mrf.mxu1 }
 0x2ef   : > { %v547_v51 = vsel %vm159_vm1, %v546_v49, -inf }
 0x2f0   : > { %548 = vmax.xlane.f32.xlu1 %v547_v51  ;;  %v543_v52 = vpop.f32.mrf.mxu1 }
 0x2f2   : > { %v769_v53 = vpop.f32.mrf.mxu1 }
 0x301   : > { %337 = vrot.lane.b32.xlu1 %v879_v10, %s828_s22 }
 0x369   : > { %v327_v54 = vpop.xlane.xlu1 %326 }
 0x36a   : > { %v328_v55 = vsub.f32 %v324_v37, %v327_v54 }
 0x36c   : > { %v329_v56 = vmul.f32 1.442695, %v328_v55 }
 0x36e   : > { %802 = vpow2.f32 %v329_v56 }
 0x371   : > { %v438_v57 = vpop.xlane.xlu0 %437 }
 0x372   : > { %v439_v58 = vsub.f32 %v435_v43, %v438_v57 }
 0x374   : > { %v440_v59 = vmul.f32 1.442695, %v439_v58 }
 0x376   : > { %804 = vpow2.f32 %v440_v59 }
 0x379   : > { %v549_v60 = vpop.xlane.xlu1 %548 }
 0x37a   : > { %v550_v61 = vsub.f32 %v546_v49, %v549_v60 }
 0x37b   : > { %v803_v62 = vpop.eup %802 }
 0x37c   : > { %v551_v63 = vmul.f32 1.442695, %v550_v61  ;;  %v331_v1 = vsel %vm159_vm1, %v803_v62, 0.0 }
 0x37d   : > { %332 = vadd.xlane.f32.xlu0 %v331_v1  ;;  %v338_v2 = vpop.permute.xlu1 %337 }
 0x37e   : > { %806 = vpow2.f32 %v551_v63  ;;  %v343_v3 = vsel %vm227_vm2, %v338_v2, 0 }
 0x37f   : > { %747 = vmatpush3.bf16.msra.mxu0 %v343_v3 }
 0x380   : > { %758 = vmatprep.subr.bf16.mxu0 %v822_v0 }
 0x383   : > { %v805_v4 = vpop.eup %804 }
 0x384   : > { %v442_v5 = vsel %vm159_vm1, %v805_v4, 0.0 }
 0x385   : > { %443 = vadd.xlane.f32.xlu1 %v442_v5 }
 0x38b   : > { %v807_v6 = vpop.eup %806 }
 0x38c   : > { %v553_v7 = vsel %vm159_vm1, %v807_v6, 0.0 }
 0x38d   : > { %554 = vadd.xlane.f32.xlu0 %v553_v7 }
 0x396   : > { %559 = vrot.lane.b32.xlu1 %v879_v10, %s829_s23 }
 0x3a3   : > { %448 = vrot.lane.b32.xlu0 %v879_v10, %s830_s24 }
 0x406   : > { %v333_v8 = vpop.xlane.xlu0 %332 }
 0x407   : > { %808 = vrcp.f32 %v333_v8 }
 0x40e   : > { %v444_v9 = vpop.xlane.xlu1 %443 }
 0x40f   : > { %810 = vrcp.f32 %v444_v9 }
 0x412   : > { %v560_v10 = vpop.permute.xlu1 %559 }
 0x413   : > { %v565_v20 = vsel %vm227_vm2, %v560_v10, 0 }
 0x414   : > { %v809_v11 = vpop.eup %808 }
 0x415   : > { %v335_v12 = vmul.f32 %v809_v11, %v803_v62 }
 0x416   : > { %v555_v13 = vpop.xlane.xlu0 %554 }
 0x417   : > { %812 = vrcp.f32 %v555_v13  ;;  %v336_v14 = vpack.c.bf16 %v335_v12, %v335_v12 }
 0x419   : > { %749 = vmatmul.mubr.msk.bf16.vlgmr.msra.gmra.mxu0 %vm159_vm1, %v336_v14 }
 0x41a   : > { %v449_v15 = vpop.permute.xlu0 %448  ;;  %760 = vmatprep.mubr.msk.bf16.mxu0 %vm823_vm0, %v822_v0 }
 0x41b   : > { %v454_v16 = vsel %vm227_vm2, %v449_v15, 0 }
 0x41c   : > { %v811_v17 = vpop.eup %810  ;;  %759 = vmatpush3.bf16.msra.mxu0 %v454_v16 }
 0x41d   : > { %v446_v18 = vmul.f32 %v811_v17, %v805_v4  ;;  %770 = vmatprep.subr.bf16.mxu0 %v822_v0 }
 0x41f   : > { %v447_v19 = vpack.c.bf16 %v446_v18, %v446_v18 }
 0x421   : > { %761 = vmatmul.mubr.msk.bf16.vlgmr.msra.gmra.mxu0 %vm159_vm1, %v447_v19 }
 0x422   : > { %771 = vmatpush3.bf16.msra.mxu0 %v565_v20  ;;  %772 = vmatprep.mubr.msk.bf16.mxu0 %vm823_vm0, %v822_v0 }
 0x424   : > { %v813_v21 = vpop.eup %812 }
 0x425   : > { %v557_v22 = vmul.f32 %v813_v21, %v807_v6 }
 0x427   : > { %v558_v23 = vpack.c.bf16 %v557_v22, %v557_v22 }
 0x429   : > { %773 = vmatmul.mubr.msk.bf16.vlgmr.msra.gmra.mxu0 %vm159_vm1, %v558_v23 }
 0x4d9   : > { %v379_v24 = vpop.f32.mrf.mxu0 }
 0x4da   : > { %608 = vrot.lane.b32.xlu1 %v379_v24, %s831_s25 }
 0x4db   : > { %v750_v25 = vpop.f32.mrf.mxu0 }
 0x4dd   : > { %v382_v26 = vpop.f32.mrf.mxu0 }
 0x4df   : > { %v751_v27 = vpop.f32.mrf.mxu0 }
 0x4e1   : > { %v490_v28 = vpop.f32.mrf.mxu0 }
 0x4e2   : > { %612 = vrot.lane.b32.xlu0 %v490_v28, %s832_s26 }
 0x4e3   : > { %v762_v29 = vpop.f32.mrf.mxu0 }
 0x4e5   : > { %v493_v30 = vpop.f32.mrf.mxu0 }
 0x4e7   : > { %v763_v31 = vpop.f32.mrf.mxu0 }
 0x4e9   : > { %v601_v33 = vpop.f32.mrf.mxu0 }
 0x4ea   : > { %616 = vrot.lane.b32.xlu1 %v601_v33, %s833_s27 }
 0x4eb   : > { %v774_v0 = vpop.f32.mrf.mxu0 }
 0x4ed   : > { %v604_v34 = vpop.f32.mrf.mxu0 }
 0x4ef   : > { %v775_v35 = vpop.f32.mrf.mxu0 }
 0x54c   : > { %v609_v36 = vpop.permute.xlu1 %608 }
 0x54d   : > { %v619_v38 = vsel %vm159_vm1, %v903_v32, %v609_v36 }
 0x554   : > { %v613_v37 = vpop.permute.xlu0 %612 }
 0x555   : > { %v621_v39 = vsel %vm620_vm3, %v619_v38, %v613_v37 }
 0x55c   : > { %v617_v40 = vpop.permute.xlu1 %616 }
 0x55d   : > { %v623_v41 = vsel %vm622_vm4, %v621_v39, %v617_v40 }
 0x55e   : > { %v624_v42 = vpack.c.bf16 %v623_v41, %v623_v41 }
 0x560   : > { %626 = vst.msk [vmem:[%s155_s30] sm:$0xf] %vm625_vm5, %v624_v42 }
 0x561 PF: > { %s12_s9 = sadd.s32 1, %s820_s9  }
 0x562   : > { %p9_p4 = scmp.ge.s32.totalorder %s12_s9, 4  }
 0x564   :  { %11 = sbr.rel (!%p9_p4) target bundleno = 1 (0x1), region = 61 }

// kernel: transformer_forward.53
= control target key start
LH: loop header
LB: loop body
LE: loop exit
PB: predicated region body
PF: predicated region fallthrough
CT: control target
= control target key end

     0   :  { %v163_v1 = vmov 0.0   ;;  %vm164_vm0 = vmmov 0   ;;  %vm17_vm1 = vcmask 326656   ;;  %s201_s0 = inlined_call_operand.vmem [shape: bf16[16,32], index: 0, kind: input, shape index: {}]   ;;  %s202_s1 = inlined_call_operand.vmem [shape: bf16[32,40], index: 1, kind: input, shape index: {}]   ;;  %s203_s2 = inlined_call_operand.hbm [shape: f32[16,40], index: 2, kind: output, shape index: {}]  }
   0x1   :  { %v138_v0 = vld [vmem:[%s202_s1 + $0x8] sm:$0xff]   ;;  %125 = vmatprep.subr.bf16.mxu0 %v163_v1  ;;  %v139_v2 = vld [vmem:[%s202_s1] sm:$0xff]   ;;  %129 = vmatprep.mubr.msk.bf16.mxu0 %vm164_vm0, %v163_v1 }
   0x2   :  { %126 = vmatpush3.bf16.msra.mxu0 %v138_v0 }
   0x3   :  { %127 = vmatprep.subr.bf16.mxu0 %v163_v1 }
   0x4   :  { %7 = vsyncpa [#allocation4], 0  ;;  %18 = vst.msk [vmem:[#allocation2] sm:$0xff] %vm17_vm1, %v163_v1  ;;  %v140_v3 = vld [vmem:[%s201_s0] sm:$0xff]   ;;  %vm45_vm2 = vcmask 261120   ;;  %s165_s1 = smov [#allocation3]  }
   0x5   :  { %19 = vst.msk [vmem:[#allocation2 + $0x8] sm:$0xff] %vm17_vm1, %v163_v1  ;;  %s107_s15 = sshll.u32 %s165_s1, 4  ;;  %s108_s15 = int_to_ptr.vmem [resolvable:$true] %s107_s15 }
   0x6   :  { %128 = vmatpush3.bf16.msra.mxu0 %v139_v2  ;;  %s141_s0 = scalar_lea.vmem %s108_s15, 256  ;;  %p146_p1 = scmp.lt.s32.totalorder %s108_s15, %s108_s15 }
   0x7   :  { %p142_p0 = scmp.ne.s32.totalorder %s108_s15, %s141_s0  ;;  %p147_p2 = scmp.lt.s32.totalorder %s141_s0, %s141_s0 }
   0x9   :  { %130 = vmatmul.mubr.msk.bf16.vlgmr.msra.gmra.mxu0 %vm45_vm2, %v140_v3  ;;  %p148_p3 = por %p147_p2, %p146_p1 }
   0xb   :  { %v20_v4 = vld [vmem:[#allocation2] sm:$0xff]  ;;  %p149_p4 = pnand %p148_p3, %p142_p0 }
   0xc   :  { %v21_v8 = vld [vmem:[#allocation2 + $0x8] sm:$0xff] }
  0xc9   :  { %v83_v5 = vpop.f32.mrf.mxu0 }
  0xca   :  { %v90_v6 = vadd.f32 %v83_v5, %v20_v4 }
  0xcb   :  { %v131_v7 = vpop.f32.mrf.mxu0 }
  0xcc   :  { %93 = vst.msk [vmem:[#allocation2] sm:$0xff] %vm17_vm1, %v90_v6 }
  0xcd   :  { %v86_v9 = vpop.f32.mrf.mxu0 }
  0xce   :  { %v91_v10 = vadd.f32 %v86_v9, %v21_v8 }
  0xcf   :  { %v132_v11 = vpop.f32.mrf.mxu0 }
  0xd0   :  { %94 = vst.msk [vmem:[#allocation2 + $0x8] sm:$0xff] %vm17_vm1, %v91_v10 }
  0xd3   :  { %v98_v12 = vld [vmem:[#allocation2] sm:$0xff] }
  0xd4   :  { %100 = vst.msk [vmem:[#allocation3] sm:$0xff] %vm17_vm1, %v98_v12 }
  0xd7   :  { %v99_v13 = vld [vmem:[#allocation2 + $0x8] sm:$0xff] }
  0xd8   :  { %101 = vst.msk [vmem:[#allocation3 + $0x8] sm:$0xff] %vm17_vm1, %v99_v13 }
  0xd9   :  { %152 = shalt.err (!%p149_p4)
}
  0xda   :  { %s166_s16 = smov 128   ;;  %s167_s17 = smov 8  }
  0xdb   :  { %113 = dma.vmem_to_hbm [thread:$0]  %s108_s15, 256, %s203_s2, [#allocation4], %s166_s16, %s166_s16, %s167_s17  }
  0xdc   :  { %161 = dma.done.wait [#allocation4], 256  }
  0xdd   :  { %162 = vsyncadd [#allocation4], 4294967040 }
  0xde   :  { %117 = vsyncpa [#allocation4], 1 }

// kernel: transformer_forward.31
= control target key start
LH: loop header
LB: loop body
LE: loop exit
PB: predicated region body
PF: predicated region fallthrough
CT: control target
= control target key end

     0   :  { %v2617_v3 = vmov 0   ;;  %vm310_vm0 = vcmask 261120   ;;  %vm2122_vm1 = vcmask 257024   ;;  %s3293_s1 = inlined_call_operand.vmem [shape: bf16[32,2048], index: 1, kind: input, shape index: {}]   ;;  %s3294_s0 = inlined_call_operand.vmem [shape: bf16[16,32], index: 0, kind: input, shape index: {}]   ;;  %s3295_s3 = inlined_call_operand.vmem [shape: bf16[2048,32], index: 3, kind: input, shape index: {}]   ;;  %s3296_s2 = inlined_call_operand.vmem [shape: f32[1,2048], index: 2, kind: input, shape index: {}]   ;;  %s3297_s4 = inlined_call_operand.vmem [shape: f32[1,32], index: 4, kind: input, shape index: {}]   ;;  %s3298_s5 = inlined_call_operand.vmem [shape: f32[1,32], index: 5, kind: input, shape index: {}]   ;;  %s3299_s6 = inlined_call_operand.vmem [shape: f32[1,32], index: 6, kind: input, shape index: {}]   ;;  %s3300_s7 = inlined_call_operand.vmem [shape: bf16[16,32], index: 7, kind: output, shape index: {}]  }
   0x1   :  { %v45_v0 = vld [vmem:[%s3293_s1 + $0x80] sm:$0xff]  ;;  %v46_v2 = vld [vmem:[%s3293_s1 + $0x88] sm:$0xff]  ;;  %346 = vmatprep.mubr.bf16.mxu0 %v2617_v3  ;;  %389 = vmatprep.mubr.bf16.mxu1 %v2617_v3  ;;  %v47_v15 = vld [vmem:[%s3293_s1 + $0x90] sm:$0xff] }
   0x2   :  { %v53_v1 = vld [vmem:[%s3293_s1 + $0xc0] sm:$0xff]  ;;  %v54_v5 = vld [vmem:[%s3293_s1 + $0xc8] sm:$0xff]  ;;  %v55_v16 = vld [vmem:[%s3293_s1 + $0xd0] sm:$0xff] }
   0x3   :  { %v2147_v4 = vcombine.high %v45_v0, %v53_v1  ;;  %v2146_v6 = vcombine.low %v45_v0, %v53_v1  ;;  %v29_v7 = vld [vmem:[%s3293_s1] sm:$0xff]  ;;  %v2149_v9 = vcombine.high %v46_v2, %v54_v5  ;;  %v2148_v10 = vcombine.low %v46_v2, %v54_v5  ;;  %v30_v12 = vld [vmem:[%s3293_s1 + $0x8] sm:$0xff]  ;;  %v48_v17 = vld [vmem:[%s3293_s1 + $0x98] sm:$0xff] }
   0x4   :  { %v37_v8 = vld [vmem:[%s3293_s1 + $0x40] sm:$0xff]  ;;  %v38_v13 = vld [vmem:[%s3293_s1 + $0x48] sm:$0xff]  ;;  %v56_v20 = vld [vmem:[%s3293_s1 + $0xd8] sm:$0xff]  ;;  %v2151_v22 = vcombine.high %v47_v15, %v55_v16  ;;  %v2150_v28 = vcombine.low %v47_v15, %v55_v16 }
   0x5   :  { %v2131_v11 = vcombine.high %v29_v7, %v37_v8  ;;  %326 = vmatprep.subr.bf16.mxu0 %v2147_v4  ;;  %v2133_v14 = vcombine.high %v30_v12, %v38_v13  ;;  %369 = vmatprep.subr.bf16.mxu1 %v2149_v9  ;;  %v2130_v18 = vcombine.low %v29_v7, %v37_v8  ;;  %v2696_v19 = vld [vmem:[%s3294_s0] sm:$0xff]   ;;  %v31_v24 = vld [vmem:[%s3293_s1 + $0x10] sm:$0xff]  ;;  %v32_v26 = vld [vmem:[%s3293_s1 + $0x18] sm:$0xff] }
   0x6   :  { %327 = vmatpush1.bf16.msra.mxu0 %v2146_v6  ;;  %370 = vmatpush1.bf16.msra.mxu1 %v2148_v10  ;;  %v2132_v21 = vcombine.low %v30_v12, %v38_v13  ;;  %v2153_v23 = vcombine.high %v48_v17, %v56_v20  ;;  %v39_v25 = vld [vmem:[%s3293_s1 + $0x50] sm:$0xff]  ;;  %v40_v27 = vld [vmem:[%s3293_s1 + $0x58] sm:$0xff]  ;;  %v2152_v29 = vcombine.low %v48_v17, %v56_v20  ;;  %v49_v32 = vld [vmem:[%s3293_s1 + $0xa0] sm:$0xff] }
   0x7   :  { %328 = vmatprep.subr.bf16.mxu0 %v2131_v11  ;;  %371 = vmatprep.subr.bf16.mxu1 %v2133_v14  ;;  %v2135_v30 = vcombine.high %v31_v24, %v39_v25  ;;  %v2137_v31 = vcombine.high %v32_v26, %v40_v27  ;;  %v57_v33 = vld [vmem:[%s3293_s1 + $0xe0] sm:$0xff]  ;;  %v50_v34 = vld [vmem:[%s3293_s1 + $0xa8] sm:$0xff]  ;;  %v2134_v36 = vcombine.low %v31_v24, %v39_v25  ;;  %v51_v45 = vld [vmem:[%s3293_s1 + $0xb0] sm:$0xff] }
   0x8   :  { %v58_v35 = vld [vmem:[%s3293_s1 + $0xe8] sm:$0xff]  ;;  %v33_v37 = vld [vmem:[%s3293_s1 + $0x20] sm:$0xff]  ;;  %v2136_v38 = vcombine.low %v32_v26, %v40_v27  ;;  %v2155_v39 = vcombine.high %v49_v32, %v57_v33  ;;  %v2154_v44 = vcombine.low %v49_v32, %v57_v33  ;;  %v59_v48 = vld [vmem:[%s3293_s1 + $0xf0] sm:$0xff] }
   0x9   :  { %v41_v40 = vld [vmem:[%s3293_s1 + $0x60] sm:$0xff]  ;;  %v2157_v41 = vcombine.high %v50_v34, %v58_v35  ;;  %v34_v42 = vld [vmem:[%s3293_s1 + $0x28] sm:$0xff]  ;;  %v2156_v46 = vcombine.low %v50_v34, %v58_v35  ;;  %v52_v50 = vld [vmem:[%s3293_s1 + $0xb8] sm:$0xff]  ;;  %v2159_v55 = vcombine.high %v51_v45, %v59_v48  ;;  %v2158_v60 = vcombine.low %v51_v45, %v59_v48 }
   0xa   :  { %329 = vmatpush1.bf16.msra.mxu0 %v2130_v18  ;;  %372 = vmatpush1.bf16.msra.mxu1 %v2132_v21  ;;  %v42_v43 = vld [vmem:[%s3293_s1 + $0x68] sm:$0xff]  ;;  %v2139_v47 = vcombine.high %v33_v37, %v41_v40  ;;  %v60_v51 = vld [vmem:[%s3293_s1 + $0xf8] sm:$0xff]  ;;  %v2138_v52 = vcombine.low %v33_v37, %v41_v40  ;;  %v35_v53 = vld [vmem:[%s3293_s1 + $0x30] sm:$0xff] }
   0xb   :  { %412 = vmatprep.subr.bf16.mxu0 %v2151_v22  ;;  %455 = vmatprep.subr.bf16.mxu1 %v2153_v23  ;;  %v2141_v49 = vcombine.high %v34_v42, %v42_v43  ;;  %v2140_v54 = vcombine.low %v34_v42, %v42_v43  ;;  %v43_v56 = vld [vmem:[%s3293_s1 + $0x70] sm:$0xff]  ;;  %v2161_v57 = vcombine.high %v52_v50, %v60_v51  ;;  %v36_v58 = vld [vmem:[%s3293_s1 + $0x38] sm:$0xff]  ;;  %v2491_v10 = vld [vmem:[%s3295_s3 + $0x68] sm:$0xff]  }
   0xc   :  { %v44_v59 = vld [vmem:[%s3293_s1 + $0x78] sm:$0xff]  ;;  %v2160_v61 = vcombine.low %v52_v50, %v60_v51  ;;  %v2143_v62 = vcombine.high %v35_v53, %v43_v56  ;;  %v2142_v0 = vcombine.low %v35_v53, %v43_v56  ;;  %v2487_v7 = vld [vmem:[%s3295_s3 + $0x70] sm:$0xff]   ;;  %v2492_v11 = vld [vmem:[%s3295_s3 + $0xe8] sm:$0xff]  }
   0xd   :  { %2162 = vmatmul.mubr.msk.bf16.vlgmr.msra.gmra.mxu0 %vm310_vm0, %v2696_v19  ;;  %2163 = vmatmul.mubr.msk.bf16.vlgmr.msra.gmra.mxu1 %vm310_vm0, %v2696_v19  ;;  %v2145_v63 = vcombine.high %v36_v58, %v44_v59  ;;  %v2483_v1 = vld [vmem:[%s3295_s3 + $0x78] sm:$0xff]   ;;  %v2144_v2 = vcombine.low %v36_v58, %v44_v59  ;;  %v2488_v8 = vld [vmem:[%s3295_s3 + $0xf0] sm:$0xff]   ;;  %v2493_v12 = vld [vmem:[%s3295_s3 + $0x28] sm:$0xff]  }
   0xe   :  { %413 = vmatpush1.bf16.msra.mxu0 %v2150_v28  ;;  %456 = vmatpush1.bf16.msra.mxu1 %v2152_v29  ;;  %v2484_v4 = vld [vmem:[%s3295_s3 + $0xf8] sm:$0xff]   ;;  %v2490_v9 = vld [vmem:[%s3295_s3 + $0xb0] sm:$0xff]   ;;  %v2494_v13 = vld [vmem:[%s3295_s3 + $0xa8] sm:$0xff]  }
   0xf   :  { %414 = vmatprep.subr.bf16.mxu0 %v2135_v30  ;;  %457 = vmatprep.subr.bf16.mxu1 %v2137_v31  ;;  %v2485_v5 = vld [vmem:[%s3295_s3 + $0x38] sm:$0xff]   ;;  %v2495_v14 = vld [vmem:[%s3295_s3 + $0x60] sm:$0xff]   ;;  %v2503_v22 = vld [vmem:[%s3295_s3 + $0x50] sm:$0xff]  }
  0x10   :  { %432 = vmatprep.mubr.bf16.mxu0 %v2617_v3  ;;  %475 = vmatprep.mubr.bf16.mxu1 %v2617_v3  ;;  %v2486_v6 = vld [vmem:[%s3295_s3 + $0xb8] sm:$0xff]   ;;  %v2496_v15 = vld [vmem:[%s3295_s3 + $0xe0] sm:$0xff]   ;;  %v2504_v23 = vld [vmem:[%s3295_s3 + $0xd0] sm:$0xff]  }
  0x11   :  { %v2497_v16 = vld [vmem:[%s3295_s3 + $0x20] sm:$0xff]   ;;  %v2499_v18 = vld [vmem:[%s3295_s3 + $0x58] sm:$0xff]   ;;  %v2505_v24 = vld [vmem:[%s3295_s3 + $0x10] sm:$0xff]  }
  0x12   :  { %415 = vmatpush1.bf16.msra.mxu0 %v2134_v36  ;;  %458 = vmatpush1.bf16.msra.mxu1 %v2136_v38  ;;  %v2498_v17 = vld [vmem:[%s3295_s3 + $0xa0] sm:$0xff]   ;;  %v2501_v20 = vld [vmem:[%s3295_s3 + $0x18] sm:$0xff]   ;;  %v2506_v25 = vld [vmem:[%s3295_s3 + $0x90] sm:$0xff]   ;;  %v65_v36 = vlaneseq }
  0x13   :  { %498 = vmatprep.subr.bf16.mxu0 %v2155_v39  ;;  %541 = vmatprep.subr.bf16.mxu1 %v2157_v41  ;;  %v2502_v21 = vld [vmem:[%s3295_s3 + $0x98] sm:$0xff]   ;;  %v2507_v26 = vld [vmem:[%s3295_s3 + $0x48] sm:$0xff]   ;;  %v2511_v30 = vld [vmem:[%s3295_s3 + $0x40] sm:$0xff]  }
  0x14   :  { %v2508_v27 = vld [vmem:[%s3295_s3 + $0xc8] sm:$0xff]   ;;  %v2512_v31 = vld [vmem:[%s3295_s3 + $0xc0] sm:$0xff]   ;;  %v2515_v34 = vld [vmem:[%s3295_s3 + $0x178] sm:$0xff]   ;;  %v2885_v37 = vshrl.u32 %v65_v36, 7 }
  0x15   :  { %2164 = vmatmul.mubr.msk.bf16.vlgmr.msra.gmra.mxu0 %vm310_vm0, %v2696_v19  ;;  %2165 = vmatmul.mubr.msk.bf16.vlgmr.msra.gmra.mxu1 %vm310_vm0, %v2696_v19  ;;  %v2509_v28 = vld [vmem:[%s3295_s3 + $0x8] sm:$0xff]   ;;  %v2513_v32 = vld [vmem:[%s3295_s3] sm:$0xff]   ;;  %v2516_v35 = vld [vmem:[%s3295_s3 + $0x1f8] sm:$0xff]  }
  0x16   :  { %499 = vmatpush1.bf16.msra.mxu0 %v2154_v44  ;;  %542 = vmatpush1.bf16.msra.mxu1 %v2156_v46  ;;  %v2510_v29 = vld [vmem:[%s3295_s3 + $0x88] sm:$0xff]   ;;  %v2514_v33 = vld [vmem:[%s3295_s3 + $0x80] sm:$0xff]   ;;  %v71_v38 = vsub.s32 1, %v2885_v37  ;;  %v67_v39 = vsub.s32 0, %v2885_v37  ;;  %v79_v40 = vsub.s32 3, %v2885_v37  ;;  %v75_v42 = vsub.s32 2, %v2885_v37 }
  0x17   :  { %500 = vmatprep.subr.bf16.mxu0 %v2139_v47  ;;  %543 = vmatprep.subr.bf16.mxu1 %v2141_v49  ;;  %v2893_v41 = vld [vmem:[%s3296_s2] sm:$0xff]  ;;  %v87_v51 = vsub.s32 5, %v2885_v37  ;;  %v95_v53 = vsub.s32 7, %v2885_v37  ;;  %v2524_v36 = vld [vmem:[%s3295_s3 + $0x1e8] sm:$0xff]  }
  0x18   :  { %518 = vmatprep.mubr.bf16.mxu0 %v2617_v3  ;;  %561 = vmatprep.mubr.bf16.mxu1 %v2617_v3  ;;  %v72_v45 = vrot.slane %v2893_v41, %v71_v38  ;;  %v68_v46 = vrot.slane %v2893_v41, %v67_v39  ;;  %v80_v48 = vrot.slane %v2893_v41, %v79_v40 }
  0x19   :  { %v76_v49 = vrot.slane %v2893_v41, %v75_v42 }
  0x1a   :  { %501 = vmatpush1.bf16.msra.mxu0 %v2138_v52  ;;  %544 = vmatpush1.bf16.msra.mxu1 %v2140_v54 }
  0x1b   :  { %584 = vmatprep.subr.bf16.mxu0 %v2159_v55  ;;  %627 = vmatprep.subr.bf16.mxu1 %v2161_v57 }
  0x1d   :  { %2166 = vmatmul.mubr.msk.bf16.vlgmr.msra.gmra.mxu0 %vm310_vm0, %v2696_v19  ;;  %2167 = vmatmul.mubr.msk.bf16.vlgmr.msra.gmra.mxu1 %vm310_vm0, %v2696_v19 }
  0x1e   :  { %585 = vmatpush1.bf16.msra.mxu0 %v2158_v60  ;;  %628 = vmatpush1.bf16.msra.mxu1 %v2160_v61 }
  0x1f   :  { %586 = vmatprep.subr.bf16.mxu0 %v2143_v62  ;;  %629 = vmatprep.subr.bf16.mxu1 %v2145_v63 }
  0x20   :  { %604 = vmatprep.mubr.bf16.mxu0 %v2617_v3  ;;  %647 = vmatprep.mubr.bf16.mxu1 %v2617_v3  ;;  %v2489_v3 = vld [vmem:[%s3295_s3 + $0x30] sm:$0xff]  }
  0x22   :  { %587 = vmatpush1.bf16.msra.mxu0 %v2142_v0  ;;  %630 = vmatpush1.bf16.msra.mxu1 %v2144_v2  ;;  %v88_v0 = vrot.slane %v2893_v41, %v87_v51 }
  0x23   :  { %2305 = vmatprep.subr.bf16.mxu0 %v2483_v1  ;;  %2327 = vmatprep.subr.bf16.mxu1 %v2484_v4 }
  0x25   :  { %2168 = vmatmul.mubr.msk.bf16.vlgmr.msra.gmra.mxu0 %vm310_vm0, %v2696_v19  ;;  %2169 = vmatmul.mubr.msk.bf16.vlgmr.msra.gmra.mxu1 %vm310_vm0, %v2696_v19  ;;  %v2500_v19 = vld [vmem:[%s3295_s3 + $0xd8] sm:$0xff]  }
  0x26   :  { %2306 = vmatpush3.bf16.msra.mxu0 %v2485_v5  ;;  %2328 = vmatpush3.bf16.msra.mxu1 %v2486_v6  ;;  %v96_v5 = vrot.slane %v2893_v41, %v95_v53 }
  0x27   :  { %2307 = vmatprep.subr.bf16.mxu0 %v2487_v7  ;;  %2329 = vmatprep.subr.bf16.mxu1 %v2488_v8 }
  0x2a   :  { %2308 = vmatpush3.bf16.msra.mxu0 %v2489_v3  ;;  %2330 = vmatpush3.bf16.msra.mxu1 %v2490_v9 }
  0x2b   :  { %2309 = vmatprep.subr.bf16.mxu0 %v2491_v10  ;;  %2331 = vmatprep.subr.bf16.mxu1 %v2492_v11 }
  0x2e   :  { %2310 = vmatpush3.bf16.msra.mxu0 %v2493_v12  ;;  %2332 = vmatpush3.bf16.msra.mxu1 %v2494_v13 }
  0x2f   :  { %2311 = vmatprep.subr.bf16.mxu0 %v2495_v14  ;;  %2333 = vmatprep.subr.bf16.mxu1 %v2496_v15  ;;  %v2517_v15 = vld [vmem:[%s3295_s3 + $0x138] sm:$0xff]  }
  0x32   :  { %2312 = vmatpush3.bf16.msra.mxu0 %v2497_v16  ;;  %2334 = vmatpush3.bf16.msra.mxu1 %v2498_v17 }
  0x33   :  { %2313 = vmatprep.subr.bf16.mxu0 %v2499_v18  ;;  %2335 = vmatprep.subr.bf16.mxu1 %v2500_v19 }
  0x36   :  { %2314 = vmatpush3.bf16.msra.mxu0 %v2501_v20  ;;  %2336 = vmatpush3.bf16.msra.mxu1 %v2502_v21  ;;  %v2518_v20 = vld [vmem:[%s3295_s3 + $0x1b8] sm:$0xff]   ;;  %v2519_v21 = vld [vmem:[%s3295_s3 + $0x170] sm:$0xff]  }
  0x37   :  { %2315 = vmatprep.subr.bf16.mxu0 %v2503_v22  ;;  %2337 = vmatprep.subr.bf16.mxu1 %v2504_v23 }
  0x3a   :  { %2316 = vmatpush3.bf16.msra.mxu0 %v2505_v24  ;;  %2338 = vmatpush3.bf16.msra.mxu1 %v2506_v25  ;;  %v2520_v25 = vld [vmem:[%s3295_s3 + $0x1f0] sm:$0xff]  }
  0x3b   :  { %2317 = vmatprep.subr.bf16.mxu0 %v2507_v26  ;;  %2339 = vmatprep.subr.bf16.mxu1 %v2508_v27 }
  0x3e   :  { %2318 = vmatpush3.bf16.msra.mxu0 %v2509_v28  ;;  %2340 = vmatpush3.bf16.msra.mxu1 %v2510_v29  ;;  %v2521_v28 = vld [vmem:[%s3295_s3 + $0x130] sm:$0xff]  }
  0x3f   :  { %2319 = vmatprep.subr.bf16.mxu0 %v2511_v30  ;;  %2341 = vmatprep.subr.bf16.mxu1 %v2512_v31 }
  0x42   :  { %2320 = vmatpush3.bf16.msra.mxu0 %v2513_v32  ;;  %2342 = vmatpush3.bf16.msra.mxu1 %v2514_v33  ;;  %v2522_v32 = vld [vmem:[%s3295_s3 + $0x1b0] sm:$0xff]   ;;  %v2523_v33 = vld [vmem:[%s3295_s3 + $0x168] sm:$0xff]  }
  0x43   :  { %2349 = vmatprep.subr.bf16.mxu0 %v2515_v34  ;;  %2371 = vmatprep.subr.bf16.mxu1 %v2516_v35 }
  0xcd   :  { %v348_v43 = vpop.f32.mrf.mxu0  ;;  %v391_v44 = vpop.f32.mrf.mxu1 }
  0xce   :  { %v349_v57 = vadd.f32 %v348_v43, %v68_v46  ;;  %v392_v61 = vadd.f32 %v391_v44, %v76_v49 }
  0xcf   :  { %v350_v47 = vpop.f32.mrf.mxu0  ;;  %v393_v50 = vpop.f32.mrf.mxu1 }
  0xd0   :  { %v351_v54 = vadd.f32 %v350_v47, %v72_v45  ;;  %v394_v58 = vadd.f32 %v393_v50, %v80_v48  ;;  %v658_v9 = vmax.f32 %v349_v57, 0.0  ;;  %v660_v13 = vmax.f32 %v392_v61, 0.0  ;;  %v2526_v47 = vld [vmem:[%s3295_s3 + $0x1a8] sm:$0xff]   ;;  %v2528_v50 = vld [vmem:[%s3295_s3 + $0x1e0] sm:$0xff]   ;;  %v2531_v57 = vld [vmem:[%s3295_s3 + $0x158] sm:$0xff]  }
  0xd1   :  { %v352_v52 = vpop.f32.mrf.mxu0  ;;  %v395_v56 = vpop.f32.mrf.mxu1 }
  0xd2   :  { %v353_v55 = vadd.f32 %v352_v52, %v68_v46  ;;  %v396_v59 = vadd.f32 %v395_v56, %v76_v49  ;;  %v659_v6 = vmax.f32 %v351_v54, 0.0  ;;  %v661_v10 = vmax.f32 %v394_v58, 0.0  ;;  %v2529_v54 = vld [vmem:[%s3295_s3 + $0x120] sm:$0xff]   ;;  %v2532_v58 = vld [vmem:[%s3295_s3 + $0x1d8] sm:$0xff]  }
  0xd3   :  { %v354_v60 = vpop.f32.mrf.mxu0  ;;  %v397_v63 = vpop.f32.mrf.mxu1  ;;  %v2530_v56 = vld [vmem:[%s3295_s3 + $0x1a0] sm:$0xff]  }
  0xd4   :  { %v355_v62 = vadd.f32 %v354_v60, %v72_v45  ;;  %v674_v1 = vmax.f32 %v353_v55, 0.0  ;;  %v398_v2 = vadd.f32 %v397_v63, %v80_v48  ;;  %v676_v7 = vmax.f32 %v396_v59, 0.0  ;;  %v2525_v45 = vld [vmem:[%s3295_s3 + $0x128] sm:$0xff]   ;;  %v2527_v48 = vld [vmem:[%s3295_s3 + $0x160] sm:$0xff]   ;;  %v2533_v60 = vld [vmem:[%s3295_s3 + $0x118] sm:$0xff]  }
  0xd5   :  { %v2913_v4 = vpop.f32.mrf.mxu0  ;;  %v2918_v3 = vpop.f32.mrf.mxu1  ;;  %v2534_v63 = vld [vmem:[%s3295_s3 + $0x198] sm:$0xff]  }
  0xd6   :  { %v675_v8 = vmax.f32 %v355_v62, 0.0  ;;  %v677_v11 = vmax.f32 %v398_v2, 0.0  ;;  %v690_v18 = vpack.c.bf16 %v674_v1, %v658_v9  ;;  %v692_v24 = vpack.c.bf16 %v676_v7, %v660_v13  ;;  %v2536_v2 = vld [vmem:[%s3295_s3 + $0x1d0] sm:$0xff]   ;;  %v2540_v13 = vld [vmem:[%s3295_s3 + $0x1c8] sm:$0xff]  }
  0xd7   :  { %v436_v12 = vpop.f32.mrf.mxu0  ;;  %v479_v17 = vpop.f32.mrf.mxu1  ;;  %v83_v62 = vsub.s32 4, %v2885_v37  ;;  %v91_v1 = vsub.s32 6, %v2885_v37  ;;  %v2537_v7 = vld [vmem:[%s3295_s3 + $0x110] sm:$0xff]   ;;  %v2606_v37 = vld [vmem:[%s3295_s3 + $0x388] sm:$0xff]  }
  0xd8   :  { %v691_v14 = vpack.c.bf16 %v675_v8, %v659_v6  ;;  %v437_v16 = vadd.f32 %v436_v12, %v88_v0  ;;  %v693_v19 = vpack.c.bf16 %v677_v11, %v661_v10  ;;  %v480_v23 = vadd.f32 %v479_v17, %v96_v5  ;;  %v2538_v10 = vld [vmem:[%s3295_s3 + $0x190] sm:$0xff]   ;;  %v2539_v11 = vld [vmem:[%s3295_s3 + $0x148] sm:$0xff]  }
  0xd9   :  { %v2929_v22 = vpop.f32.mrf.mxu0  ;;  %v2934_v26 = vpop.f32.mrf.mxu1  ;;  %v84_v9 = vrot.slane %v2893_v41, %v83_v62  ;;  %v92_v12 = vrot.slane %v2893_v41, %v91_v1  ;;  %v2541_v17 = vld [vmem:[%s3295_s3 + $0x108] sm:$0xff]  }
  0xda   :  { %1769 = vmatprep.mubr.bf16.mxu0 %v691_v14  ;;  %1810 = vmatprep.mubr.bf16.mxu1 %v693_v19  ;;  %v663_v29 = vmax.f32 %v437_v16, 0.0  ;;  %v665_v34 = vmax.f32 %v480_v23, 0.0 }
  0xdb   :  { %1770 = vmatmul.mubr.bf16.vlgmr.msra.gmra.mxu0 %v690_v18  ;;  %v440_v27 = vpop.f32.mrf.mxu0  ;;  %1811 = vmatmul.mubr.bf16.vlgmr.msra.gmra.mxu1 %v692_v24  ;;  %v483_v31 = vpop.f32.mrf.mxu1  ;;  %v435_v18 = vadd.f32 %v2913_v4, %v84_v9  ;;  %v439_v19 = vadd.f32 %v2929_v22, %v84_v9  ;;  %v2544_v4 = vld [vmem:[%s3295_s3 + $0x1c0] sm:$0xff]  }
  0xdc   :  { %2350 = vmatpush3.bf16.msra.mxu0 %v2517_v15  ;;  %v441_v30 = vadd.f32 %v440_v27, %v88_v0  ;;  %2372 = vmatpush3.bf16.msra.mxu1 %v2518_v20  ;;  %v484_v35 = vadd.f32 %v483_v31, %v96_v5  ;;  %v2535_v0 = vld [vmem:[%s3295_s3 + $0x150] sm:$0xff]   ;;  %v2993_v5 = vld [vmem:[%s3296_s2 + $0x8] sm:$0xff]  ;;  %v478_v20 = vadd.f32 %v2918_v3, %v92_v12  ;;  %v2545_v27 = vld [vmem:[%s3295_s3 + $0x100] sm:$0xff]  }
  0xdd   :  { %2351 = vmatprep.subr.bf16.mxu0 %v2519_v21  ;;  %2373 = vmatprep.subr.bf16.mxu1 %v2520_v25  ;;  %v2960_v52 = vpop.f32.mrf.mxu0  ;;  %v2965_v55 = vpop.f32.mrf.mxu1  ;;  %v104_v14 = vrot.slane %v2993_v5, %v71_v38  ;;  %v112_v15 = vrot.slane %v2993_v5, %v79_v40  ;;  %v2542_v38 = vld [vmem:[%s3295_s3 + $0x188] sm:$0xff]   ;;  %v2543_v40 = vld [vmem:[%s3295_s3 + $0x140] sm:$0xff]   ;;  %v482_v21 = vadd.f32 %v2934_v26, %v92_v12  ;;  %v2547_v26 = vld [vmem:[%s3295_s3 + $0x278] sm:$0xff]  }
  0xde   :  { %v679_v43 = vmax.f32 %v441_v30, 0.0  ;;  %v681_v44 = vmax.f32 %v484_v35, 0.0  ;;  %v2546_v3 = vld [vmem:[%s3295_s3 + $0x180] sm:$0xff]   ;;  %v664_v30 = vmax.f32 %v478_v20, 0.0  ;;  %v2571_v20 = vld [vmem:[%s3295_s3 + $0x248] sm:$0xff]  }
  0xdf   :  { %v522_v59 = vpop.f32.mrf.mxu0  ;;  %v565_v61 = vpop.f32.mrf.mxu1  ;;  %v680_v31 = vmax.f32 %v482_v21, 0.0  ;;  %v2562_v9 = vld [vmem:[%s3295_s3 + $0x2a0] sm:$0xff]   ;;  %v108_v21 = vrot.slane %v2993_v5, %v75_v42 }
  0xe0   :  { %2352 = vmatpush3.bf16.msra.mxu0 %v2521_v28  ;;  %v695_v46 = vpack.c.bf16 %v679_v43, %v663_v29  ;;  %2374 = vmatpush3.bf16.msra.mxu1 %v2522_v32  ;;  %v697_v49 = vpack.c.bf16 %v681_v44, %v665_v34  ;;  %v523_v22 = vadd.f32 %v522_v59, %v104_v14  ;;  %v662_v28 = vmax.f32 %v435_v18, 0.0  ;;  %v2548_v32 = vld [vmem:[%s3295_s3 + $0x2f8] sm:$0xff]   ;;  %v2557_v59 = vld [vmem:[%s3295_s3 + $0x228] sm:$0xff]   ;;  %v2569_v18 = vld [vmem:[%s3295_s3 + $0x210] sm:$0xff]  }
  0xe1   :  { %2353 = vmatprep.subr.bf16.mxu0 %v2523_v33  ;;  %2375 = vmatprep.subr.bf16.mxu1 %v2524_v36  ;;  %v2995_v6 = vpop.f32.mrf.mxu0  ;;  %v3000_v8 = vpop.f32.mrf.mxu1  ;;  %v566_v24 = vadd.f32 %v565_v61, %v112_v15  ;;  %v678_v29 = vmax.f32 %v439_v19, 0.0  ;;  %v2549_v43 = vld [vmem:[%s3295_s3 + $0x238] sm:$0xff]   ;;  %v2559_v61 = vld [vmem:[%s3295_s3 + $0x260] sm:$0xff]  }
  0xe2   :  { %1851 = vmatprep.mubr.bf16.mxu0 %v695_v46  ;;  %1892 = vmatprep.mubr.bf16.mxu1 %v697_v49  ;;  %v667_v33 = vmax.f32 %v523_v22, 0.0  ;;  %v2551_v46 = vld [vmem:[%s3295_s3 + $0x270] sm:$0xff]   ;;  %v128_v22 = vrot.slane %v2993_v5, %v95_v53  ;;  %v2575_v53 = vld [vmem:[%s3295_s3 + $0x240] sm:$0xff]  }
  0xe3   :  { %v526_v16 = vpop.f32.mrf.mxu0  ;;  %v569_v41 = vpop.f32.mrf.mxu1  ;;  %v669_v35 = vmax.f32 %v566_v24, 0.0  ;;  %v694_v44 = vpack.c.bf16 %v678_v29, %v662_v28  ;;  %v2573_v24 = vld [vmem:[%s3295_s3 + $0x208] sm:$0xff]   ;;  %v564_v28 = vadd.f32 %v2965_v55, %v108_v21  ;;  %v568_v29 = vadd.f32 %v3000_v8, %v108_v21  ;;  %v2578_v55 = vld [vmem:[%s3295_s3 + $0x280] sm:$0xff]   ;;  %v2579_v8 = vld [vmem:[%s3295_s3 + $0x378] sm:$0xff]  }
  0xe4   :  { %2354 = vmatpush3.bf16.msra.mxu0 %v2525_v45  ;;  %2376 = vmatpush3.bf16.msra.mxu1 %v2526_v47  ;;  %v527_v23 = vadd.f32 %v526_v16, %v104_v14  ;;  %v570_v25 = vadd.f32 %v569_v41, %v112_v15  ;;  %v2550_v45 = vld [vmem:[%s3295_s3 + $0x2b8] sm:$0xff]   ;;  %v696_v47 = vpack.c.bf16 %v680_v31, %v664_v30  ;;  %v2567_v16 = vld [vmem:[%s3295_s3 + $0x250] sm:$0xff]   ;;  %v2577_v31 = vld [vmem:[%s3295_s3 + $0x200] sm:$0xff]  }
  0xe5   :  { %2355 = vmatprep.subr.bf16.mxu0 %v2527_v48  ;;  %2377 = vmatprep.subr.bf16.mxu1 %v2528_v50  ;;  %v2552_v48 = vld [vmem:[%s3295_s3 + $0x2f0] sm:$0xff]   ;;  %v2566_v15 = vld [vmem:[%s3295_s3 + $0x298] sm:$0xff]  }
  0xe6   :  { %v683_v34 = vmax.f32 %v527_v23, 0.0  ;;  %v685_v36 = vmax.f32 %v570_v25, 0.0  ;;  %v2602_v21 = vld [vmem:[%s3295_s3 + $0x390] sm:$0xff]  }
  0xe8   :  { %2356 = vmatpush3.bf16.msra.mxu0 %v2529_v54  ;;  %2378 = vmatpush3.bf16.msra.mxu1 %v2530_v56  ;;  %v699_v49 = vpack.c.bf16 %v683_v34, %v667_v33  ;;  %v701_v50 = vpack.c.bf16 %v685_v36, %v669_v35  ;;  %v2553_v54 = vld [vmem:[%s3295_s3 + $0x230] sm:$0xff]   ;;  %v668_v34 = vmax.f32 %v564_v28, 0.0  ;;  %v684_v35 = vmax.f32 %v568_v29, 0.0  ;;  %v2580_v36 = vld [vmem:[%s3295_s3 + $0x3f8] sm:$0xff]  }
  0xe9   :  { %2357 = vmatprep.subr.bf16.mxu0 %v2531_v57  ;;  %2379 = vmatprep.subr.bf16.mxu1 %v2532_v58  ;;  %v2554_v56 = vld [vmem:[%s3295_s3 + $0x2b0] sm:$0xff]   ;;  %v2555_v57 = vld [vmem:[%s3295_s3 + $0x268] sm:$0xff]  }
  0xea   :  { %v2556_v58 = vld [vmem:[%s3295_s3 + $0x2e8] sm:$0xff]  }
  0xec   :  { %2358 = vmatpush3.bf16.msra.mxu0 %v2533_v60  ;;  %2380 = vmatpush3.bf16.msra.mxu1 %v2534_v63  ;;  %v2558_v60 = vld [vmem:[%s3295_s3 + $0x2a8] sm:$0xff]   ;;  %v2560_v63 = vld [vmem:[%s3295_s3 + $0x2e0] sm:$0xff]  }
  0xed   :  { %2359 = vmatprep.subr.bf16.mxu0 %v2535_v0  ;;  %2381 = vmatprep.subr.bf16.mxu1 %v2536_v2  ;;  %v3087_v0 = vpop.f32.mrf.mxu0  ;;  %v2561_v2 = vld [vmem:[%s3295_s3 + $0x220] sm:$0xff]  }
  0xef   :  { %v608_v12 = vpop.f32.mrf.mxu0 }
  0xf0   :  { %2360 = vmatpush3.bf16.msra.mxu0 %v2537_v7  ;;  %2382 = vmatpush3.bf16.msra.mxu1 %v2538_v10  ;;  %v3092_v7 = vpop.f32.mrf.mxu1  ;;  %v2563_v10 = vld [vmem:[%s3295_s3 + $0x258] sm:$0xff]  }
  0xf1   :  { %2361 = vmatprep.subr.bf16.mxu0 %v2539_v11  ;;  %2383 = vmatprep.subr.bf16.mxu1 %v2540_v13  ;;  %v2564_v11 = vld [vmem:[%s3295_s3 + $0x2d8] sm:$0xff]   ;;  %v3115_v41 = vpop.f32.mrf.mxu0 }
  0xf2   :  { %v2565_v13 = vld [vmem:[%s3295_s3 + $0x218] sm:$0xff]   ;;  %v651_v14 = vpop.f32.mrf.mxu1 }
  0xf3   :  { %v612_v23 = vpop.f32.mrf.mxu0 }
  0xf4   :  { %2362 = vmatpush3.bf16.msra.mxu0 %v2541_v17  ;;  %2384 = vmatpush3.bf16.msra.mxu1 %v2542_v38  ;;  %v2568_v17 = vld [vmem:[%s3295_s3 + $0x2d0] sm:$0xff]   ;;  %v3120_v19 = vpop.f32.mrf.mxu1  ;;  %v100_v38 = vrot.slane %v2993_v5, %v67_v39  ;;  %v120_v39 = vrot.slane %v2993_v5, %v87_v51  ;;  %v2574_v51 = vld [vmem:[%s3295_s3 + $0x288] sm:$0xff]  }
  0xf5   :  { %2363 = vmatprep.subr.bf16.mxu0 %v2543_v40  ;;  %2385 = vmatprep.subr.bf16.mxu1 %v2544_v4  ;;  %v2570_v40 = vld [vmem:[%s3295_s3 + $0x290] sm:$0xff]   ;;  %v2572_v4 = vld [vmem:[%s3295_s3 + $0x2c8] sm:$0xff]  }
  0xf6   :  { %v655_v42 = vpop.f32.mrf.mxu1  ;;  %v521_v25 = vadd.f32 %v2960_v52, %v100_v38  ;;  %v2576_v52 = vld [vmem:[%s3295_s3 + $0x2c0] sm:$0xff]  }
  0xf7   :  { %v656_v30 = vadd.f32 %v655_v42, %v128_v22 }
  0xf8   :  { %2364 = vmatpush3.bf16.msra.mxu0 %v2545_v27  ;;  %2386 = vmatpush3.bf16.msra.mxu1 %v2546_v3  ;;  %v525_v27 = vadd.f32 %v2995_v6, %v100_v38  ;;  %v609_v6 = vadd.f32 %v608_v12, %v120_v39  ;;  %v613_v3 = vadd.f32 %v612_v23, %v120_v39  ;;  %v2593_v12 = vld [vmem:[%s3295_s3 + $0x320] sm:$0xff]   ;;  %v2600_v38 = vld [vmem:[%s3295_s3 + $0x3d0] sm:$0xff]  }
  0xf9   :  { %2393 = vmatprep.subr.bf16.mxu0 %v2547_v26  ;;  %2415 = vmatprep.subr.bf16.mxu1 %v2548_v32  ;;  %v652_v26 = vadd.f32 %v651_v14, %v128_v22  ;;  %v666_v32 = vmax.f32 %v521_v25, 0.0  ;;  %v2595_v14 = vld [vmem:[%s3295_s3 + $0x358] sm:$0xff]   ;;  %v124_v39 = vrot.slane %v2993_v5, %v91_v1  ;;  %v2604_v22 = vld [vmem:[%s3295_s3 + $0x3c8] sm:$0xff]   ;;  %v2607_v1 = vld [vmem:[%s3295_s3 + $0x340] sm:$0xff]  }
  0xfa   :  { %v682_v33 = vmax.f32 %v525_v27, 0.0 }
  0xfb   :  { %1852 = vmatmul.mubr.bf16.vlgmr.msra.gmra.mxu0 %v694_v44  ;;  %1893 = vmatmul.mubr.bf16.vlgmr.msra.gmra.mxu1 %v696_v47  ;;  %v687_v44 = vmax.f32 %v613_v3, 0.0  ;;  %v2581_v47 = vld [vmem:[%s3295_s3 + $0x338] sm:$0xff]   ;;  %v654_v42 = vadd.f32 %v3120_v19, %v124_v39 }
  0xfc   :  { %2394 = vmatpush3.bf16.msra.mxu0 %v2549_v43  ;;  %2416 = vmatpush3.bf16.msra.mxu1 %v2550_v45  ;;  %v671_v43 = vmax.f32 %v609_v6, 0.0  ;;  %v673_v45 = vmax.f32 %v652_v26, 0.0 }
  0xfd   :  { %2395 = vmatprep.subr.bf16.mxu0 %v2551_v46  ;;  %2417 = vmatprep.subr.bf16.mxu1 %v2552_v48  ;;  %v689_v46 = vmax.f32 %v656_v30, 0.0  ;;  %v698_v48 = vpack.c.bf16 %v682_v33, %v666_v32  ;;  %v688_v19 = vmax.f32 %v654_v42, 0.0 }
  0xfe   :  { %1933 = vmatprep.mubr.bf16.mxu0 %v699_v49  ;;  %1974 = vmatprep.mubr.bf16.mxu1 %v701_v50  ;;  %v2582_v49 = vld [vmem:[%s3295_s3 + $0x3b8] sm:$0xff]   ;;  %v2583_v50 = vld [vmem:[%s3295_s3 + $0x370] sm:$0xff]  }
 0x100   :  { %2396 = vmatpush3.bf16.msra.mxu0 %v2553_v54  ;;  %2418 = vmatpush3.bf16.msra.mxu1 %v2554_v56  ;;  %v700_v54 = vpack.c.bf16 %v684_v35, %v668_v34  ;;  %v2584_v56 = vld [vmem:[%s3295_s3 + $0x3f0] sm:$0xff]  }
 0x101   :  { %2397 = vmatprep.subr.bf16.mxu0 %v2555_v57  ;;  %2419 = vmatprep.subr.bf16.mxu1 %v2556_v58  ;;  %v703_v57 = vpack.c.bf16 %v687_v44, %v671_v43  ;;  %v705_v58 = vpack.c.bf16 %v689_v46, %v673_v45  ;;  %v2170_v45 = vld [vmem:[%s3297_s4] ss:$0 sm:$0xff] }
 0x104   :  { %2398 = vmatpush3.bf16.msra.mxu0 %v2557_v59  ;;  %2420 = vmatpush3.bf16.msra.mxu1 %v2558_v60  ;;  %v2585_v59 = vld [vmem:[%s3295_s3 + $0x330] sm:$0xff]  }
 0x105   :  { %2399 = vmatprep.subr.bf16.mxu0 %v2559_v61  ;;  %2421 = vmatprep.subr.bf16.mxu1 %v2560_v63  ;;  %v2586_v60 = vld [vmem:[%s3295_s3 + $0x3b0] sm:$0xff]   ;;  %v2587_v61 = vld [vmem:[%s3295_s3 + $0x368] sm:$0xff]  }
 0x106   :  { %v2588_v63 = vld [vmem:[%s3295_s3 + $0x3e8] sm:$0xff]  }
 0x108   :  { %2400 = vmatpush3.bf16.msra.mxu0 %v2561_v2  ;;  %2422 = vmatpush3.bf16.msra.mxu1 %v2562_v9  ;;  %v2589_v2 = vld [vmem:[%s3295_s3 + $0x328] sm:$0xff]  }
 0x109   :  { %2401 = vmatprep.subr.bf16.mxu0 %v2563_v10  ;;  %2423 = vmatprep.subr.bf16.mxu1 %v2564_v11  ;;  %v2590_v9 = vld [vmem:[%s3295_s3 + $0x3a8] sm:$0xff]   ;;  %v2591_v10 = vld [vmem:[%s3295_s3 + $0x360] sm:$0xff]  }
 0x10a   :  { %v2592_v11 = vld [vmem:[%s3295_s3 + $0x3e0] sm:$0xff]  }
 0x10c   :  { %2402 = vmatpush3.bf16.msra.mxu0 %v2565_v13  ;;  %2424 = vmatpush3.bf16.msra.mxu1 %v2566_v15  ;;  %v2594_v13 = vld [vmem:[%s3295_s3 + $0x3a0] sm:$0xff]   ;;  %v2596_v15 = vld [vmem:[%s3295_s3 + $0x3d8] sm:$0xff]  }
 0x10d   :  { %2403 = vmatprep.subr.bf16.mxu0 %v2567_v16  ;;  %2425 = vmatprep.subr.bf16.mxu1 %v2568_v17  ;;  %v2597_v16 = vld [vmem:[%s3295_s3 + $0x318] sm:$0xff]  }
 0x10e   :  { %v2598_v17 = vld [vmem:[%s3295_s3 + $0x398] sm:$0xff]  }
 0x110   :  { %2404 = vmatpush3.bf16.msra.mxu0 %v2569_v18  ;;  %2426 = vmatpush3.bf16.msra.mxu1 %v2570_v40  ;;  %v2599_v18 = vld [vmem:[%s3295_s3 + $0x350] sm:$0xff]  }
 0x111   :  { %2405 = vmatprep.subr.bf16.mxu0 %v2571_v20  ;;  %2427 = vmatprep.subr.bf16.mxu1 %v2572_v4  ;;  %v2601_v40 = vld [vmem:[%s3295_s3 + $0x310] sm:$0xff]   ;;  %v116_v20 = vrot.slane %v2993_v5, %v83_v62  ;;  %v2603_v4 = vld [vmem:[%s3295_s3 + $0x348] sm:$0xff]   ;;  %v650_v5 = vadd.f32 %v3092_v7, %v124_v39  ;;  %v2610_v7 = vld [vmem:[%s3295_s3 + $0x380] sm:$0xff]  }
 0x112   :  { %v2605_v62 = vld [vmem:[%s3295_s3 + $0x308] sm:$0xff]  }
 0x113   :  { %v607_v23 = vadd.f32 %v3087_v0, %v116_v20  ;;  %v2608_v0 = vld [vmem:[%s3295_s3 + $0x3c0] sm:$0xff]  }
 0x114   :  { %2406 = vmatpush3.bf16.msra.mxu0 %v2573_v24  ;;  %2428 = vmatpush3.bf16.msra.mxu1 %v2574_v51  ;;  %v611_v24 = vadd.f32 %v3115_v41, %v116_v20  ;;  %v2609_v41 = vld [vmem:[%s3295_s3 + $0x300] sm:$0xff]   ;;  %v672_v51 = vmax.f32 %v650_v5, 0.0 }
 0x115   :  { %2407 = vmatprep.subr.bf16.mxu0 %v2575_v53  ;;  %2429 = vmatprep.subr.bf16.mxu1 %v2576_v52  ;;  %v670_v25 = vmax.f32 %v607_v23, 0.0 }
 0x116   :  { %v686_v27 = vmax.f32 %v611_v24, 0.0  ;;  %v704_v28 = vpack.c.bf16 %v688_v19, %v672_v51 }
 0x118   :  { %2408 = vmatpush3.bf16.msra.mxu0 %v2577_v31  ;;  %2430 = vmatpush3.bf16.msra.mxu1 %v2578_v55  ;;  %v702_v53 = vpack.c.bf16 %v686_v27, %v670_v25  ;;  %v2616_v25 = vld [vmem:[%s3294_s0] sm:$0xff]  }
 0x119   :  { %2437 = vmatprep.subr.bf16.mxu0 %v2579_v8  ;;  %2459 = vmatprep.subr.bf16.mxu1 %v2580_v36  ;;  %v2065_v27 = vunpack.c.l.bf16 %v2616_v25 }
 0x11b   :  { %1934 = vmatmul.mubr.bf16.vlgmr.msra.gmra.mxu0 %v698_v48  ;;  %1975 = vmatmul.mubr.bf16.vlgmr.msra.gmra.mxu1 %v700_v54 }
 0x11c   :  { %2438 = vmatpush3.bf16.msra.mxu0 %v2581_v47  ;;  %2460 = vmatpush3.bf16.msra.mxu1 %v2582_v49 }
 0x11d   :  { %2439 = vmatprep.subr.bf16.mxu0 %v2583_v50  ;;  %2461 = vmatprep.subr.bf16.mxu1 %v2584_v56 }
 0x11e   :  { %2015 = vmatprep.mubr.bf16.mxu0 %v703_v57  ;;  %2056 = vmatprep.mubr.bf16.mxu1 %v705_v58 }
 0x120   :  { %2440 = vmatpush3.bf16.msra.mxu0 %v2585_v59  ;;  %2462 = vmatpush3.bf16.msra.mxu1 %v2586_v60 }
 0x121   :  { %2441 = vmatprep.subr.bf16.mxu0 %v2587_v61  ;;  %2463 = vmatprep.subr.bf16.mxu1 %v2588_v63 }
 0x124   :  { %2442 = vmatpush3.bf16.msra.mxu0 %v2589_v2  ;;  %2464 = vmatpush3.bf16.msra.mxu1 %v2590_v9 }
 0x125   :  { %2443 = vmatprep.subr.bf16.mxu0 %v2591_v10  ;;  %2465 = vmatprep.subr.bf16.mxu1 %v2592_v11 }
 0x128   :  { %2444 = vmatpush3.bf16.msra.mxu0 %v2593_v12  ;;  %2466 = vmatpush3.bf16.msra.mxu1 %v2594_v13 }
 0x129   :  { %2445 = vmatprep.subr.bf16.mxu0 %v2595_v14  ;;  %2467 = vmatprep.subr.bf16.mxu1 %v2596_v15 }
 0x12c   :  { %2446 = vmatpush3.bf16.msra.mxu0 %v2597_v16  ;;  %2468 = vmatpush3.bf16.msra.mxu1 %v2598_v17 }
 0x12d   :  { %2447 = vmatprep.subr.bf16.mxu0 %v2599_v18  ;;  %2469 = vmatprep.subr.bf16.mxu1 %v2600_v38 }
 0x130   :  { %2448 = vmatpush3.bf16.msra.mxu0 %v2601_v40  ;;  %2470 = vmatpush3.bf16.msra.mxu1 %v2602_v21 }
 0x131   :  { %2449 = vmatprep.subr.bf16.mxu0 %v2603_v4  ;;  %2471 = vmatprep.subr.bf16.mxu1 %v2604_v22 }
 0x134   :  { %2450 = vmatpush3.bf16.msra.mxu0 %v2605_v62  ;;  %2472 = vmatpush3.bf16.msra.mxu1 %v2606_v37 }
 0x135   :  { %2451 = vmatprep.subr.bf16.mxu0 %v2607_v1  ;;  %2473 = vmatprep.subr.bf16.mxu1 %v2608_v0 }
 0x138   :  { %2452 = vmatpush3.bf16.msra.mxu0 %v2609_v41  ;;  %2474 = vmatpush3.bf16.msra.mxu1 %v2610_v7 }
 0x13b   :  { %2016 = vmatmul.mubr.bf16.vlgmr.msra.gmra.mxu0 %v702_v53  ;;  %2057 = vmatmul.mubr.bf16.vlgmr.msra.gmra.mxu1 %v704_v28 }
 0x19b   :  { %v2321_v29 = vpop.f32.mrf.mxu0  ;;  %v2343_v52 = vpop.f32.mrf.mxu1 }
 0x19d   :  { %v2322_v6 = vpop.f32.mrf.mxu0  ;;  %v2344_v3 = vpop.f32.mrf.mxu1 }
 0x19e   :  { %v2323_v44 = vadd.f32 %v2322_v6, %v2321_v29  ;;  %v2345_v56 = vadd.f32 %v2344_v3, %v2343_v52  ;;  %v2066_v3 = vunpack.c.h.bf16 %v2616_v25 }
 0x19f   :  { %v2324_v26 = vpop.f32.mrf.mxu0  ;;  %v2346_v30 = vpop.f32.mrf.mxu1 }
 0x1a0   :  { %v1772_v48 = vadd.f32 %v2323_v44, %v2170_v45 }
 0x1a1   :  { %v2325_v31 = vpop.f32.mrf.mxu0  ;;  %v2347_v33 = vpop.f32.mrf.mxu1 }
 0x1a2   :  { %v2326_v49 = vadd.f32 %v2325_v31, %v2324_v26  ;;  %v1813_v58 = vadd.f32 %v2345_v56, %v1772_v48  ;;  %v2348_v63 = vadd.f32 %v2347_v33, %v2346_v30 }
 0x1a4   :  { %v1775_v59 = vadd.f32 %v2326_v49, %v2170_v45 }
 0x1a6   :  { %v1816_v10 = vadd.f32 %v2348_v63, %v1775_v59 }
 0x1bb   :  { %v2365_v32 = vpop.f32.mrf.mxu0  ;;  %v2387_v55 = vpop.f32.mrf.mxu1 }
 0x1bd   :  { %v2366_v8 = vpop.f32.mrf.mxu0  ;;  %v2388_v34 = vpop.f32.mrf.mxu1 }
 0x1be   :  { %v2367_v57 = vadd.f32 %v2366_v8, %v2365_v32  ;;  %v2389_v11 = vadd.f32 %v2388_v34, %v2387_v55 }
 0x1bf   :  { %v2368_v35 = vpop.f32.mrf.mxu0  ;;  %v2390_v36 = vpop.f32.mrf.mxu1 }
 0x1c0   :  { %v1854_v2 = vadd.f32 %v2367_v57, %v1813_v58  ;;  %v2299_v58 = vld [vmem:[%s3298_s5] ss:$0 sm:$0xff] }
 0x1c1   :  { %v2369_v43 = vpop.f32.mrf.mxu0  ;;  %v2391_v47 = vpop.f32.mrf.mxu1 }
 0x1c2   :  { %v2370_v9 = vadd.f32 %v2369_v43, %v2368_v35  ;;  %v1895_v15 = vadd.f32 %v2389_v11, %v1854_v2  ;;  %v2392_v17 = vadd.f32 %v2391_v47, %v2390_v36 }
 0x1c4   :  { %v1857_v16 = vadd.f32 %v2370_v9, %v1816_v10 }
 0x1c6   :  { %v1898_v21 = vadd.f32 %v2392_v17, %v1857_v16 }
 0x1db   :  { %v2409_v46 = vpop.f32.mrf.mxu0  ;;  %v2431_v50 = vpop.f32.mrf.mxu1 }
 0x1dd   :  { %v2410_v54 = vpop.f32.mrf.mxu0  ;;  %v2432_v60 = vpop.f32.mrf.mxu1 }
 0x1de   :  { %v2411_v12 = vadd.f32 %v2410_v54, %v2409_v46  ;;  %v2433_v4 = vadd.f32 %v2432_v60, %v2431_v50  ;;  %v2300_v60 = vld [vmem:[%s3299_s6] ss:$0 sm:$0xff] }
 0x1df   :  { %v2412_v61 = vpop.f32.mrf.mxu0  ;;  %v2434_v13 = vpop.f32.mrf.mxu1 }
 0x1e0   :  { %v1936_v18 = vadd.f32 %v2411_v12, %v1895_v15 }
 0x1e1   :  { %v2413_v14 = vpop.f32.mrf.mxu0  ;;  %v2435_v40 = vpop.f32.mrf.mxu1 }
 0x1e2   :  { %v2414_v38 = vadd.f32 %v2413_v14, %v2412_v61  ;;  %v1977_v62 = vadd.f32 %v2433_v4, %v1936_v18  ;;  %v2436_v5 = vadd.f32 %v2435_v40, %v2434_v13 }
 0x1e4   :  { %v1939_v23 = vadd.f32 %v2414_v38, %v1898_v21 }
 0x1e6   :  { %v1980_v51 = vadd.f32 %v2436_v5, %v1939_v23 }
 0x1fb   :  { %v2453_v20 = vpop.f32.mrf.mxu0  ;;  %v2475_v39 = vpop.f32.mrf.mxu1 }
 0x1fd   :  { %v2454_v22 = vpop.f32.mrf.mxu0  ;;  %v2476_v37 = vpop.f32.mrf.mxu1 }
 0x1fe   :  { %v2455_v24 = vadd.f32 %v2454_v22, %v2453_v20  ;;  %v2477_v0 = vadd.f32 %v2476_v37, %v2475_v39 }
 0x1ff   :  { %v2456_v1 = vpop.f32.mrf.mxu0  ;;  %v2478_v41 = vpop.f32.mrf.mxu1 }
 0x200   :  { %v2018_v42 = vadd.f32 %v2455_v24, %v1977_v62 }
 0x201   :  { %v2457_v7 = vpop.f32.mrf.mxu0  ;;  %v2479_v28 = vpop.f32.mrf.mxu1 }
 0x202   :  { %v2059_v19 = vadd.f32 %v2477_v0, %v2018_v42  ;;  %v2458_v53 = vadd.f32 %v2457_v7, %v2456_v1  ;;  %v2480_v52 = vadd.f32 %v2479_v28, %v2478_v41 }
 0x204   :  { %v2021_v29 = vadd.f32 %v2458_v53, %v1980_v51  ;;  %v2067_v6 = vadd.f32 %v2065_v27, %v2059_v19 }
 0x206   :  { %v2062_v26 = vadd.f32 %v2480_v52, %v2021_v29  ;;  %v2069_v30 = vsel %vm310_vm0, %v2067_v6, 0.0 }
 0x207   :  { %2070 = vadd.xlane.f32.xlu0 %v2069_v30 }
 0x208   :  { %v2068_v31 = vadd.f32 %v2066_v3, %v2062_v26 }
 0x20a   :  { %v2072_v32 = vsel %vm310_vm0, %v2068_v31, 0.0 }
 0x20b   :  { %2073 = vadd.xlane.f32.xlu0 %v2072_v32 }
 0x290   :  { %v2071_v33 = vpop.xlane.xlu0 %2070 }
 0x291   :  { %v2076_v55 = vmul.f32 0.03125, %v2071_v33 }
 0x293   :  { %v2078_v8 = vsub.f32 %v2067_v6, %v2076_v55 }
 0x294   :  { %v2074_v34 = vpop.xlane.xlu0 %2073 }
 0x295   :  { %v2077_v35 = vmul.f32 0.03125, %v2074_v34  ;;  %v2080_v36 = vmul.f32 %v2078_v8, %v2078_v8 }
 0x297   :  { %v2079_v43 = vsub.f32 %v2068_v31, %v2077_v35  ;;  %v2082_v44 = vsel %vm310_vm0, %v2080_v36, 0.0 }
 0x298   :  { %2083 = vadd.xlane.f32.xlu1 %v2082_v44 }
 0x299   :  { %v2081_v45 = vmul.f32 %v2079_v43, %v2079_v43 }
 0x29b   :  { %v2085_v46 = vsel %vm310_vm0, %v2081_v45, 0.0 }
 0x29c   :  { %2086 = vadd.xlane.f32.xlu1 %v2085_v46 }
 0x321   :  { %v2084_v47 = vpop.xlane.xlu1 %2083 }
 0x322   :  { %v2088_v48 = vmul.f32 0.03125, %v2084_v47 }
 0x324   :  { %v2090_v49 = vadd.f32 1e-06, %v2088_v48 }
 0x325   :  { %v2087_v50 = vpop.xlane.xlu1 %2086 }
 0x326   :  { %2612 = vrsqrt.f32 %v2090_v49  ;;  %v2089_v54 = vmul.f32 0.03125, %v2087_v50 }
 0x328   :  { %v2091_v56 = vadd.f32 1e-06, %v2089_v54 }
 0x32a   :  { %2614 = vrsqrt.f32 %v2091_v56 }
 0x333   :  { %v2613_v57 = vpop.eup %2612 }
 0x334   :  { %v2094_v59 = vmul.f32 %v2613_v57, %v2078_v8 }
 0x336   :  { %v2103_v61 = vmul.f32 %v2299_v58, %v2094_v59 }
 0x337   :  { %v2615_v63 = vpop.eup %2614 }
 0x338   :  { %v2112_v2 = vadd.f32 %v2300_v60, %v2103_v61  ;;  %v2095_v9 = vmul.f32 %v2615_v63, %v2079_v43 }
 0x33a   :  { %v2303_v10 = vpack.c.bf16 %v2112_v2, %v2112_v2  ;;  %v2104_v11 = vmul.f32 %v2299_v58, %v2095_v9 }
 0x33c   :  { %2123 = vst.msk [vmem:[%s3300_s7] sm:$0xf] %vm2122_vm1, %v2303_v10  ;;  %v2113_v12 = vadd.f32 %v2300_v60, %v2104_v11 }
 0x33e   :  { %v2304_v13 = vpack.c.bf16 %v2113_v12, %v2113_v12 }
 0x340   :  { %2124 = vst.msk [vmem:[%s3300_s7 + $0x4] sm:$0xf] %vm2122_vm1, %v2304_v13 }

</bundles_post_ra>
